<compile_context>
chip_gen: v7x
topology: tpu7x:2x2x1
jax: 0.10.0
libtpu: 0.0.40
codegen_flags: <defaults>
</compile_context>

<pallas_src>
import functools

import jax
import jax.numpy as jnp
from jax.experimental import pallas as pl
from jax.experimental.pallas import tpu as pltpu

# ----------------------- scaled-down ViT config -----------------------------
B = 2             # batch
C_IN = 3          # image channels
IMG = 16          # image spatial size
PATCH = 8         # patch size (real model: 16)
GRID_HW = IMG // PATCH
N_PATCH = GRID_HW * GRID_HW          # 4
SEQ = N_PATCH + 1                    # 5  (cls token + patches)
D = 128           # embed dim (real model: 768)
HEADS = 4         # (real model: 12)
HEAD_DIM = D // HEADS                # 32
MLP = 4 * D
DEPTH = 2         # (real model: 12)
NUM_CLASSES = 1
LANE = 128        # lane-dense padding of the tiny fc output
LN_EPS = 1e-6
TOKENS = B * SEQ                     # 10
PATCH_DIM = C_IN * PATCH * PATCH     # 192

VMEM = pl.BlockSpec(memory_space=pltpu.MemorySpace.VMEM)


def _ln(z, g, b):
    mu = jnp.mean(z, axis=-1, keepdims=True)
    var = jnp.mean(jnp.square(z - mu), axis=-1, keepdims=True)
    return (z - mu) * jax.lax.rsqrt(var + LN_EPS) * g + b


def _bf16(v):
    return v.astype(jnp.bfloat16)


# ----------------------- single fused forward kernel ------------------------
def fused_vit_kernel(
        patches_ref, pw_ref, pb_ref, cls_ref, pos_ref,
        g1_ref, b1_ref, wqkv_ref, bqkv_ref, wproj_ref, bproj_ref,
        g2_ref, b2_ref, w1_ref, bf1_ref, w2_ref, bf2_ref,
        gf_ref, bfin_ref, fcw_ref, fcb_ref,
        feat_ref, logit_ref):
    # -------- stage 1: patch embedding + cls token + positional embedding ---
    tok = jnp.dot(_bf16(patches_ref[...]), pw_ref[...],
                  preferred_element_type=jnp.float32) + pb_ref[...]
    pos = pos_ref[...]                                   # (SEQ, D)
    cls_row = cls_ref[...] + pos[0:1, :]                 # (1, D)
    rows = []
    for b in range(B):
        rows.append(cls_row)
        rows.append(tok[b * N_PATCH:(b + 1) * N_PATCH, :] + pos[1:, :])
    x = jnp.concatenate(rows, axis=0)                    # (B*SEQ, D) f32

    scale = 1.0 / (HEAD_DIM ** 0.5)

    # -------- stage 2: DEPTH transformer blocks (statically unrolled) -------
    for l in range(DEPTH):
        # --- attention branch ---
        h = _ln(x, g1_ref[l], b1_ref[l])
        qkv = jnp.dot(_bf16(h), wqkv_ref[l],
                      preferred_element_type=jnp.float32) + bqkv_ref[l]

        def heads_of(col0):
            # (B*HEADS, SEQ, HEAD_DIM) stack of per-(image, head) slices
            parts = []
            for b in range(B):
                rs = slice(b * SEQ, (b + 1) * SEQ)
                for hh in range(HEADS):
                    cs = slice(col0 + hh * HEAD_DIM, col0 + (hh + 1) * HEAD_DIM)
                    parts.append(qkv[rs, cs].reshape(1, SEQ, HEAD_DIM))
            return jnp.concatenate(parts, axis=0)

        q3 = heads_of(0)
        k3 = heads_of(D)
        v3 = heads_of(2 * D)

        # one batched matmul over the (B*HEADS) leading axis: scores + PV
        s = jax.lax.dot_general(
            _bf16(q3), _bf16(k3), (((2,), (2,)), ((0,), (0,))),
            preferred_element_type=jnp.float32) * scale    # (BH, SEQ, SEQ)
        s = s - jnp.max(s, axis=-1, keepdims=True)
        p = jnp.exp(s)
        p = p * pl.reciprocal(jnp.sum(p, axis=-1, keepdims=True), approx=True)
        o3 = jax.lax.dot_general(
            _bf16(p), _bf16(v3), (((2,), (1,)), ((0,), (0,))),
            preferred_element_type=jnp.float32)            # (BH, SEQ, HEAD_DIM)

        img_rows = []
        for b in range(B):
            img_rows.append(jnp.concatenate(
                [o3[b * HEADS + hh] for hh in range(HEADS)], axis=-1))
        attn = jnp.concatenate(img_rows, axis=0)           # (B*SEQ, D)

        attn = jnp.dot(_bf16(attn), wproj_ref[l],
                       preferred_element_type=jnp.float32) + bproj_ref[l]
        x = x + attn                                        # residual 1

        # --- MLP branch ---
        h = _ln(x, g2_ref[l], b2_ref[l])
        h = jnp.dot(_bf16(h), w1_ref[l],
                    preferred_element_type=jnp.float32) + bf1_ref[l]
        # TODO(synk): PyTorch nn.GELU default is exact erf; tanh approximation
        # used here for a Mosaic-safe EUP transcendental.
        h = jax.nn.gelu(h, approximate=True)
        h = jnp.dot(_bf16(h), w2_ref[l],
                    preferred_element_type=jnp.float32) + bf2_ref[l]
        x = x + h                                           # residual 2

    # -------- stage 3: final LN on cls tokens + fc head (lane-dense) --------
    cls_tok = jnp.concatenate(
        [x[b * SEQ:b * SEQ + 1, :] for b in range(B)], axis=0)   # (B, D)
    feat = _ln(cls_tok, gf_ref[...], bfin_ref[...])
    feat_ref[...] = feat
    logit_ref[...] = jnp.dot(feat, fcw_ref[...],
                             preferred_element_type=jnp.float32) + fcb_ref[...]


# ----------------------- parameters ------------------------------------------
def init_params(key):
    keys = iter(jax.random.split(key, 64))
    nrm = lambda shape, s=0.02: jax.random.normal(next(keys), shape,
                                                  jnp.float32) * s
    params = {
        "patch_w": nrm((PATCH_DIM, D)),   # conv kernel flattened (C,ph,pw) -> in
        "patch_b": jnp.zeros((D,), jnp.float32),
        "cls": nrm((1, 1, D)),
        "pos": nrm((1, SEQ, D)),
        "blocks": [],
        "gf": jnp.ones((D,), jnp.float32),
        "bf": jnp.zeros((D,), jnp.float32),
        "fc_w": nrm((D, NUM_CLASSES)),    # self.fc = nn.Linear(channels, num_classes)
        "fc_b": jnp.zeros((NUM_CLASSES,), jnp.float32),
    }
    for _ in range(DEPTH):
        params["blocks"].append({
            "g1": jnp.ones((D,), jnp.float32), "b1": jnp.zeros((D,), jnp.float32),
            "wqkv": nrm((D, 3 * D)), "bqkv": jnp.zeros((3 * D,), jnp.float32),
            "wproj": nrm((D, D)), "bproj": jnp.zeros((D,), jnp.float32),
            "g2": jnp.ones((D,), jnp.float32), "b2": jnp.zeros((D,), jnp.float32),
            "w1": nrm((D, MLP)), "bf1": jnp.zeros((MLP,), jnp.float32),
            "w2": nrm((MLP, D)), "bf2": jnp.zeros((D,), jnp.float32),
        })
    return params


def _pack(params):
    """Kernel-friendly layout: per-block weights stacked along a depth axis,
    matmul weights cast to bf16, gains/biases as (DEPTH, 1, dim) rows,
    1-wide fc zero-padded to 128 output lanes (lane-dense store)."""
    blocks = params["blocks"]
    stack_w = lambda n: jnp.stack([blk[n] for blk in blocks], 0).astype(jnp.bfloat16)
    stack_r = lambda n, dim: jnp.stack(
        [blk[n].reshape(1, dim) for blk in blocks], 0)
    row = lambda a, dim: a.reshape(1, dim)

    fcw_pad = jnp.zeros((D, LANE), jnp.float32).at[:, :NUM_CLASSES].set(
        params["fc_w"])
    fcb_pad = jnp.zeros((1, LANE), jnp.float32).at[:, :NUM_CLASSES].set(
        params["fc_b"].reshape(1, NUM_CLASSES))

    return dict(
        pw=params["patch_w"].astype(jnp.bfloat16),
        pb=row(params["patch_b"], D),
        cls=params["cls"].reshape(1, D),
        pos=params["pos"].reshape(SEQ, D),
        g1=stack_r("g1", D), b1=stack_r("b1", D),
        wqkv=stack_w("wqkv"), bqkv=stack_r("bqkv", 3 * D),
        wproj=stack_w("wproj"), bproj=stack_r("bproj", D),
        g2=stack_r("g2", D), b2=stack_r("b2", D),
        w1=stack_w("w1"), bf1=stack_r("bf1", MLP),
        w2=stack_w("w2"), bf2=stack_r("bf2", D),
        gf=row(params["gf"], D), bfin=row(params["bf"], D),
        fcw=fcw_pad, fcb=fcb_pad,
    )


# ----------------------- full forward (== SynCLRModel.forward) ---------------
def synclr_forward(x_nchw, params, return_feature=False):
    Bx, C, H, W = x_nchw.shape
    assert (Bx, C, H, W) == (B, C_IN, IMG, IMG), x_nchw.shape
    gh, gw = H // PATCH, W // PATCH

    # patchify (pure-JAX glue): NCHW -> (B*num_patches, C*P*P), matching
    # Conv2d(C, D, kernel=P, stride=P) with weight flattened as (D, C*P*P).T
    patches = x_nchw.reshape(Bx, C, gh, PATCH, gw, PATCH)
    patches = patches.transpose(0, 2, 4, 1, 3, 5).reshape(
        Bx * gh * gw, C * PATCH * PATCH)

    p = _pack(params)
    args = (patches, p["pw"], p["pb"], p["cls"], p["pos"],
            p["g1"], p["b1"], p["wqkv"], p["bqkv"], p["wproj"], p["bproj"],
            p["g2"], p["b2"], p["w1"], p["bf1"], p["w2"], p["bf2"],
            p["gf"], p["bfin"], p["fcw"], p["fcb"])

    feat, logits_pad = pl.pallas_call(
        fused_vit_kernel,
        out_shape=(jax.ShapeDtypeStruct((B, D), jnp.float32),
                   jax.ShapeDtypeStruct((B, LANE), jnp.float32)),
        in_specs=[VMEM] * len(args),
        out_specs=(VMEM, VMEM),
    )(*args)

    if return_feature:
        return feat
    return logits_pad[:, :NUM_CLASSES]


# ----------------------- demo ------------------------------------------------
if __name__ == "__main__":
    key = jax.random.PRNGKey(0)
    kp, kx = jax.random.split(key)
    params = init_params(kp)
    x = jax.random.normal(kx, (B, C_IN, IMG, IMG), jnp.float32)

    fwd = jax.jit(functools.partial(synclr_forward, params=params))
    logits = fwd(x)
    jax.block_until_ready(logits)
    assert logits.shape == (B, NUM_CLASSES), logits.shape
    assert bool(jnp.all(jnp.isfinite(logits)))
    print("KERNEL_OK")
</pallas_src>

<mosaic_0001>
module attributes {stable_mosaic.version = 11 : i64} {
  func.func @fused_vit_kernel(%arg0: memref<8x192xf32, #tpu.memory_space<vmem>>, %arg1: memref<192x128xbf16, #tpu.memory_space<vmem>>, %arg2: memref<1x128xf32, #tpu.memory_space<vmem>>, %arg3: memref<1x128xf32, #tpu.memory_space<vmem>>, %arg4: memref<5x128xf32, #tpu.memory_space<vmem>>, %arg5: memref<2x1x128xf32, #tpu.memory_space<vmem>>, %arg6: memref<2x1x128xf32, #tpu.memory_space<vmem>>, %arg7: memref<2x128x384xbf16, #tpu.memory_space<vmem>>, %arg8: memref<2x1x384xf32, #tpu.memory_space<vmem>>, %arg9: memref<2x128x128xbf16, #tpu.memory_space<vmem>>, %arg10: memref<2x1x128xf32, #tpu.memory_space<vmem>>, %arg11: memref<2x1x128xf32, #tpu.memory_space<vmem>>, %arg12: memref<2x1x128xf32, #tpu.memory_space<vmem>>, %arg13: memref<2x128x512xbf16, #tpu.memory_space<vmem>>, %arg14: memref<2x1x512xf32, #tpu.memory_space<vmem>>, %arg15: memref<2x512x128xbf16, #tpu.memory_space<vmem>>, %arg16: memref<2x1x128xf32, #tpu.memory_space<vmem>>, %arg17: memref<1x128xf32, #tpu.memory_space<vmem>>, %arg18: memref<1x128xf32, #tpu.memory_space<vmem>>, %arg19: memref<128x128xf32, #tpu.memory_space<vmem>>, %arg20: memref<1x128xf32, #tpu.memory_space<vmem>>, %arg21: memref<2x128xf32, #tpu.memory_space<vmem>>, %arg22: memref<2x128xf32, #tpu.memory_space<vmem>>) attributes {dimension_semantics = [], scalar_prefetch = 0 : i64, scratch_operands = 0 : i64, tpu.core_type = #tpu.core_type<tc>} {
    %c0 = arith.constant 0 : index
    %c0_0 = arith.constant 0 : index
    %0 = vector.load %arg0[%c0, %c0_0] : memref<8x192xf32, #tpu.memory_space<vmem>>, vector<8x192xf32>
    %1 = arith.truncf %0 : vector<8x192xf32> to vector<8x192xbf16>
    %c0_1 = arith.constant 0 : index
    %c0_2 = arith.constant 0 : index
    %2 = vector.load %arg1[%c0_1, %c0_2] : memref<192x128xbf16, #tpu.memory_space<vmem>>, vector<192x128xbf16>
    %cst = arith.constant dense<0.000000e+00> : vector<8x128xf32>
    %3 = tpu.matmul %1, %2, %cst {dimension_numbers = #tpu.dot_dimension_numbers<[1], [0], [0], [1], [0, 0, 1, 1], [], []>} : vector<8x192xbf16>, vector<192x128xbf16>, vector<8x128xf32> -> vector<8x128xf32>
    %c0_3 = arith.constant 0 : index
    %c0_4 = arith.constant 0 : index
    %4 = vector.load %arg2[%c0_3, %c0_4] : memref<1x128xf32, #tpu.memory_space<vmem>>, vector<1x128xf32>
    %5 = vector.broadcast %4 : vector<1x128xf32> to vector<8x128xf32>
    %6 = arith.addf %3, %5 : vector<8x128xf32>
    %c0_5 = arith.constant 0 : index
    %c0_6 = arith.constant 0 : index
    %7 = vector.load %arg4[%c0_5, %c0_6] : memref<5x128xf32, #tpu.memory_space<vmem>>, vector<5x128xf32>
    %c0_7 = arith.constant 0 : index
    %c0_8 = arith.constant 0 : index
    %8 = vector.load %arg3[%c0_7, %c0_8] : memref<1x128xf32, #tpu.memory_space<vmem>>, vector<1x128xf32>
    %9 = vector.extract_strided_slice %7 {offsets = [0, 0], sizes = [1, 128], strides = [1, 1]} : vector<5x128xf32> to vector<1x128xf32>
    %10 = arith.addf %8, %9 : vector<1x128xf32>
    %11 = vector.extract_strided_slice %6 {offsets = [0, 0], sizes = [4, 128], strides = [1, 1]} : vector<8x128xf32> to vector<4x128xf32>
    %12 = vector.extract_strided_slice %7 {offsets = [1, 0], sizes = [4, 128], strides = [1, 1]} : vector<5x128xf32> to vector<4x128xf32>
    %13 = arith.addf %11, %12 : vector<4x128xf32>
    %14 = vector.extract_strided_slice %6 {offsets = [4, 0], sizes = [4, 128], strides = [1, 1]} : vector<8x128xf32> to vector<4x128xf32>
    %15 = vector.extract_strided_slice %7 {offsets = [1, 0], sizes = [4, 128], strides = [1, 1]} : vector<5x128xf32> to vector<4x128xf32>
    %16 = arith.addf %14, %15 : vector<4x128xf32>
    %17 = tpu.concatenate %10, %13, %10, %16 in 0 : vector<1x128xf32>, vector<4x128xf32>, vector<1x128xf32>, vector<4x128xf32> -> vector<10x128xf32>
    %c0_9 = arith.constant 0 : index
    %c0_10 = arith.constant 0 : index
    %c0_11 = arith.constant 0 : index
    %18 = vector.load %arg5[%c0_9, %c0_10, %c0_11] : memref<2x1x128xf32, #tpu.memory_space<vmem>>, vector<1x1x128xf32>
    %19 = vector.shape_cast %18 : vector<1x1x128xf32> to vector<1x128xf32>
    %c0_12 = arith.constant 0 : index
    %c0_13 = arith.constant 0 : index
    %c0_14 = arith.constant 0 : index
    %20 = vector.load %arg6[%c0_12, %c0_13, %c0_14] : memref<2x1x128xf32, #tpu.memory_space<vmem>>, vector<1x1x128xf32>
    %21 = vector.shape_cast %20 : vector<1x1x128xf32> to vector<1x128xf32>
    %cst_15 = arith.constant dense<0.000000e+00> : vector<10xf32>
    %22 = vector.multi_reduction <add>, %17, %cst_15 [1] : vector<10x128xf32> to vector<10xf32>
    %23 = vector.shape_cast %22 : vector<10xf32> to vector<10x1xf32>
    %cst_16 = arith.constant 1.280000e+02 : f32
    %24 = vector.broadcast %cst_16 : f32 to vector<10x1xf32>
    %25 = arith.divf %23, %24 : vector<10x1xf32>
    %26 = vector.broadcast %25 : vector<10x1xf32> to vector<10x128xf32>
    %27 = arith.subf %17, %26 : vector<10x128xf32>
    %28 = arith.mulf %27, %27 : vector<10x128xf32>
    %cst_17 = arith.constant dense<0.000000e+00> : vector<10xf32>
    %29 = vector.multi_reduction <add>, %28, %cst_17 [1] : vector<10x128xf32> to vector<10xf32>
    %30 = vector.shape_cast %29 : vector<10xf32> to vector<10x1xf32>
    %cst_18 = arith.constant 1.280000e+02 : f32
    %31 = vector.broadcast %cst_18 : f32 to vector<10x1xf32>
    %32 = arith.divf %30, %31 : vector<10x1xf32>
    %33 = vector.broadcast %25 : vector<10x1xf32> to vector<10x128xf32>
    %34 = arith.subf %17, %33 : vector<10x128xf32>
    %cst_19 = arith.constant 9.99999997E-7 : f32
    %35 = vector.broadcast %cst_19 : f32 to vector<10x1xf32>
    %36 = arith.addf %32, %35 : vector<10x1xf32>
    %37 = math.rsqrt %36 : vector<10x1xf32>
    %38 = vector.broadcast %37 : vector<10x1xf32> to vector<10x128xf32>
    %39 = arith.mulf %34, %38 : vector<10x128xf32>
    %40 = vector.broadcast %19 : vector<1x128xf32> to vector<10x128xf32>
    %41 = arith.mulf %39, %40 : vector<10x128xf32>
    %42 = vector.broadcast %21 : vector<1x128xf32> to vector<10x128xf32>
    %43 = arith.addf %41, %42 : vector<10x128xf32>
    %44 = arith.truncf %43 : vector<10x128xf32> to vector<10x128xbf16>
    %c0_20 = arith.constant 0 : index
    %c0_21 = arith.constant 0 : index
    %c0_22 = arith.constant 0 : index
    %45 = vector.load %arg7[%c0_20, %c0_21, %c0_22] : memref<2x128x384xbf16, #tpu.memory_space<vmem>>, vector<1x128x384xbf16>
    %46 = vector.shape_cast %45 : vector<1x128x384xbf16> to vector<128x384xbf16>
    %cst_23 = arith.constant dense<0.000000e+00> : vector<10x384xf32>
    %47 = tpu.matmul %44, %46, %cst_23 {dimension_numbers = #tpu.dot_dimension_numbers<[1], [0], [0], [1], [0, 0, 1, 1], [], []>} : vector<10x128xbf16>, vector<128x384xbf16>, vector<10x384xf32> -> vector<10x384xf32>
    %c0_24 = arith.constant 0 : index
    %c0_25 = arith.constant 0 : index
    %c0_26 = arith.constant 0 : index
    %48 = vector.load %arg8[%c0_24, %c0_25, %c0_26] : memref<2x1x384xf32, #tpu.memory_space<vmem>>, vector<1x1x384xf32>
    %49 = vector.shape_cast %48 : vector<1x1x384xf32> to vector<1x384xf32>
    %50 = vector.broadcast %49 : vector<1x384xf32> to vector<10x384xf32>
    %51 = arith.addf %47, %50 : vector<10x384xf32>
    %52 = vector.extract_strided_slice %51 {offsets = [0, 0], sizes = [5, 32], strides = [1, 1]} : vector<10x384xf32> to vector<5x32xf32>
    %53 = vector.shape_cast %52 : vector<5x32xf32> to vector<1x5x32xf32>
    %54 = vector.extract_strided_slice %51 {offsets = [0, 32], sizes = [5, 32], strides = [1, 1]} : vector<10x384xf32> to vector<5x32xf32>
    %55 = vector.shape_cast %54 : vector<5x32xf32> to vector<1x5x32xf32>
    %56 = vector.extract_strided_slice %51 {offsets = [0, 64], sizes = [5, 32], strides = [1, 1]} : vector<10x384xf32> to vector<5x32xf32>
    %57 = vector.shape_cast %56 : vector<5x32xf32> to vector<1x5x32xf32>
    %58 = vector.extract_strided_slice %51 {offsets = [0, 96], sizes = [5, 32], strides = [1, 1]} : vector<10x384xf32> to vector<5x32xf32>
    %59 = vector.shape_cast %58 : vector<5x32xf32> to vector<1x5x32xf32>
    %60 = vector.extract_strided_slice %51 {offsets = [5, 0], sizes = [5, 32], strides = [1, 1]} : vector<10x384xf32> to vector<5x32xf32>
    %61 = vector.shape_cast %60 : vector<5x32xf32> to vector<1x5x32xf32>
    %62 = vector.extract_strided_slice %51 {offsets = [5, 32], sizes = [5, 32], strides = [1, 1]} : vector<10x384xf32> to vector<5x32xf32>
    %63 = vector.shape_cast %62 : vector<5x32xf32> to vector<1x5x32xf32>
    %64 = vector.extract_strided_slice %51 {offsets = [5, 64], sizes = [5, 32], strides = [1, 1]} : vector<10x384xf32> to vector<5x32xf32>
    %65 = vector.shape_cast %64 : vector<5x32xf32> to vector<1x5x32xf32>
    %66 = vector.extract_strided_slice %51 {offsets = [5, 96], sizes = [5, 32], strides = [1, 1]} : vector<10x384xf32> to vector<5x32xf32>
    %67 = vector.shape_cast %66 : vector<5x32xf32> to vector<1x5x32xf32>
    %68 = tpu.concatenate %53, %55, %57, %59, %61, %63, %65, %67 in 0 : vector<1x5x32xf32>, vector<1x5x32xf32>, vector<1x5x32xf32>, vector<1x5x32xf32>, vector<1x5x32xf32>, vector<1x5x32xf32>, vector<1x5x32xf32>, vector<1x5x32xf32> -> vector<8x5x32xf32>
    %69 = vector.extract_strided_slice %51 {offsets = [0, 128], sizes = [5, 32], strides = [1, 1]} : vector<10x384xf32> to vector<5x32xf32>
    %70 = vector.shape_cast %69 : vector<5x32xf32> to vector<1x5x32xf32>
    %71 = vector.extract_strided_slice %51 {offsets = [0, 160], sizes = [5, 32], strides = [1, 1]} : vector<10x384xf32> to vector<5x32xf32>
    %72 = vector.shape_cast %71 : vector<5x32xf32> to vector<1x5x32xf32>
    %73 = vector.extract_strided_slice %51 {offsets = [0, 192], sizes = [5, 32], strides = [1, 1]} : vector<10x384xf32> to vector<5x32xf32>
    %74 = vector.shape_cast %73 : vector<5x32xf32> to vector<1x5x32xf32>
    %75 = vector.extract_strided_slice %51 {offsets = [0, 224], sizes = [5, 32], strides = [1, 1]} : vector<10x384xf32> to vector<5x32xf32>
    %76 = vector.shape_cast %75 : vector<5x32xf32> to vector<1x5x32xf32>
    %77 = vector.extract_strided_slice %51 {offsets = [5, 128], sizes = [5, 32], strides = [1, 1]} : vector<10x384xf32> to vector<5x32xf32>
    %78 = vector.shape_cast %77 : vector<5x32xf32> to vector<1x5x32xf32>
    %79 = vector.extract_strided_slice %51 {offsets = [5, 160], sizes = [5, 32], strides = [1, 1]} : vector<10x384xf32> to vector<5x32xf32>
    %80 = vector.shape_cast %79 : vector<5x32xf32> to vector<1x5x32xf32>
    %81 = vector.extract_strided_slice %51 {offsets = [5, 192], sizes = [5, 32], strides = [1, 1]} : vector<10x384xf32> to vector<5x32xf32>
    %82 = vector.shape_cast %81 : vector<5x32xf32> to vector<1x5x32xf32>
    %83 = vector.extract_strided_slice %51 {offsets = [5, 224], sizes = [5, 32], strides = [1, 1]} : vector<10x384xf32> to vector<5x32xf32>
    %84 = vector.shape_cast %83 : vector<5x32xf32> to vector<1x5x32xf32>
    %85 = tpu.concatenate %70, %72, %74, %76, %78, %80, %82, %84 in 0 : vector<1x5x32xf32>, vector<1x5x32xf32>, vector<1x5x32xf32>, vector<1x5x32xf32>, vector<1x5x32xf32>, vector<1x5x32xf32>, vector<1x5x32xf32>, vector<1x5x32xf32> -> vector<8x5x32xf32>
    %86 = vector.extract_strided_slice %51 {offsets = [0, 256], sizes = [5, 32], strides = [1, 1]} : vector<10x384xf32> to vector<5x32xf32>
    %87 = vector.shape_cast %86 : vector<5x32xf32> to vector<1x5x32xf32>
    %88 = vector.extract_strided_slice %51 {offsets = [0, 288], sizes = [5, 32], strides = [1, 1]} : vector<10x384xf32> to vector<5x32xf32>
    %89 = vector.shape_cast %88 : vector<5x32xf32> to vector<1x5x32xf32>
    %90 = vector.extract_strided_slice %51 {offsets = [0, 320], sizes = [5, 32], strides = [1, 1]} : vector<10x384xf32> to vector<5x32xf32>
    %91 = vector.shape_cast %90 : vector<5x32xf32> to vector<1x5x32xf32>
    %92 = vector.extract_strided_slice %51 {offsets = [0, 352], sizes = [5, 32], strides = [1, 1]} : vector<10x384xf32> to vector<5x32xf32>
    %93 = vector.shape_cast %92 : vector<5x32xf32> to vector<1x5x32xf32>
    %94 = vector.extract_strided_slice %51 {offsets = [5, 256], sizes = [5, 32], strides = [1, 1]} : vector<10x384xf32> to vector<5x32xf32>
    %95 = vector.shape_cast %94 : vector<5x32xf32> to vector<1x5x32xf32>
    %96 = vector.extract_strided_slice %51 {offsets = [5, 288], sizes = [5, 32], strides = [1, 1]} : vector<10x384xf32> to vector<5x32xf32>
    %97 = vector.shape_cast %96 : vector<5x32xf32> to vector<1x5x32xf32>
    %98 = vector.extract_strided_slice %51 {offsets = [5, 320], sizes = [5, 32], strides = [1, 1]} : vector<10x384xf32> to vector<5x32xf32>
    %99 = vector.shape_cast %98 : vector<5x32xf32> to vector<1x5x32xf32>
    %100 = vector.extract_strided_slice %51 {offsets = [5, 352], sizes = [5, 32], strides = [1, 1]} : vector<10x384xf32> to vector<5x32xf32>
    %101 = vector.shape_cast %100 : vector<5x32xf32> to vector<1x5x32xf32>
    %102 = tpu.concatenate %87, %89, %91, %93, %95, %97, %99, %101 in 0 : vector<1x5x32xf32>, vector<1x5x32xf32>, vector<1x5x32xf32>, vector<1x5x32xf32>, vector<1x5x32xf32>, vector<1x5x32xf32>, vector<1x5x32xf32>, vector<1x5x32xf32> -> vector<8x5x32xf32>
    %103 = arith.truncf %68 : vector<8x5x32xf32> to vector<8x5x32xbf16>
    %104 = arith.truncf %85 : vector<8x5x32xf32> to vector<8x5x32xbf16>
    %cst_27 = arith.constant dense<0.000000e+00> : vector<8x5x5xf32>
    %105 = tpu.matmul %103, %104, %cst_27 {dimension_numbers = #tpu.dot_dimension_numbers<[2], [2], [1], [1], [0, 0, 0, 1, 1, 1], [0], [0]>} : vector<8x5x32xbf16>, vector<8x5x32xbf16>, vector<8x5x5xf32> -> vector<8x5x5xf32>
    %cst_28 = arith.constant 0.176776692 : f32
    %106 = vector.broadcast %cst_28 : f32 to vector<8x5x5xf32>
    %107 = arith.mulf %105, %106 : vector<8x5x5xf32>
    %cst_29 = arith.constant dense<0xFF800000> : vector<8x5xf32>
    %108 = vector.multi_reduction <maximumf>, %107, %cst_29 [2] : vector<8x5x5xf32> to vector<8x5xf32>
    %109 = vector.shape_cast %108 : vector<8x5xf32> to vector<8x5x1xf32>
    %110 = vector.broadcast %109 : vector<8x5x1xf32> to vector<8x5x5xf32>
    %111 = arith.subf %107, %110 : vector<8x5x5xf32>
    %112 = math.exp %111 : vector<8x5x5xf32>
    %cst_30 = arith.constant dense<0.000000e+00> : vector<8x5xf32>
    %113 = vector.multi_reduction <add>, %112, %cst_30 [2] : vector<8x5x5xf32> to vector<8x5xf32>
    %114 = vector.shape_cast %113 : vector<8x5xf32> to vector<8x5x1xf32>
    %115 = tpu.reciprocal %114 {approx = true} : vector<8x5x1xf32> -> vector<8x5x1xf32>
    %116 = vector.broadcast %115 : vector<8x5x1xf32> to vector<8x5x5xf32>
    %117 = arith.mulf %112, %116 : vector<8x5x5xf32>
    %118 = arith.truncf %117 : vector<8x5x5xf32> to vector<8x5x5xbf16>
    %119 = arith.truncf %102 : vector<8x5x32xf32> to vector<8x5x32xbf16>
    %cst_31 = arith.constant dense<0.000000e+00> : vector<8x5x32xf32>
    %120 = tpu.matmul %118, %119, %cst_31 {dimension_numbers = #tpu.dot_dimension_numbers<[2], [1], [1], [2], [0, 0, 0, 1, 1, 2], [0], [0]>} : vector<8x5x5xbf16>, vector<8x5x32xbf16>, vector<8x5x32xf32> -> vector<8x5x32xf32>
    %121 = vector.extract_strided_slice %120 {offsets = [0, 0, 0], sizes = [1, 5, 32], strides = [1, 1, 1]} : vector<8x5x32xf32> to vector<1x5x32xf32>
    %122 = vector.shape_cast %121 : vector<1x5x32xf32> to vector<5x32xf32>
    %123 = vector.extract_strided_slice %120 {offsets = [1, 0, 0], sizes = [1, 5, 32], strides = [1, 1, 1]} : vector<8x5x32xf32> to vector<1x5x32xf32>
    %124 = vector.shape_cast %123 : vector<1x5x32xf32> to vector<5x32xf32>
    %125 = vector.extract_strided_slice %120 {offsets = [2, 0, 0], sizes = [1, 5, 32], strides = [1, 1, 1]} : vector<8x5x32xf32> to vector<1x5x32xf32>
    %126 = vector.shape_cast %125 : vector<1x5x32xf32> to vector<5x32xf32>
    %127 = vector.extract_strided_slice %120 {offsets = [3, 0, 0], sizes = [1, 5, 32], strides = [1, 1, 1]} : vector<8x5x32xf32> to vector<1x5x32xf32>
    %128 = vector.shape_cast %127 : vector<1x5x32xf32> to vector<5x32xf32>
    %129 = tpu.concatenate %122, %124, %126, %128 in 1 : vector<5x32xf32>, vector<5x32xf32>, vector<5x32xf32>, vector<5x32xf32> -> vector<5x128xf32>
    %130 = vector.extract_strided_slice %120 {offsets = [4, 0, 0], sizes = [1, 5, 32], strides = [1, 1, 1]} : vector<8x5x32xf32> to vector<1x5x32xf32>
    %131 = vector.shape_cast %130 : vector<1x5x32xf32> to vector<5x32xf32>
    %132 = vector.extract_strided_slice %120 {offsets = [5, 0, 0], sizes = [1, 5, 32], strides = [1, 1, 1]} : vector<8x5x32xf32> to vector<1x5x32xf32>
    %133 = vector.shape_cast %132 : vector<1x5x32xf32> to vector<5x32xf32>
    %134 = vector.extract_strided_slice %120 {offsets = [6, 0, 0], sizes = [1, 5, 32], strides = [1, 1, 1]} : vector<8x5x32xf32> to vector<1x5x32xf32>
    %135 = vector.shape_cast %134 : vector<1x5x32xf32> to vector<5x32xf32>
    %136 = vector.extract_strided_slice %120 {offsets = [7, 0, 0], sizes = [1, 5, 32], strides = [1, 1, 1]} : vector<8x5x32xf32> to vector<1x5x32xf32>
    %137 = vector.shape_cast %136 : vector<1x5x32xf32> to vector<5x32xf32>
    %138 = tpu.concatenate %131, %133, %135, %137 in 1 : vector<5x32xf32>, vector<5x32xf32>, vector<5x32xf32>, vector<5x32xf32> -> vector<5x128xf32>
    %139 = tpu.concatenate %129, %138 in 0 : vector<5x128xf32>, vector<5x128xf32> -> vector<10x128xf32>
    %140 = arith.truncf %139 : vector<10x128xf32> to vector<10x128xbf16>
    %c0_32 = arith.constant 0 : index
    %c0_33 = arith.constant 0 : index
    %c0_34 = arith.constant 0 : index
    %141 = vector.load %arg9[%c0_32, %c0_33, %c0_34] : memref<2x128x128xbf16, #tpu.memory_space<vmem>>, vector<1x128x128xbf16>
    %142 = vector.shape_cast %141 : vector<1x128x128xbf16> to vector<128x128xbf16>
    %cst_35 = arith.constant dense<0.000000e+00> : vector<10x128xf32>
    %143 = tpu.matmul %140, %142, %cst_35 {dimension_numbers = #tpu.dot_dimension_numbers<[1], [0], [0], [1], [0, 0, 1, 1], [], []>} : vector<10x128xbf16>, vector<128x128xbf16>, vector<10x128xf32> -> vector<10x128xf32>
    %c0_36 = arith.constant 0 : index
    %c0_37 = arith.constant 0 : index
    %c0_38 = arith.constant 0 : index
    %144 = vector.load %arg10[%c0_36, %c0_37, %c0_38] : memref<2x1x128xf32, #tpu.memory_space<vmem>>, vector<1x1x128xf32>
    %145 = vector.shape_cast %144 : vector<1x1x128xf32> to vector<1x128xf32>
    %146 = vector.broadcast %145 : vector<1x128xf32> to vector<10x128xf32>
    %147 = arith.addf %143, %146 : vector<10x128xf32>
    %148 = arith.addf %17, %147 : vector<10x128xf32>
    %c0_39 = arith.constant 0 : index
    %c0_40 = arith.constant 0 : index
    %c0_41 = arith.constant 0 : index
    %149 = vector.load %arg11[%c0_39, %c0_40, %c0_41] : memref<2x1x128xf32, #tpu.memory_space<vmem>>, vector<1x1x128xf32>
    %150 = vector.shape_cast %149 : vector<1x1x128xf32> to vector<1x128xf32>
    %c0_42 = arith.constant 0 : index
    %c0_43 = arith.constant 0 : index
    %c0_44 = arith.constant 0 : index
    %151 = vector.load %arg12[%c0_42, %c0_43, %c0_44] : memref<2x1x128xf32, #tpu.memory_space<vmem>>, vector<1x1x128xf32>
    %152 = vector.shape_cast %151 : vector<1x1x128xf32> to vector<1x128xf32>
    %cst_45 = arith.constant dense<0.000000e+00> : vector<10xf32>
    %153 = vector.multi_reduction <add>, %148, %cst_45 [1] : vector<10x128xf32> to vector<10xf32>
    %154 = vector.shape_cast %153 : vector<10xf32> to vector<10x1xf32>
    %cst_46 = arith.constant 1.280000e+02 : f32
    %155 = vector.broadcast %cst_46 : f32 to vector<10x1xf32>
    %156 = arith.divf %154, %155 : vector<10x1xf32>
    %157 = vector.broadcast %156 : vector<10x1xf32> to vector<10x128xf32>
    %158 = arith.subf %148, %157 : vector<10x128xf32>
    %159 = arith.mulf %158, %158 : vector<10x128xf32>
    %cst_47 = arith.constant dense<0.000000e+00> : vector<10xf32>
    %160 = vector.multi_reduction <add>, %159, %cst_47 [1] : vector<10x128xf32> to vector<10xf32>
    %161 = vector.shape_cast %160 : vector<10xf32> to vector<10x1xf32>
    %cst_48 = arith.constant 1.280000e+02 : f32
    %162 = vector.broadcast %cst_48 : f32 to vector<10x1xf32>
    %163 = arith.divf %161, %162 : vector<10x1xf32>
    %164 = vector.broadcast %156 : vector<10x1xf32> to vector<10x128xf32>
    %165 = arith.subf %148, %164 : vector<10x128xf32>
    %cst_49 = arith.constant 9.99999997E-7 : f32
    %166 = vector.broadcast %cst_49 : f32 to vector<10x1xf32>
    %167 = arith.addf %163, %166 : vector<10x1xf32>
    %168 = math.rsqrt %167 : vector<10x1xf32>
    %169 = vector.broadcast %168 : vector<10x1xf32> to vector<10x128xf32>
    %170 = arith.mulf %165, %169 : vector<10x128xf32>
    %171 = vector.broadcast %150 : vector<1x128xf32> to vector<10x128xf32>
    %172 = arith.mulf %170, %171 : vector<10x128xf32>
    %173 = vector.broadcast %152 : vector<1x128xf32> to vector<10x128xf32>
    %174 = arith.addf %172, %173 : vector<10x128xf32>
    %175 = arith.truncf %174 : vector<10x128xf32> to vector<10x128xbf16>
    %c0_50 = arith.constant 0 : index
    %c0_51 = arith.constant 0 : index
    %c0_52 = arith.constant 0 : index
    %176 = vector.load %arg13[%c0_50, %c0_51, %c0_52] : memref<2x128x512xbf16, #tpu.memory_space<vmem>>, vector<1x128x512xbf16>
    %177 = vector.shape_cast %176 : vector<1x128x512xbf16> to vector<128x512xbf16>
    %cst_53 = arith.constant dense<0.000000e+00> : vector<10x512xf32>
    %178 = tpu.matmul %175, %177, %cst_53 {dimension_numbers = #tpu.dot_dimension_numbers<[1], [0], [0], [1], [0, 0, 1, 1], [], []>} : vector<10x128xbf16>, vector<128x512xbf16>, vector<10x512xf32> -> vector<10x512xf32>
    %c0_54 = arith.constant 0 : index
    %c0_55 = arith.constant 0 : index
    %c0_56 = arith.constant 0 : index
    %179 = vector.load %arg14[%c0_54, %c0_55, %c0_56] : memref<2x1x512xf32, #tpu.memory_space<vmem>>, vector<1x1x512xf32>
    %180 = vector.shape_cast %179 : vector<1x1x512xf32> to vector<1x512xf32>
    %181 = vector.broadcast %180 : vector<1x512xf32> to vector<10x512xf32>
    %182 = arith.addf %178, %181 : vector<10x512xf32>
    %183 = arith.mulf %182, %182 : vector<10x512xf32>
    %184 = arith.mulf %182, %183 : vector<10x512xf32>
    %cst_57 = arith.constant 4.471500e-02 : f32
    %185 = vector.broadcast %cst_57 : f32 to vector<10x512xf32>
    %186 = arith.mulf %185, %184 : vector<10x512xf32>
    %187 = arith.addf %182, %186 : vector<10x512xf32>
    %cst_58 = arith.constant 0.797884583 : f32
    %188 = vector.broadcast %cst_58 : f32 to vector<10x512xf32>
    %189 = arith.mulf %188, %187 : vector<10x512xf32>
    %190 = math.tanh %189 : vector<10x512xf32>
    %cst_59 = arith.constant 1.000000e+00 : f32
    %191 = vector.broadcast %cst_59 : f32 to vector<10x512xf32>
    %192 = arith.addf %191, %190 : vector<10x512xf32>
    %cst_60 = arith.constant 5.000000e-01 : f32
    %193 = vector.broadcast %cst_60 : f32 to vector<10x512xf32>
    %194 = arith.mulf %193, %192 : vector<10x512xf32>
    %195 = arith.mulf %182, %194 : vector<10x512xf32>
    %196 = arith.truncf %195 : vector<10x512xf32> to vector<10x512xbf16>
    %c0_61 = arith.constant 0 : index
    %c0_62 = arith.constant 0 : index
    %c0_63 = arith.constant 0 : index
    %197 = vector.load %arg15[%c0_61, %c0_62, %c0_63] : memref<2x512x128xbf16, #tpu.memory_space<vmem>>, vector<1x512x128xbf16>
    %198 = vector.shape_cast %197 : vector<1x512x128xbf16> to vector<512x128xbf16>
    %cst_64 = arith.constant dense<0.000000e+00> : vector<10x128xf32>
    %199 = tpu.matmul %196, %198, %cst_64 {dimension_numbers = #tpu.dot_dimension_numbers<[1], [0], [0], [1], [0, 0, 1, 1], [], []>} : vector<10x512xbf16>, vector<512x128xbf16>, vector<10x128xf32> -> vector<10x128xf32>
    %c0_65 = arith.constant 0 : index
    %c0_66 = arith.constant 0 : index
    %c0_67 = arith.constant 0 : index
    %200 = vector.load %arg16[%c0_65, %c0_66, %c0_67] : memref<2x1x128xf32, #tpu.memory_space<vmem>>, vector<1x1x128xf32>
    %201 = vector.shape_cast %200 : vector<1x1x128xf32> to vector<1x128xf32>
    %202 = vector.broadcast %201 : vector<1x128xf32> to vector<10x128xf32>
    %203 = arith.addf %199, %202 : vector<10x128xf32>
    %204 = arith.addf %148, %203 : vector<10x128xf32>
    %c1 = arith.constant 1 : index
    %c0_68 = arith.constant 0 : index
    %c0_69 = arith.constant 0 : index
    %205 = vector.load %arg5[%c1, %c0_68, %c0_69] : memref<2x1x128xf32, #tpu.memory_space<vmem>>, vector<1x1x128xf32>
    %206 = vector.shape_cast %205 : vector<1x1x128xf32> to vector<1x128xf32>
    %c1_70 = arith.constant 1 : index
    %c0_71 = arith.constant 0 : index
    %c0_72 = arith.constant 0 : index
    %207 = vector.load %arg6[%c1_70, %c0_71, %c0_72] : memref<2x1x128xf32, #tpu.memory_space<vmem>>, vector<1x1x128xf32>
    %208 = vector.shape_cast %207 : vector<1x1x128xf32> to vector<1x128xf32>
    %cst_73 = arith.constant dense<0.000000e+00> : vector<10xf32>
    %209 = vector.multi_reduction <add>, %204, %cst_73 [1] : vector<10x128xf32> to vector<10xf32>
    %210 = vector.shape_cast %209 : vector<10xf32> to vector<10x1xf32>
    %cst_74 = arith.constant 1.280000e+02 : f32
    %211 = vector.broadcast %cst_74 : f32 to vector<10x1xf32>
    %212 = arith.divf %210, %211 : vector<10x1xf32>
    %213 = vector.broadcast %212 : vector<10x1xf32> to vector<10x128xf32>
    %214 = arith.subf %204, %213 : vector<10x128xf32>
    %215 = arith.mulf %214, %214 : vector<10x128xf32>
    %cst_75 = arith.constant dense<0.000000e+00> : vector<10xf32>
    %216 = vector.multi_reduction <add>, %215, %cst_75 [1] : vector<10x128xf32> to vector<10xf32>
    %217 = vector.shape_cast %216 : vector<10xf32> to vector<10x1xf32>
    %cst_76 = arith.constant 1.280000e+02 : f32
    %218 = vector.broadcast %cst_76 : f32 to vector<10x1xf32>
    %219 = arith.divf %217, %218 : vector<10x1xf32>
    %220 = vector.broadcast %212 : vector<10x1xf32> to vector<10x128xf32>
    %221 = arith.subf %204, %220 : vector<10x128xf32>
    %cst_77 = arith.constant 9.99999997E-7 : f32
    %222 = vector.broadcast %cst_77 : f32 to vector<10x1xf32>
    %223 = arith.addf %219, %222 : vector<10x1xf32>
    %224 = math.rsqrt %223 : vector<10x1xf32>
    %225 = vector.broadcast %224 : vector<10x1xf32> to vector<10x128xf32>
    %226 = arith.mulf %221, %225 : vector<10x128xf32>
    %227 = vector.broadcast %206 : vector<1x128xf32> to vector<10x128xf32>
    %228 = arith.mulf %226, %227 : vector<10x128xf32>
    %229 = vector.broadcast %208 : vector<1x128xf32> to vector<10x128xf32>
    %230 = arith.addf %228, %229 : vector<10x128xf32>
    %231 = arith.truncf %230 : vector<10x128xf32> to vector<10x128xbf16>
    %c1_78 = arith.constant 1 : index
    %c0_79 = arith.constant 0 : index
    %c0_80 = arith.constant 0 : index
    %232 = vector.load %arg7[%c1_78, %c0_79, %c0_80] : memref<2x128x384xbf16, #tpu.memory_space<vmem>>, vector<1x128x384xbf16>
    %233 = vector.shape_cast %232 : vector<1x128x384xbf16> to vector<128x384xbf16>
    %cst_81 = arith.constant dense<0.000000e+00> : vector<10x384xf32>
    %234 = tpu.matmul %231, %233, %cst_81 {dimension_numbers = #tpu.dot_dimension_numbers<[1], [0], [0], [1], [0, 0, 1, 1], [], []>} : vector<10x128xbf16>, vector<128x384xbf16>, vector<10x384xf32> -> vector<10x384xf32>
    %c1_82 = arith.constant 1 : index
    %c0_83 = arith.constant 0 : index
    %c0_84 = arith.constant 0 : index
    %235 = vector.load %arg8[%c1_82, %c0_83, %c0_84] : memref<2x1x384xf32, #tpu.memory_space<vmem>>, vector<1x1x384xf32>
    %236 = vector.shape_cast %235 : vector<1x1x384xf32> to vector<1x384xf32>
    %237 = vector.broadcast %236 : vector<1x384xf32> to vector<10x384xf32>
    %238 = arith.addf %234, %237 : vector<10x384xf32>
    %239 = vector.extract_strided_slice %238 {offsets = [0, 0], sizes = [5, 32], strides = [1, 1]} : vector<10x384xf32> to vector<5x32xf32>
    %240 = vector.shape_cast %239 : vector<5x32xf32> to vector<1x5x32xf32>
    %241 = vector.extract_strided_slice %238 {offsets = [0, 32], sizes = [5, 32], strides = [1, 1]} : vector<10x384xf32> to vector<5x32xf32>
    %242 = vector.shape_cast %241 : vector<5x32xf32> to vector<1x5x32xf32>
    %243 = vector.extract_strided_slice %238 {offsets = [0, 64], sizes = [5, 32], strides = [1, 1]} : vector<10x384xf32> to vector<5x32xf32>
    %244 = vector.shape_cast %243 : vector<5x32xf32> to vector<1x5x32xf32>
    %245 = vector.extract_strided_slice %238 {offsets = [0, 96], sizes = [5, 32], strides = [1, 1]} : vector<10x384xf32> to vector<5x32xf32>
    %246 = vector.shape_cast %245 : vector<5x32xf32> to vector<1x5x32xf32>
    %247 = vector.extract_strided_slice %238 {offsets = [5, 0], sizes = [5, 32], strides = [1, 1]} : vector<10x384xf32> to vector<5x32xf32>
    %248 = vector.shape_cast %247 : vector<5x32xf32> to vector<1x5x32xf32>
    %249 = vector.extract_strided_slice %238 {offsets = [5, 32], sizes = [5, 32], strides = [1, 1]} : vector<10x384xf32> to vector<5x32xf32>
    %250 = vector.shape_cast %249 : vector<5x32xf32> to vector<1x5x32xf32>
    %251 = vector.extract_strided_slice %238 {offsets = [5, 64], sizes = [5, 32], strides = [1, 1]} : vector<10x384xf32> to vector<5x32xf32>
    %252 = vector.shape_cast %251 : vector<5x32xf32> to vector<1x5x32xf32>
    %253 = vector.extract_strided_slice %238 {offsets = [5, 96], sizes = [5, 32], strides = [1, 1]} : vector<10x384xf32> to vector<5x32xf32>
    %254 = vector.shape_cast %253 : vector<5x32xf32> to vector<1x5x32xf32>
    %255 = tpu.concatenate %240, %242, %244, %246, %248, %250, %252, %254 in 0 : vector<1x5x32xf32>, vector<1x5x32xf32>, vector<1x5x32xf32>, vector<1x5x32xf32>, vector<1x5x32xf32>, vector<1x5x32xf32>, vector<1x5x32xf32>, vector<1x5x32xf32> -> vector<8x5x32xf32>
    %256 = vector.extract_strided_slice %238 {offsets = [0, 128], sizes = [5, 32], strides = [1, 1]} : vector<10x384xf32> to vector<5x32xf32>
    %257 = vector.shape_cast %256 : vector<5x32xf32> to vector<1x5x32xf32>
    %258 = vector.extract_strided_slice %238 {offsets = [0, 160], sizes = [5, 32], strides = [1, 1]} : vector<10x384xf32> to vector<5x32xf32>
    %259 = vector.shape_cast %258 : vector<5x32xf32> to vector<1x5x32xf32>
    %260 = vector.extract_strided_slice %238 {offsets = [0, 192], sizes = [5, 32], strides = [1, 1]} : vector<10x384xf32> to vector<5x32xf32>
    %261 = vector.shape_cast %260 : vector<5x32xf32> to vector<1x5x32xf32>
    %262 = vector.extract_strided_slice %238 {offsets = [0, 224], sizes = [5, 32], strides = [1, 1]} : vector<10x384xf32> to vector<5x32xf32>
    %263 = vector.shape_cast %262 : vector<5x32xf32> to vector<1x5x32xf32>
    %264 = vector.extract_strided_slice %238 {offsets = [5, 128], sizes = [5, 32], strides = [1, 1]} : vector<10x384xf32> to vector<5x32xf32>
    %265 = vector.shape_cast %264 : vector<5x32xf32> to vector<1x5x32xf32>
    %266 = vector.extract_strided_slice %238 {offsets = [5, 160], sizes = [5, 32], strides = [1, 1]} : vector<10x384xf32> to vector<5x32xf32>
    %267 = vector.shape_cast %266 : vector<5x32xf32> to vector<1x5x32xf32>
    %268 = vector.extract_strided_slice %238 {offsets = [5, 192], sizes = [5, 32], strides = [1, 1]} : vector<10x384xf32> to vector<5x32xf32>
    %269 = vector.shape_cast %268 : vector<5x32xf32> to vector<1x5x32xf32>
    %270 = vector.extract_strided_slice %238 {offsets = [5, 224], sizes = [5, 32], strides = [1, 1]} : vector<10x384xf32> to vector<5x32xf32>
    %271 = vector.shape_cast %270 : vector<5x32xf32> to vector<1x5x32xf32>
    %272 = tpu.concatenate %257, %259, %261, %263, %265, %267, %269, %271 in 0 : vector<1x5x32xf32>, vector<1x5x32xf32>, vector<1x5x32xf32>, vector<1x5x32xf32>, vector<1x5x32xf32>, vector<1x5x32xf32>, vector<1x5x32xf32>, vector<1x5x32xf32> -> vector<8x5x32xf32>
    %273 = vector.extract_strided_slice %238 {offsets = [0, 256], sizes = [5, 32], strides = [1, 1]} : vector<10x384xf32> to vector<5x32xf32>
    %274 = vector.shape_cast %273 : vector<5x32xf32> to vector<1x5x32xf32>
    %275 = vector.extract_strided_slice %238 {offsets = [0, 288], sizes = [5, 32], strides = [1, 1]} : vector<10x384xf32> to vector<5x32xf32>
    %276 = vector.shape_cast %275 : vector<5x32xf32> to vector<1x5x32xf32>
    %277 = vector.extract_strided_slice %238 {offsets = [0, 320], sizes = [5, 32], strides = [1, 1]} : vector<10x384xf32> to vector<5x32xf32>
    %278 = vector.shape_cast %277 : vector<5x32xf32> to vector<1x5x32xf32>
    %279 = vector.extract_strided_slice %238 {offsets = [0, 352], sizes = [5, 32], strides = [1, 1]} : vector<10x384xf32> to vector<5x32xf32>
    %280 = vector.shape_cast %279 : vector<5x32xf32> to vector<1x5x32xf32>
    %281 = vector.extract_strided_slice %238 {offsets = [5, 256], sizes = [5, 32], strides = [1, 1]} : vector<10x384xf32> to vector<5x32xf32>
    %282 = vector.shape_cast %281 : vector<5x32xf32> to vector<1x5x32xf32>
    %283 = vector.extract_strided_slice %238 {offsets = [5, 288], sizes = [5, 32], strides = [1, 1]} : vector<10x384xf32> to vector<5x32xf32>
    %284 = vector.shape_cast %283 : vector<5x32xf32> to vector<1x5x32xf32>
    %285 = vector.extract_strided_slice %238 {offsets = [5, 320], sizes = [5, 32], strides = [1, 1]} : vector<10x384xf32> to vector<5x32xf32>
    %286 = vector.shape_cast %285 : vector<5x32xf32> to vector<1x5x32xf32>
    %287 = vector.extract_strided_slice %238 {offsets = [5, 352], sizes = [5, 32], strides = [1, 1]} : vector<10x384xf32> to vector<5x32xf32>
    %288 = vector.shape_cast %287 : vector<5x32xf32> to vector<1x5x32xf32>
    %289 = tpu.concatenate %274, %276, %278, %280, %282, %284, %286, %288 in 0 : vector<1x5x32xf32>, vector<1x5x32xf32>, vector<1x5x32xf32>, vector<1x5x32xf32>, vector<1x5x32xf32>, vector<1x5x32xf32>, vector<1x5x32xf32>, vector<1x5x32xf32> -> vector<8x5x32xf32>
    %290 = arith.truncf %255 : vector<8x5x32xf32> to vector<8x5x32xbf16>
    %291 = arith.truncf %272 : vector<8x5x32xf32> to vector<8x5x32xbf16>
    %cst_85 = arith.constant dense<0.000000e+00> : vector<8x5x5xf32>
    %292 = tpu.matmul %290, %291, %cst_85 {dimension_numbers = #tpu.dot_dimension_numbers<[2], [2], [1], [1], [0, 0, 0, 1, 1, 1], [0], [0]>} : vector<8x5x32xbf16>, vector<8x5x32xbf16>, vector<8x5x5xf32> -> vector<8x5x5xf32>
    %cst_86 = arith.constant 0.176776692 : f32
    %293 = vector.broadcast %cst_86 : f32 to vector<8x5x5xf32>
    %294 = arith.mulf %292, %293 : vector<8x5x5xf32>
    %cst_87 = arith.constant dense<0xFF800000> : vector<8x5xf32>
    %295 = vector.multi_reduction <maximumf>, %294, %cst_87 [2] : vector<8x5x5xf32> to vector<8x5xf32>
    %296 = vector.shape_cast %295 : vector<8x5xf32> to vector<8x5x1xf32>
    %297 = vector.broadcast %296 : vector<8x5x1xf32> to vector<8x5x5xf32>
    %298 = arith.subf %294, %297 : vector<8x5x5xf32>
    %299 = math.exp %298 : vector<8x5x5xf32>
    %cst_88 = arith.constant dense<0.000000e+00> : vector<8x5xf32>
    %300 = vector.multi_reduction <add>, %299, %cst_88 [2] : vector<8x5x5xf32> to vector<8x5xf32>
    %301 = vector.shape_cast %300 : vector<8x5xf32> to vector<8x5x1xf32>
    %302 = tpu.reciprocal %301 {approx = true} : vector<8x5x1xf32> -> vector<8x5x1xf32>
    %303 = vector.broadcast %302 : vector<8x5x1xf32> to vector<8x5x5xf32>
    %304 = arith.mulf %299, %303 : vector<8x5x5xf32>
    %305 = arith.truncf %304 : vector<8x5x5xf32> to vector<8x5x5xbf16>
    %306 = arith.truncf %289 : vector<8x5x32xf32> to vector<8x5x32xbf16>
    %cst_89 = arith.constant dense<0.000000e+00> : vector<8x5x32xf32>
    %307 = tpu.matmul %305, %306, %cst_89 {dimension_numbers = #tpu.dot_dimension_numbers<[2], [1], [1], [2], [0, 0, 0, 1, 1, 2], [0], [0]>} : vector<8x5x5xbf16>, vector<8x5x32xbf16>, vector<8x5x32xf32> -> vector<8x5x32xf32>
    %308 = vector.extract_strided_slice %307 {offsets = [0, 0, 0], sizes = [1, 5, 32], strides = [1, 1, 1]} : vector<8x5x32xf32> to vector<1x5x32xf32>
    %309 = vector.shape_cast %308 : vector<1x5x32xf32> to vector<5x32xf32>
    %310 = vector.extract_strided_slice %307 {offsets = [1, 0, 0], sizes = [1, 5, 32], strides = [1, 1, 1]} : vector<8x5x32xf32> to vector<1x5x32xf32>
    %311 = vector.shape_cast %310 : vector<1x5x32xf32> to vector<5x32xf32>
    %312 = vector.extract_strided_slice %307 {offsets = [2, 0, 0], sizes = [1, 5, 32], strides = [1, 1, 1]} : vector<8x5x32xf32> to vector<1x5x32xf32>
    %313 = vector.shape_cast %312 : vector<1x5x32xf32> to vector<5x32xf32>
    %314 = vector.extract_strided_slice %307 {offsets = [3, 0, 0], sizes = [1, 5, 32], strides = [1, 1, 1]} : vector<8x5x32xf32> to vector<1x5x32xf32>
    %315 = vector.shape_cast %314 : vector<1x5x32xf32> to vector<5x32xf32>
    %316 = tpu.concatenate %309, %311, %313, %315 in 1 : vector<5x32xf32>, vector<5x32xf32>, vector<5x32xf32>, vector<5x32xf32> -> vector<5x128xf32>
    %317 = vector.extract_strided_slice %307 {offsets = [4, 0, 0], sizes = [1, 5, 32], strides = [1, 1, 1]} : vector<8x5x32xf32> to vector<1x5x32xf32>
    %318 = vector.shape_cast %317 : vector<1x5x32xf32> to vector<5x32xf32>
    %319 = vector.extract_strided_slice %307 {offsets = [5, 0, 0], sizes = [1, 5, 32], strides = [1, 1, 1]} : vector<8x5x32xf32> to vector<1x5x32xf32>
    %320 = vector.shape_cast %319 : vector<1x5x32xf32> to vector<5x32xf32>
    %321 = vector.extract_strided_slice %307 {offsets = [6, 0, 0], sizes = [1, 5, 32], strides = [1, 1, 1]} : vector<8x5x32xf32> to vector<1x5x32xf32>
    %322 = vector.shape_cast %321 : vector<1x5x32xf32> to vector<5x32xf32>
    %323 = vector.extract_strided_slice %307 {offsets = [7, 0, 0], sizes = [1, 5, 32], strides = [1, 1, 1]} : vector<8x5x32xf32> to vector<1x5x32xf32>
    %324 = vector.shape_cast %323 : vector<1x5x32xf32> to vector<5x32xf32>
    %325 = tpu.concatenate %318, %320, %322, %324 in 1 : vector<5x32xf32>, vector<5x32xf32>, vector<5x32xf32>, vector<5x32xf32> -> vector<5x128xf32>
    %326 = tpu.concatenate %316, %325 in 0 : vector<5x128xf32>, vector<5x128xf32> -> vector<10x128xf32>
    %327 = arith.truncf %326 : vector<10x128xf32> to vector<10x128xbf16>
    %c1_90 = arith.constant 1 : index
    %c0_91 = arith.constant 0 : index
    %c0_92 = arith.constant 0 : index
    %328 = vector.load %arg9[%c1_90, %c0_91, %c0_92] : memref<2x128x128xbf16, #tpu.memory_space<vmem>>, vector<1x128x128xbf16>
    %329 = vector.shape_cast %328 : vector<1x128x128xbf16> to vector<128x128xbf16>
    %cst_93 = arith.constant dense<0.000000e+00> : vector<10x128xf32>
    %330 = tpu.matmul %327, %329, %cst_93 {dimension_numbers = #tpu.dot_dimension_numbers<[1], [0], [0], [1], [0, 0, 1, 1], [], []>} : vector<10x128xbf16>, vector<128x128xbf16>, vector<10x128xf32> -> vector<10x128xf32>
    %c1_94 = arith.constant 1 : index
    %c0_95 = arith.constant 0 : index
    %c0_96 = arith.constant 0 : index
    %331 = vector.load %arg10[%c1_94, %c0_95, %c0_96] : memref<2x1x128xf32, #tpu.memory_space<vmem>>, vector<1x1x128xf32>
    %332 = vector.shape_cast %331 : vector<1x1x128xf32> to vector<1x128xf32>
    %333 = vector.broadcast %332 : vector<1x128xf32> to vector<10x128xf32>
    %334 = arith.addf %330, %333 : vector<10x128xf32>
    %335 = arith.addf %204, %334 : vector<10x128xf32>
    %c1_97 = arith.constant 1 : index
    %c0_98 = arith.constant 0 : index
    %c0_99 = arith.constant 0 : index
    %336 = vector.load %arg11[%c1_97, %c0_98, %c0_99] : memref<2x1x128xf32, #tpu.memory_space<vmem>>, vector<1x1x128xf32>
    %337 = vector.shape_cast %336 : vector<1x1x128xf32> to vector<1x128xf32>
    %c1_100 = arith.constant 1 : index
    %c0_101 = arith.constant 0 : index
    %c0_102 = arith.constant 0 : index
    %338 = vector.load %arg12[%c1_100, %c0_101, %c0_102] : memref<2x1x128xf32, #tpu.memory_space<vmem>>, vector<1x1x128xf32>
    %339 = vector.shape_cast %338 : vector<1x1x128xf32> to vector<1x128xf32>
    %cst_103 = arith.constant dense<0.000000e+00> : vector<10xf32>
    %340 = vector.multi_reduction <add>, %335, %cst_103 [1] : vector<10x128xf32> to vector<10xf32>
    %341 = vector.shape_cast %340 : vector<10xf32> to vector<10x1xf32>
    %cst_104 = arith.constant 1.280000e+02 : f32
    %342 = vector.broadcast %cst_104 : f32 to vector<10x1xf32>
    %343 = arith.divf %341, %342 : vector<10x1xf32>
    %344 = vector.broadcast %343 : vector<10x1xf32> to vector<10x128xf32>
    %345 = arith.subf %335, %344 : vector<10x128xf32>
    %346 = arith.mulf %345, %345 : vector<10x128xf32>
    %cst_105 = arith.constant dense<0.000000e+00> : vector<10xf32>
    %347 = vector.multi_reduction <add>, %346, %cst_105 [1] : vector<10x128xf32> to vector<10xf32>
    %348 = vector.shape_cast %347 : vector<10xf32> to vector<10x1xf32>
    %cst_106 = arith.constant 1.280000e+02 : f32
    %349 = vector.broadcast %cst_106 : f32 to vector<10x1xf32>
    %350 = arith.divf %348, %349 : vector<10x1xf32>
    %351 = vector.broadcast %343 : vector<10x1xf32> to vector<10x128xf32>
    %352 = arith.subf %335, %351 : vector<10x128xf32>
    %cst_107 = arith.constant 9.99999997E-7 : f32
    %353 = vector.broadcast %cst_107 : f32 to vector<10x1xf32>
    %354 = arith.addf %350, %353 : vector<10x1xf32>
    %355 = math.rsqrt %354 : vector<10x1xf32>
    %356 = vector.broadcast %355 : vector<10x1xf32> to vector<10x128xf32>
    %357 = arith.mulf %352, %356 : vector<10x128xf32>
    %358 = vector.broadcast %337 : vector<1x128xf32> to vector<10x128xf32>
    %359 = arith.mulf %357, %358 : vector<10x128xf32>
    %360 = vector.broadcast %339 : vector<1x128xf32> to vector<10x128xf32>
    %361 = arith.addf %359, %360 : vector<10x128xf32>
    %362 = arith.truncf %361 : vector<10x128xf32> to vector<10x128xbf16>
    %c1_108 = arith.constant 1 : index
    %c0_109 = arith.constant 0 : index
    %c0_110 = arith.constant 0 : index
    %363 = vector.load %arg13[%c1_108, %c0_109, %c0_110] : memref<2x128x512xbf16, #tpu.memory_space<vmem>>, vector<1x128x512xbf16>
    %364 = vector.shape_cast %363 : vector<1x128x512xbf16> to vector<128x512xbf16>
    %cst_111 = arith.constant dense<0.000000e+00> : vector<10x512xf32>
    %365 = tpu.matmul %362, %364, %cst_111 {dimension_numbers = #tpu.dot_dimension_numbers<[1], [0], [0], [1], [0, 0, 1, 1], [], []>} : vector<10x128xbf16>, vector<128x512xbf16>, vector<10x512xf32> -> vector<10x512xf32>
    %c1_112 = arith.constant 1 : index
    %c0_113 = arith.constant 0 : index
    %c0_114 = arith.constant 0 : index
    %366 = vector.load %arg14[%c1_112, %c0_113, %c0_114] : memref<2x1x512xf32, #tpu.memory_space<vmem>>, vector<1x1x512xf32>
    %367 = vector.shape_cast %366 : vector<1x1x512xf32> to vector<1x512xf32>
    %368 = vector.broadcast %367 : vector<1x512xf32> to vector<10x512xf32>
    %369 = arith.addf %365, %368 : vector<10x512xf32>
    %370 = arith.mulf %369, %369 : vector<10x512xf32>
    %371 = arith.mulf %369, %370 : vector<10x512xf32>
    %cst_115 = arith.constant 4.471500e-02 : f32
    %372 = vector.broadcast %cst_115 : f32 to vector<10x512xf32>
    %373 = arith.mulf %372, %371 : vector<10x512xf32>
    %374 = arith.addf %369, %373 : vector<10x512xf32>
    %cst_116 = arith.constant 0.797884583 : f32
    %375 = vector.broadcast %cst_116 : f32 to vector<10x512xf32>
    %376 = arith.mulf %375, %374 : vector<10x512xf32>
    %377 = math.tanh %376 : vector<10x512xf32>
    %cst_117 = arith.constant 1.000000e+00 : f32
    %378 = vector.broadcast %cst_117 : f32 to vector<10x512xf32>
    %379 = arith.addf %378, %377 : vector<10x512xf32>
    %cst_118 = arith.constant 5.000000e-01 : f32
    %380 = vector.broadcast %cst_118 : f32 to vector<10x512xf32>
    %381 = arith.mulf %380, %379 : vector<10x512xf32>
    %382 = arith.mulf %369, %381 : vector<10x512xf32>
    %383 = arith.truncf %382 : vector<10x512xf32> to vector<10x512xbf16>
    %c1_119 = arith.constant 1 : index
    %c0_120 = arith.constant 0 : index
    %c0_121 = arith.constant 0 : index
    %384 = vector.load %arg15[%c1_119, %c0_120, %c0_121] : memref<2x512x128xbf16, #tpu.memory_space<vmem>>, vector<1x512x128xbf16>
    %385 = vector.shape_cast %384 : vector<1x512x128xbf16> to vector<512x128xbf16>
    %cst_122 = arith.constant dense<0.000000e+00> : vector<10x128xf32>
    %386 = tpu.matmul %383, %385, %cst_122 {dimension_numbers = #tpu.dot_dimension_numbers<[1], [0], [0], [1], [0, 0, 1, 1], [], []>} : vector<10x512xbf16>, vector<512x128xbf16>, vector<10x128xf32> -> vector<10x128xf32>
    %c1_123 = arith.constant 1 : index
    %c0_124 = arith.constant 0 : index
    %c0_125 = arith.constant 0 : index
    %387 = vector.load %arg16[%c1_123, %c0_124, %c0_125] : memref<2x1x128xf32, #tpu.memory_space<vmem>>, vector<1x1x128xf32>
    %388 = vector.shape_cast %387 : vector<1x1x128xf32> to vector<1x128xf32>
    %389 = vector.broadcast %388 : vector<1x128xf32> to vector<10x128xf32>
    %390 = arith.addf %386, %389 : vector<10x128xf32>
    %391 = arith.addf %335, %390 : vector<10x128xf32>
    %392 = vector.extract_strided_slice %391 {offsets = [0, 0], sizes = [1, 128], strides = [1, 1]} : vector<10x128xf32> to vector<1x128xf32>
    %393 = vector.extract_strided_slice %391 {offsets = [5, 0], sizes = [1, 128], strides = [1, 1]} : vector<10x128xf32> to vector<1x128xf32>
    %394 = tpu.concatenate %392, %393 in 0 : vector<1x128xf32>, vector<1x128xf32> -> vector<2x128xf32>
    %c0_126 = arith.constant 0 : index
    %c0_127 = arith.constant 0 : index
    %395 = vector.load %arg17[%c0_126, %c0_127] : memref<1x128xf32, #tpu.memory_space<vmem>>, vector<1x128xf32>
    %c0_128 = arith.constant 0 : index
    %c0_129 = arith.constant 0 : index
    %396 = vector.load %arg18[%c0_128, %c0_129] : memref<1x128xf32, #tpu.memory_space<vmem>>, vector<1x128xf32>
    %cst_130 = arith.constant dense<0.000000e+00> : vector<2xf32>
    %397 = vector.multi_reduction <add>, %394, %cst_130 [1] : vector<2x128xf32> to vector<2xf32>
    %398 = vector.shape_cast %397 : vector<2xf32> to vector<2x1xf32>
    %cst_131 = arith.constant 1.280000e+02 : f32
    %399 = vector.broadcast %cst_131 : f32 to vector<2x1xf32>
    %400 = arith.divf %398, %399 : vector<2x1xf32>
    %401 = vector.broadcast %400 : vector<2x1xf32> to vector<2x128xf32>
    %402 = arith.subf %394, %401 : vector<2x128xf32>
    %403 = arith.mulf %402, %402 : vector<2x128xf32>
    %cst_132 = arith.constant dense<0.000000e+00> : vector<2xf32>
    %404 = vector.multi_reduction <add>, %403, %cst_132 [1] : vector<2x128xf32> to vector<2xf32>
    %405 = vector.shape_cast %404 : vector<2xf32> to vector<2x1xf32>
    %cst_133 = arith.constant 1.280000e+02 : f32
    %406 = vector.broadcast %cst_133 : f32 to vector<2x1xf32>
    %407 = arith.divf %405, %406 : vector<2x1xf32>
    %408 = vector.broadcast %400 : vector<2x1xf32> to vector<2x128xf32>
    %409 = arith.subf %394, %408 : vector<2x128xf32>
    %cst_134 = arith.constant 9.99999997E-7 : f32
    %410 = vector.broadcast %cst_134 : f32 to vector<2x1xf32>
    %411 = arith.addf %407, %410 : vector<2x1xf32>
    %412 = math.rsqrt %411 : vector<2x1xf32>
    %413 = vector.broadcast %412 : vector<2x1xf32> to vector<2x128xf32>
    %414 = arith.mulf %409, %413 : vector<2x128xf32>
    %415 = vector.broadcast %395 : vector<1x128xf32> to vector<2x128xf32>
    %416 = arith.mulf %414, %415 : vector<2x128xf32>
    %417 = vector.broadcast %396 : vector<1x128xf32> to vector<2x128xf32>
    %418 = arith.addf %416, %417 : vector<2x128xf32>
    %c0_135 = arith.constant 0 : index
    %c0_136 = arith.constant 0 : index
    %419 = vector.load %arg21[%c0_135, %c0_136] : memref<2x128xf32, #tpu.memory_space<vmem>>, vector<2x128xf32>
    tpu.vector_store %arg21[%c0_135, %c0_136], %418 {strides = array<i32>} : memref<2x128xf32, #tpu.memory_space<vmem>>, vector<2x128xf32>,
    %c0_137 = arith.constant 0 : index
    %c0_138 = arith.constant 0 : index
    %420 = vector.load %arg19[%c0_137, %c0_138] : memref<128x128xf32, #tpu.memory_space<vmem>>, vector<128x128xf32>
    %cst_139 = arith.constant dense<0.000000e+00> : vector<2x128xf32>
    %421 = tpu.matmul %418, %420, %cst_139 {dimension_numbers = #tpu.dot_dimension_numbers<[1], [0], [0], [1], [0, 0, 1, 1], [], []>} : vector<2x128xf32>, vector<128x128xf32>, vector<2x128xf32> -> vector<2x128xf32>
    %c0_140 = arith.constant 0 : index
    %c0_141 = arith.constant 0 : index
    %422 = vector.load %arg20[%c0_140, %c0_141] : memref<1x128xf32, #tpu.memory_space<vmem>>, vector<1x128xf32>
    %423 = vector.broadcast %422 : vector<1x128xf32> to vector<2x128xf32>
    %424 = arith.addf %421, %423 : vector<2x128xf32>
    %c0_142 = arith.constant 0 : index
    %c0_143 = arith.constant 0 : index
    %425 = vector.load %arg22[%c0_142, %c0_143] : memref<2x128xf32, #tpu.memory_space<vmem>>, vector<2x128xf32>
    tpu.vector_store %arg22[%c0_142, %c0_143], %424 {strides = array<i32>} : memref<2x128xf32, #tpu.memory_space<vmem>>, vector<2x128xf32>,
    return
  }
}

</mosaic_0001>

<bundles_post_ra>
// kernel: synclr_forward.1
= control target key start
LH: loop header
LB: loop body
LE: loop exit
PB: predicated region body
PF: predicated region fallthrough
CT: control target
= control target key end

     0   :  { %s7634_s0 = inlined_call_operand.vmem [shape: f32[8,192], index: 0, kind: input, shape index: {}]   ;;  %s7635_s1 = inlined_call_operand.vmem [shape: bf16[192,128], index: 1, kind: input, shape index: {}]   ;;  %s7636_s2 = inlined_call_operand.vmem [shape: f32[1,128], index: 2, kind: input, shape index: {}, may-alias: {2,18,20}]   ;;  %s7637_s3 = inlined_call_operand.vmem [shape: f32[1,128], index: 3, kind: input, shape index: {}]   ;;  %s7638_s4 = inlined_call_operand.vmem [shape: f32[5,128], index: 4, kind: input, shape index: {}]   ;;  %s7639_s5 = inlined_call_operand.vmem [shape: f32[2,1,128], index: 5, kind: input, shape index: {}, may-alias: {5,11}]   ;;  %s7640_s6 = inlined_call_operand.vmem [shape: f32[2,1,128], index: 6, kind: input, shape index: {}, may-alias: {6,10,12,16}]   ;;  %s7641_s7 = inlined_call_operand.vmem [shape: bf16[2,128,384], index: 7, kind: input, shape index: {}]   ;;  %s7642_s8 = inlined_call_operand.vmem [shape: f32[2,1,384], index: 8, kind: input, shape index: {}]   ;;  %s7643_s9 = inlined_call_operand.vmem [shape: bf16[2,128,128], index: 9, kind: input, shape index: {}]   ;;  %s7644_s10 = inlined_call_operand.vmem [shape: f32[2,1,128], index: 10, kind: input, shape index: {}, may-alias: {6,10,12,16}]   ;;  %s7645_s11 = inlined_call_operand.vmem [shape: f32[2,1,128], index: 11, kind: input, shape index: {}, may-alias: {5,11}]   ;;  %s7646_s12 = inlined_call_operand.vmem [shape: f32[2,1,128], index: 12, kind: input, shape index: {}, may-alias: {6,10,12,16}]   ;;  %s7647_s13 = inlined_call_operand.vmem [shape: bf16[2,128,512], index: 13, kind: input, shape index: {}]   ;;  %s7648_s14 = inlined_call_operand.vmem [shape: f32[2,1,512], index: 14, kind: input, shape index: {}]   ;;  %s7649_s15 = inlined_call_operand.vmem [shape: bf16[2,512,128], index: 15, kind: input, shape index: {}]   ;;  %s7650_s16 = inlined_call_operand.vmem [shape: f32[2,1,128], index: 16, kind: input, shape index: {}, may-alias: {6,10,12,16}]   ;;  %s7651_s17 = inlined_call_operand.vmem [shape: f32[1,128], index: 17, kind: input, shape index: {}]   ;;  %s7652_s18 = inlined_call_operand.vmem [shape: f32[1,128], index: 18, kind: input, shape index: {}, may-alias: {2,18,20}]   ;;  %s7653_s19 = inlined_call_operand.vmem [shape: f32[128,128], index: 19, kind: input, shape index: {}]   ;;  %s7654_s20 = inlined_call_operand.vmem [shape: f32[1,128], index: 20, kind: input, shape index: {}, may-alias: {2,18,20}]   ;;  %s7655_s21 = inlined_call_operand.hbm [shape: f32[2,128], index: 21, kind: output, shape index: {0}]   ;;  %s7656_s22 = inlined_call_operand.vmem [shape: f32[2,128], index: 22, kind: output, shape index: {1}]  }
   0x1   :  { %7663 = sst [smem:[#allocation5_spill]] %s7634_s0 }
   0x2   :  { %7664 = sst [smem:[#allocation6_spill]] %s7635_s1 }
   0x3   :  { %7665 = sst [smem:[#allocation7_spill]] %s7636_s2 }
   0x4   :  { %7666 = sst [smem:[#allocation8_spill]] %s7637_s3 }
   0x5   :  { %7667 = sst [smem:[#allocation9_spill]] %s7638_s4 }
   0x6   :  { %7668 = sst [smem:[#allocation10_spill]] %s7639_s5 }
   0x7   :  { %7669 = sst [smem:[#allocation11_spill]] %s7640_s6 }
   0x8   :  { %s7670_s29 = sld [smem:[#allocation6_spill]]  ;;  %v6085_v1 = vmov 0   ;;  %s7671_s2 = sld [smem:[#allocation5_spill]]  ;;  %vm179_vm0 = vcmask 523264  }
   0x9   :  { %183 = vmatprep.subr.bf16.mxu0 %v6085_v1  ;;  %505 = vmatprep.mubr.bf16.mxu1 %v6085_v1 }
   0xe   :  { %v5695_v0 = vld [vmem:[%s7670_s29] sm:$0xff]   ;;  %v5696_v2 = vld [vmem:[%s7670_s29 + $0x8] sm:$0xff]   ;;  %v5697_v3 = vld [vmem:[%s7670_s29 + $0x10] sm:$0xff]  }
   0xf   :  { %184 = vmatpush1.bf16.msra.mxu0 %v5695_v0  ;;  %v5698_v4 = vld [vmem:[%s7670_s29 + $0x18] sm:$0xff]   ;;  %v5699_v5 = vld [vmem:[%s7670_s29 + $0x20] sm:$0xff]   ;;  %v73_v6 = vld [vmem:[%s7671_s2 + $0x8] sm:$0xff] }
  0x10   :  { %185 = vmatprep.subr.bf16.mxu0 %v6085_v1  ;;  %v75_v7 = vpack.c.bf16 %v73_v6, %v73_v6  ;;  %v5700_v8 = vld [vmem:[%s7670_s29 + $0x28] sm:$0xff]   ;;  %v5701_v9 = vld [vmem:[%s7670_s29 + $0x30] sm:$0xff]   ;;  %v5702_v10 = vld [vmem:[%s7670_s29 + $0x38] sm:$0xff]  }
  0x11   :  { %v5703_v11 = vld [vmem:[%s7670_s29 + $0x40] sm:$0xff]   ;;  %v5704_v12 = vld [vmem:[%s7670_s29 + $0x48] sm:$0xff]   ;;  %v5705_v13 = vld [vmem:[%s7670_s29 + $0x50] sm:$0xff]  }
  0x12   :  { %4738 = vmatprep.mubr.msk.bf16.mxu0 %vm179_vm0, %v75_v7  ;;  %v5706_v14 = vld [vmem:[%s7670_s29 + $0x58] sm:$0xff]   ;;  %v72_v15 = vld [vmem:[%s7671_s2] sm:$0xff] }
  0x13   :  { %186 = vmatpush1.bf16.msra.mxu0 %v5696_v2  ;;  %v74_v16 = vpack.c.bf16 %v72_v15, %v72_v15 }
  0x14   :  { %187 = vmatprep.subr.bf16.mxu0 %v6085_v1 }
  0x17   :  { %188 = vmatpush1.bf16.msra.mxu0 %v5697_v3 }
  0x18   :  { %189 = vmatprep.subr.bf16.mxu0 %v6085_v1 }
  0x1b   :  { %190 = vmatpush1.bf16.msra.mxu0 %v5698_v4 }
  0x1c   :  { %191 = vmatprep.subr.bf16.mxu0 %v6085_v1 }
  0x1f   :  { %192 = vmatpush1.bf16.msra.mxu0 %v5699_v5 }
  0x20   :  { %193 = vmatprep.subr.bf16.mxu0 %v6085_v1 }
  0x23   :  { %194 = vmatpush1.bf16.msra.mxu0 %v5700_v8 }
  0x24   :  { %195 = vmatprep.subr.bf16.mxu0 %v6085_v1 }
  0x27   :  { %196 = vmatpush1.bf16.msra.mxu0 %v5701_v9 }
  0x28   :  { %197 = vmatprep.subr.bf16.mxu0 %v6085_v1 }
  0x2b   :  { %198 = vmatpush1.bf16.msra.mxu0 %v5702_v10 }
  0x2c   :  { %199 = vmatprep.subr.bf16.mxu0 %v6085_v1 }
  0x2f   :  { %200 = vmatpush1.bf16.msra.mxu0 %v5703_v11 }
  0x30   :  { %201 = vmatprep.subr.bf16.mxu0 %v6085_v1 }
  0x33   :  { %202 = vmatpush1.bf16.msra.mxu0 %v5704_v12 }
  0x34   :  { %203 = vmatprep.subr.bf16.mxu0 %v6085_v1 }
  0x37   :  { %204 = vmatpush1.bf16.msra.mxu0 %v5705_v13 }
  0x38   :  { %205 = vmatprep.subr.bf16.mxu0 %v6085_v1 }
  0x3b   :  { %206 = vmatpush1.bf16.msra.mxu0 %v5706_v14 }
  0x3e   :  { %216 = vmatmul.mubr.bf16.vlgmr.msra.gmra.mrb[0].mxu0 %v74_v16 }
  0x3f   :  { %28 = vsyncpa [#allocation3], 0  ;;  %v237_v17 = vlaneseq  ;;  %s7672_s0 = sld [smem:[#allocation9_spill]]  ;;  %s7673_s1 = sld [smem:[#allocation8_spill]]  ;;  %vm255_vm1 = vcmask 1041408   ;;  %vm245_vm2 = vcmask 1040384  }
  0x40   :  { %s7674_s24 = sld [smem:[#allocation7_spill]]  ;;  %vm247_vm3 = vcmask 1044480   ;;  %vm249_vm4 = vcmask 1045504   ;;  %v5707_v40 = vld [vmem:[%s7641_s7 + $0x4] ss:$12 sps:$4 sm:$0xff]   ;;  %v6086_v61 = vmov 0.0  }
  0x41   :  { %v6268_v19 = vshrl.u32 %v237_v17, 7  ;;  %v5709_v41 = vld [vmem:[%s7641_s7] ss:$12 sps:$4 sm:$0xff]   ;;  %v5710_v42 = vld [vmem:[%s7641_s7 + $0x1c] ss:$12 sps:$4 sm:$0xff]   ;;  %473 = vmatprep.subr.bf16.mxu1 %v5707_v40  ;;  %5355 = vmatprep.subr.bf16.mxu0 %v6086_v61  ;;  %vm6087_vm5 = vmmov 0  }
  0x42   :  { %474 = vmatpush1.bf16.msra.mxu1 %v5709_v41  ;;  %v5712_v43 = vld [vmem:[%s7641_s7 + $0x18] ss:$12 sps:$4 sm:$0xff]   ;;  %v5713_v53 = vld [vmem:[%s7641_s7 + $0x34] ss:$12 sps:$4 sm:$0xff]   ;;  %v5715_v54 = vld [vmem:[%s7641_s7 + $0x30] ss:$12 sps:$4 sm:$0xff]   ;;  %5357 = vmatprep.mubr.msk.bf16.mxu0 %vm6087_vm5, %v6086_v61 }
  0x43   :  { %v6277_v26 = vsub.s32 0, %v6268_v19  ;;  %475 = vmatprep.subr.bf16.mxu1 %v5710_v42  ;;  %v5716_v55 = vld [vmem:[%s7641_s7 + $0x4c] ss:$12 sps:$4 sm:$0xff]   ;;  %v5718_v56 = vld [vmem:[%s7641_s7 + $0x48] ss:$12 sps:$4 sm:$0xff]   ;;  %s7675_s3 = sld [smem:[#allocation10_spill]] }
  0x44   :  { %v5719_v57 = vld [vmem:[%s7641_s7 + $0x64] ss:$12 sps:$4 sm:$0xff]   ;;  %v5721_v58 = vld [vmem:[%s7641_s7 + $0x60] ss:$12 sps:$4 sm:$0xff]   ;;  %v5722_v59 = vld [vmem:[%s7641_s7 + $0x7c] ss:$12 sps:$4 sm:$0xff]  }
  0x45   :  { %v223_v18 = vld [vmem:[%s7672_s0] sm:$0x1f]  ;;  %v5727_v63 = vld [vmem:[%s7641_s7 + $0x90] ss:$12 sps:$4 sm:$0xff]   ;;  %v5728_v0 = vld [vmem:[%s7641_s7 + $0xac] ss:$12 sps:$4 sm:$0xff]  }
  0x46   :  { %v224_v20 = vld [vmem:[%s7673_s1] sm:$0x1]  ;;  %v227_v22 = vrot.slane %v223_v18, 1  ;;  %v230_v23 = vrot.slane %v223_v18, 5  ;;  %476 = vmatpush1.bf16.msra.mxu1 %v5712_v43  ;;  %v5724_v60 = vld [vmem:[%s7641_s7 + $0x78] ss:$12 sps:$4 sm:$0xff]  }
  0x47   :  { %v4725_v21 = vld [vmem:[%s7674_s24] ss:$0 sm:$0xff]  ;;  %v225_v25 = vadd.f32 %v224_v20, %v223_v18  ;;  %477 = vmatprep.subr.bf16.mxu1 %v5713_v53  ;;  %v5730_v2 = vld [vmem:[%s7641_s7 + $0xa8] ss:$12 sps:$4 sm:$0xff]   ;;  %s7676_s4 = sld [smem:[#allocation11_spill]]  ;;  %s6088_s2 = smov 96  }
  0x48   :  { %v5725_v62 = vld [vmem:[%s7641_s7 + $0x94] ss:$12 sps:$4 sm:$0xff]   ;;  %vm646_vm6 = vcmask 261120   ;;  %vm568_vm7 = vcmask 1042432   ;;  %s6089_s24 = smov 64   ;;  %s7661_s6 = smov 32  }
  0x49   :  { %v240_v33 = vrot.slane %v225_v25, %v6277_v26  ;;  %v4739_v11 = vld [vmem:[%s7675_s3] ss:$0 sm:$0xff]  ;;  %v5731_v20 = vld [vmem:[%s7641_s7 + $0x8] ss:$12 sps:$4 sm:$0xff]   ;;  %v6420_v53 = vsub.s32 2, %v6268_v19  ;;  %vm1023_vm8 = vcmask 36864  }
  0x4a   :  { %478 = vmatpush1.bf16.msra.mxu1 %v5715_v54  ;;  %vm1128_vm9 = vcmask 39936   ;;  %vm1513_vm10 = vcmask 785408  }
  0x4b   :  { %479 = vmatprep.subr.bf16.mxu1 %v5716_v55 }
  0x4d   :  { %v4740_v15 = vld [vmem:[%s7676_s4] ss:$0 sm:$0xff] }
  0x4e   :  { %480 = vmatpush1.bf16.msra.mxu1 %v5718_v56 }
  0x4f   :  { %481 = vmatprep.subr.bf16.mxu1 %v5719_v57 }
  0x52   :  { %482 = vmatpush1.bf16.msra.mxu1 %v5721_v58 }
  0x53   :  { %483 = vmatprep.subr.bf16.mxu1 %v5722_v59 }
  0x56   :  { %484 = vmatpush1.bf16.msra.mxu1 %v5724_v60 }
  0x57   :  { %485 = vmatprep.subr.bf16.mxu1 %v5725_v62 }
  0x5a   :  { %486 = vmatpush1.bf16.msra.mxu1 %v5727_v63 }
  0x5b   :  { %487 = vmatprep.subr.bf16.mxu1 %v5728_v0 }
  0x5e   :  { %488 = vmatpush1.bf16.msra.mxu1 %v5730_v2 }
  0x5f   :  { %5335 = vmatprep.subr.bf16.mxu1 %v6086_v61 }
 0x111   :  { %v217_v24 = vpop.f32.mrb[0].mxu0 }
 0x112   :  { %v218_v27 = vadd.f32 %v4725_v21, %v217_v24  ;;  %v219_v28 = vpop.f32.mrb[1].mxu0  ;;  %v5734_v24 = vld [vmem:[%s7641_s7 + $0x50] ss:$12 sps:$4 sm:$0xff]  }
 0x113   :  { %v220_v29 = vpop.f32.mrb[2].mxu0  ;;  %v5737_v28 = vld [vmem:[%s7641_s7 + $0x98] ss:$12 sps:$4 sm:$0xff]  }
 0x114   :  { %v229_v30 = vadd.f32 %v227_v22, %v218_v27  ;;  %v232_v31 = vadd.f32 %v230_v23, %v218_v27  ;;  %v221_v32 = vpop.f32.mrb[3].mxu0  ;;  %v5732_v22 = vld [vmem:[%s7641_s7 + $0x20] ss:$12 sps:$4 sm:$0xff]   ;;  %v5733_v23 = vld [vmem:[%s7641_s7 + $0x38] ss:$12 sps:$4 sm:$0xff]  }
 0x115   :  { %v5736_v27 = vld [vmem:[%s7641_s7 + $0x80] ss:$12 sps:$4 sm:$0xff]   ;;  %v5738_v29 = vld [vmem:[%s7641_s7 + $0xb0] ss:$12 sps:$4 sm:$0xff]  }
 0x116   :  { %v234_v34 = vrot.slane %v229_v30, 7  ;;  %v6280_v35 = vrot.slane %v232_v31, 6  ;;  %v328_v30 = vld [vmem:[%s7642_s8] sm:$0x7]  ;;  %v6391_v31 = vsub.s32 1, %v6268_v19 }
 0x117   :  { %v333_v32 = vrot.slane %v328_v30, %v6277_v26  ;;  %v341_v55 = vrot.slane %v328_v30, %v6420_v53 }
 0x118   :  { %v256_v36 = vsel %vm255_vm1, %v6280_v35, 0.0  ;;  %v246_v37 = vsel %vm245_vm2, %v225_v25, %v234_v34  ;;  %v5735_v25 = vld [vmem:[%s7641_s7 + $0x68] ss:$12 sps:$4 sm:$0xff]  }
 0x119   :  { %257 = vadd.xlane.f32.xlu0 %v256_v36  ;;  %v248_v38 = vsel %vm247_vm3, %v246_v37, %v240_v33  ;;  %v337_v33 = vrot.slane %v328_v30, %v6391_v31  ;;  %v6091_v30 = vmov 65535  }
 0x11a   :  { %v6287_v39 = vsel %vm249_vm4, %v248_v38, %v6280_v35 }
 0x11d   :  { %253 = vadd.xlane.f32.xlu0 %v6287_v39 }
 0x1a6   :  { %v258_v44 = vpop.xlane.xlu0 %257 }
 0x1a7   :  { %v261_v45 = vmul.f32 0.0078125, %v258_v44 }
 0x1a9   :  { %v263_v48 = vsub.f32 %v6280_v35, %v261_v45 }
 0x1aa   :  { %v254_v46 = vpop.xlane.xlu0 %253 }
 0x1ab   :  { %v260_v47 = vmul.f32 0.0078125, %v254_v46  ;;  %v265_v51 = vmul.f32 %v263_v48, %v263_v48 }
 0x1ad   :  { %v262_v49 = vsub.f32 %v6287_v39, %v260_v47  ;;  %v268_v52 = vsel %vm255_vm1, %v265_v51, 0.0 }
 0x1af   :  { %v264_v50 = vmul.f32 %v262_v49, %v262_v49 }
 0x1b1   :  { %266 = vadd.xlane.f32.xlu1 %v264_v50 }
 0x1b5   :  { %269 = vadd.xlane.f32.xlu1 %v268_v52 }
 0x23e   :  { %v267_v3 = vpop.xlane.xlu1 %266 }
 0x23f   :  { %v271_v4 = vmul.f32 0.0078125, %v267_v3 }
 0x241   :  { %v273_v5 = vadd.f32 1e-06, %v271_v4 }
 0x242   :  { %v270_v6 = vpop.xlane.xlu1 %269 }
 0x243   :  { %5947 = vrsqrt.f32 %v273_v5  ;;  %v272_v7 = vmul.f32 0.0078125, %v270_v6 }
 0x245   :  { %v274_v8 = vadd.f32 1e-06, %v272_v7 }
 0x247   :  { %5949 = vrsqrt.f32 %v274_v8 }
 0x24d   :  { %v5948_v9 = vpop.eup %5947 }
 0x24e   :  { %v277_v10 = vmul.f32 %v5948_v9, %v262_v49 }
 0x250   :  { %v285_v14 = vmul.f32 %v4739_v11, %v277_v10 }
 0x251   :  { %v5950_v12 = vpop.eup %5949 }
 0x252   :  { %v278_v13 = vmul.f32 %v5950_v12, %v263_v48  ;;  %v293_v17 = vadd.f32 %v4740_v15, %v285_v14 }
 0x254   :  { %v286_v16 = vmul.f32 %v4739_v11, %v278_v13 }
 0x256   :  { %v294_v18 = vadd.f32 %v4740_v15, %v286_v16 }
 0x258   :  { %v295_v21 = vpack.c.bf16 %v294_v18, %v293_v17 }
 0x25a   :  { %506 = vmatmul.mubr.bf16.vlgmr.msra.gmra.mrb[0].mxu1 %v295_v21 }
 0x25b   :  { %5336 = vmatpush3.bf16.msra.mxu1 %v5731_v20  ;;  %5351 = vmatprep.mubr.msk.bf16.mxu1 %vm6087_vm5, %v6086_v61 }
 0x25c   :  { %5337 = vmatprep.subr.bf16.mxu1 %v6086_v61 }
 0x25f   :  { %5338 = vmatpush3.bf16.msra.mxu1 %v5732_v22 }
 0x260   :  { %5339 = vmatprep.subr.bf16.mxu1 %v6086_v61 }
 0x263   :  { %5340 = vmatpush3.bf16.msra.mxu1 %v5733_v23 }
 0x264   :  { %5341 = vmatprep.subr.bf16.mxu1 %v6086_v61 }
 0x267   :  { %5342 = vmatpush3.bf16.msra.mxu1 %v5734_v24 }
 0x268   :  { %5343 = vmatprep.subr.bf16.mxu1 %v6086_v61 }
 0x26b   :  { %5344 = vmatpush3.bf16.msra.mxu1 %v5735_v25 }
 0x26c   :  { %5345 = vmatprep.subr.bf16.mxu1 %v6086_v61 }
 0x26f   :  { %5346 = vmatpush3.bf16.msra.mxu1 %v5736_v27 }
 0x270   :  { %5347 = vmatprep.subr.bf16.mxu1 %v6086_v61 }
 0x273   :  { %5348 = vmatpush3.bf16.msra.mxu1 %v5737_v28 }
 0x274   :  { %5349 = vmatprep.subr.bf16.mxu1 %v6086_v61 }
 0x277   :  { %5350 = vmatpush3.bf16.msra.mxu1 %v5738_v29 }
 0x278   :  { %5373 = vmatprep.subr.bf16.mxu1 %v6086_v61 }
 0x27a   :  { %5352 = vmatmul.mubr.bf16.vlgmr.msra.gmra.mrb[4].mxu1 %v295_v21 }
 0x27b   :  { %5375 = vmatprep.mubr.msk.bf16.mxu1 %vm6087_vm5, %v6086_v61 }
 0x32d   :  { %v507_v34 = vpop.f32.mrb[0].mxu1 }
 0x32e   :  { %v508_v36 = vadd.f32 %v507_v34, %v333_v32  ;;  %v509_v37 = vpop.f32.mrb[1].mxu1 }
 0x32f   :  { %v510_v38 = vadd.f32 %v509_v37, %v337_v33  ;;  %v511_v40 = vpop.f32.mrb[2].mxu1 }
 0x330   :  { %v512_v41 = vadd.f32 %v511_v40, %v333_v32  ;;  %v513_v42 = vpop.f32.mrb[3].mxu1  ;;  %558 = vrot.lane.b32.xlu1 %v508_v36, %s6088_s2  ;;  %v569_v46 = vrot.slane %v508_v36, 5  ;;  %v630_v52 = vpack.c.bf16 %v508_v36, %v508_v36  ;;  %v1132_v32 = vsel %vm255_vm1, 4294967295, %v6091_v30 }
 0x331   :  { %v514_v43 = vadd.f32 %v513_v42, %v337_v33  ;;  %583 = vrot.lane.b32.xlu0 %v510_v38, %s6088_s2  ;;  %v638_v44 = vpack.c.bf16 %v510_v38, %v510_v38  ;;  %v593_v49 = vrot.slane %v510_v38, 5  ;;  %v6462_v37 = vsel %vm568_vm7, %v1132_v32, 0 }
 0x332   :  { %v570_v45 = vrot.slane %v512_v41, 5 }
 0x333   :  { %v594_v47 = vrot.slane %v514_v43, 5  ;;  %v651_v48 = vsel %vm646_vm6, %v638_v44, 0 }
 0x334   :  { %5356 = vmatpush3.bf16.xpose.msra.mxu0 %v651_v48  ;;  %586 = vrot.lane.b32.xlu1 %v510_v38, %s6089_s24  ;;  %v6400_v50 = vsel %vm568_vm7, %v569_v46, %v570_v45 }
 0x335   :  { %561 = vrot.lane.b32.xlu0 %v508_v36, %s6089_s24  ;;  %v595_v51 = vsel %vm568_vm7, %v593_v49, %v594_v47  ;;  %5361 = vmatprep.subr.bf16.mxu0 %v6086_v61  ;;  %v634_v25 = vpack.c.bf16 %v6400_v50, %v6400_v50 }
 0x336   :  { %v642_v14 = vpack.c.bf16 %v595_v51, %v595_v51 }
 0x338   :  { %589 = vrot.lane.b32.xlu1 %v510_v38, %s7661_s6  ;;  %v835_v20 = vsel %vm646_vm6, %v642_v14, 0 }
 0x339   :  { %597 = vrot.lane.b32.xlu0 %v595_v51, %s6088_s2 }
 0x33b   :  { %5358 = vmatmul.mubr.msk.bf16.vlgmr.msra.gmra.mrb[4].mxu0 %vm646_vm6, %v630_v52 }
 0x33c   :  { %564 = vrot.lane.b32.xlu1 %v508_v36, %s7661_s6  ;;  %5363 = vmatprep.mubr.msk.bf16.mxu0 %vm6087_vm5, %v6086_v61 }
 0x33d   :  { %573 = vrot.lane.b32.xlu0 %v6400_v50, %s6088_s2 }
 0x340   :  { %600 = vrot.lane.b32.xlu1 %v595_v51, %s6089_s24 }
 0x341   :  { %576 = vrot.lane.b32.xlu0 %v6400_v50, %s6089_s24 }
 0x344   :  { %603 = vrot.lane.b32.xlu1 %v595_v51, %s7661_s6 }
 0x348   :  { %579 = vrot.lane.b32.xlu1 %v6400_v50, %s7661_s6 }
 0x34d   :  { %v550_v54 = vpop.f32.mrb[4].mxu1 }
 0x34e   :  { %v5353_v56 = vpop.f32.mrb[5].mxu1  ;;  %v6446_v27 = vadd.f32 %v550_v54, %v341_v55 }
 0x34f   :  { %v553_v57 = vpop.f32.mrb[6].mxu1 }
 0x350   :  { %v6423_v58 = vadd.f32 %v553_v57, %v341_v55  ;;  %v5354_v59 = vpop.f32.mrb[7].mxu1  ;;  %v1120_v36 = vpack.c.bf16 %v6446_v27, %v6446_v27 }
 0x352   :  { %v1135_v41 = vand.u32 %v6462_v37, %v1120_v36 }
 0x3a2   :  { %v559_v60 = vpop.permute.xlu1 %558 }
 0x3a3   :  { %v584_v62 = vpop.permute.xlu0 %583  ;;  %v631_v7 = vpack.c.bf16 %v559_v60, %v559_v60 }
 0x3a4   :  { %v639_v63 = vpack.c.bf16 %v584_v62, %v584_v62 }
 0x3a6   :  { %v697_v0 = vsel %vm646_vm6, %v639_v63, 0  ;;  %v587_v2 = vpop.permute.xlu1 %586 }
 0x3a7   :  { %5362 = vmatpush3.bf16.xpose.msra.mxu0 %v697_v0  ;;  %v562_v3 = vpop.permute.xlu0 %561  ;;  %v640_v4 = vpack.c.bf16 %v587_v2, %v587_v2 }
 0x3a8   :  { %5367 = vmatprep.subr.bf16.mxu0 %v6086_v61  ;;  %v632_v16 = vpack.c.bf16 %v562_v3, %v562_v3 }
 0x3a9   :  { %v743_v9 = vsel %vm646_vm6, %v640_v4, 0 }
 0x3aa   :  { %v590_v5 = vpop.permute.xlu1 %589 }
 0x3ab   :  { %v641_v6 = vpack.c.bf16 %v590_v5, %v590_v5  ;;  %v598_v10 = vpop.permute.xlu0 %597 }
 0x3ac   :  { %v643_v12 = vpack.c.bf16 %v598_v10, %v598_v10 }
 0x3ad   :  { %v789_v8 = vsel %vm646_vm6, %v641_v6, 0 }
 0x3ae   :  { %5374 = vmatpush3.bf16.xpose.msra.mxu1 %v789_v8  ;;  %v565_v11 = vpop.permute.xlu1 %564  ;;  %5364 = vmatmul.mubr.msk.bf16.vlgmr.msra.gmra.mrb[8].mxu0 %vm646_vm6, %v631_v7  ;;  %v881_v17 = vsel %vm646_vm6, %v643_v12, 0 }
 0x3af   :  { %5368 = vmatpush3.bf16.xpose.msra.mxu0 %v743_v9  ;;  %5369 = vmatprep.mubr.msk.bf16.mxu0 %vm6087_vm5, %v6086_v61  ;;  %v633_v15 = vpack.c.bf16 %v565_v11, %v565_v11  ;;  %v574_v21 = vpop.permute.xlu0 %573 }
 0x3b0   :  { %5385 = vmatprep.subr.bf16.mxu1 %v6086_v61  ;;  %5379 = vmatprep.subr.bf16.mxu0 %v6086_v61  ;;  %v635_v24 = vpack.c.bf16 %v574_v21, %v574_v21 }
 0x3b2   :  { %v601_v13 = vpop.permute.xlu1 %600 }
 0x3b3   :  { %v644_v23 = vpack.c.bf16 %v601_v13, %v601_v13  ;;  %v577_v34 = vpop.permute.xlu0 %576 }
 0x3b4   :  { %v636_v40 = vpack.c.bf16 %v577_v34, %v577_v34 }
 0x3b5   :  { %5376 = vmatmul.mubr.msk.bf16.vlgmr.msra.gmra.mrb[8].mxu1 %vm646_vm6, %v633_v15  ;;  %v927_v29 = vsel %vm646_vm6, %v644_v23, 0 }
 0x3b6   :  { %5386 = vmatpush3.bf16.xpose.msra.mxu1 %v881_v17  ;;  %v604_v18 = vpop.permute.xlu1 %603  ;;  %5370 = vmatmul.mubr.msk.bf16.vlgmr.msra.gmra.mrb[12].mxu0 %vm646_vm6, %v632_v16 }
 0x3b7   :  { %5380 = vmatpush3.bf16.xpose.msra.mxu0 %v835_v20  ;;  %5387 = vmatprep.mubr.msk.bf16.mxu1 %vm6087_vm5, %v6086_v61  ;;  %v645_v22 = vpack.c.bf16 %v604_v18, %v604_v18 }
 0x3b8   :  { %5381 = vmatprep.mubr.msk.bf16.mxu0 %vm6087_vm5, %v6086_v61  ;;  %5397 = vmatprep.subr.bf16.mxu1 %v6086_v61 }
 0x3b9   :  { %5391 = vmatprep.subr.bf16.mxu0 %v6086_v61  ;;  %v973_v28 = vsel %vm646_vm6, %v645_v22, 0 }
 0x3ba   :  { %v580_v33 = vpop.permute.xlu1 %579 }
 0x3bb   :  { %v637_v38 = vpack.c.bf16 %v580_v33, %v580_v33 }
 0x3bd   :  { %5388 = vmatmul.mubr.msk.bf16.vlgmr.msra.gmra.mrb[12].mxu1 %vm646_vm6, %v635_v24 }
 0x3be   :  { %5382 = vmatmul.mubr.msk.bf16.vlgmr.msra.gmra.mrb[16].mxu0 %vm646_vm6, %v634_v25  ;;  %5398 = vmatpush3.bf16.xpose.msra.mxu1 %v973_v28 }
 0x3bf   :  { %5392 = vmatpush3.bf16.xpose.msra.mxu0 %v927_v29  ;;  %5399 = vmatprep.mubr.msk.bf16.mxu1 %vm6087_vm5, %v6086_v61 }
 0x3c0   :  { %5393 = vmatprep.mubr.msk.bf16.mxu0 %vm6087_vm5, %v6086_v61  ;;  %5403 = vmatprep.subr.bf16.mxu0 %v6086_v61 }
 0x3c1   :  { %5409 = vmatprep.subr.bf16.mxu1 %v6086_v61 }
 0x3c5   :  { %5400 = vmatmul.mubr.msk.bf16.vlgmr.msra.gmra.mrb[16].mxu1 %vm646_vm6, %v637_v38 }
 0x3c6   :  { %5394 = vmatmul.mubr.msk.bf16.vlgmr.msra.gmra.mrb[20].mxu0 %vm646_vm6, %v636_v40  ;;  %5411 = vmatprep.mubr.msk.bf16.mxu1 %vm6087_vm5, %v6086_v61 }
 0x3c7   :  { %5404 = vmatpush3.bf16.msra.mxu0 %v1135_v41  ;;  %5405 = vmatprep.mubr.msk.bf16.mxu0 %vm6087_vm5, %v6086_v61 }
 0x3c8   :  { %5415 = vmatprep.subr.bf16.mxu0 %v6086_v61 }
 0x40e   :  { %v687_v42 = vpop.f32.mrb[4].mxu0 }
 0x40f   :  { %v1015_v43 = vmul.f32 0.17677669, %v687_v42  ;;  %v5359_v44 = vpop.f32.mrb[5].mxu0 }
 0x410   :  { %v690_v45 = vpop.f32.mrb[6].mxu0 }
 0x411   :  { %v5360_v46 = vpop.f32.mrb[7].mxu0  ;;  %v1024_v47 = vsel %vm1023_vm8, %v1015_v43, -inf }
 0x412   :  { %1025 = vmax.xlane.f32.xlu0 %v1024_v47 }
 0x481   :  { %v733_v48 = vpop.f32.mrb[8].mxu0 }
 0x482   :  { %v1016_v49 = vmul.f32 0.17677669, %v733_v48  ;;  %v5365_v50 = vpop.f32.mrb[9].mxu0 }
 0x483   :  { %v736_v51 = vpop.f32.mrb[10].mxu0 }
 0x484   :  { %v5366_v52 = vpop.f32.mrb[11].mxu0  ;;  %v1027_v54 = vsel %vm1023_vm8, %v1016_v49, -inf }
 0x485   :  { %1028 = vmax.xlane.f32.xlu1 %v1027_v54 }
 0x488   :  { %v825_v55 = vpop.f32.mrb[8].mxu1 }
 0x489   :  { %v1018_v56 = vmul.f32 0.17677669, %v825_v55  ;;  %v779_v57 = vpop.f32.mrb[12].mxu0  ;;  %v5377_v59 = vpop.f32.mrb[9].mxu1 }
 0x48a   :  { %v5371_v60 = vpop.f32.mrb[13].mxu0  ;;  %v828_v62 = vpop.f32.mrb[10].mxu1  ;;  %v1017_v63 = vmul.f32 0.17677669, %v779_v57 }
 0x48b   :  { %v782_v0 = vpop.f32.mrb[14].mxu0  ;;  %v5378_v2 = vpop.f32.mrb[11].mxu1  ;;  %v1033_v3 = vsel %vm1023_vm8, %v1018_v56, -inf }
 0x48c   :  { %v5372_v4 = vpop.f32.mrb[15].mxu0  ;;  %1034 = vmax.xlane.f32.xlu0 %v1033_v3  ;;  %v1030_v5 = vsel %vm1023_vm8, %v1017_v63, -inf  ;;  %v618_v2 = vrot.slane %v6423_v58, 5  ;;  %v617_v3 = vrot.slane %v6446_v27, 5 }
 0x48e   :  { %v6517_v4 = vsel %vm568_vm7, %v617_v3, %v618_v2 }
 0x490   :  { %1031 = vmax.xlane.f32.xlu0 %v1030_v5  ;;  %v917_v6 = vpop.f32.mrb[12].mxu1 }
 0x491   :  { %v6476_v7 = vmul.f32 0.17677669, %v917_v6  ;;  %v871_v8 = vpop.f32.mrb[16].mxu0  ;;  %v5389_v9 = vpop.f32.mrb[13].mxu1 }
 0x492   :  { %v6478_v10 = vmul.f32 0.17677669, %v871_v8  ;;  %v5383_v11 = vpop.f32.mrb[17].mxu0  ;;  %v920_v12 = vpop.f32.mrb[14].mxu1 }
 0x493   :  { %v874_v13 = vpop.f32.mrb[18].mxu0  ;;  %v5390_v14 = vpop.f32.mrb[15].mxu1  ;;  %v1039_v15 = vsel %vm1023_vm8, %v6476_v7, -inf }
 0x494   :  { %1040 = vmax.xlane.f32.xlu1 %v1039_v15  ;;  %v5384_v16 = vpop.f32.mrb[19].mxu0  ;;  %v1036_v17 = vsel %vm1023_vm8, %v6478_v10, -inf }
 0x495   :  { %1037 = vmax.xlane.f32.xlu0 %v1036_v17 }
 0x498   :  { %v1009_v18 = vpop.f32.mrb[16].mxu1 }
 0x499   :  { %v6484_v20 = vmul.f32 0.17677669, %v1009_v18  ;;  %v963_v21 = vpop.f32.mrb[20].mxu0  ;;  %v5401_v22 = vpop.f32.mrb[17].mxu1 }
 0x49a   :  { %v6486_v23 = vmul.f32 0.17677669, %v963_v21  ;;  %v5395_v24 = vpop.f32.mrb[21].mxu0  ;;  %v1012_v25 = vpop.f32.mrb[18].mxu1 }
 0x49b   :  { %v966_v28 = vpop.f32.mrb[22].mxu0  ;;  %v5402_v29 = vpop.f32.mrb[19].mxu1  ;;  %v1045_v30 = vsel %vm1023_vm8, %v6484_v20, -inf }
 0x49c   :  { %1046 = vmax.xlane.f32.xlu1 %v1045_v30  ;;  %v5396_v32 = vpop.f32.mrb[23].mxu0  ;;  %v1042_v33 = vsel %vm1023_vm8, %v6486_v23, -inf }
 0x49d   :  { %1043 = vmax.xlane.f32.xlu0 %v1042_v33 }
 0x49f   :  { %v1026_v34 = vpop.xlane.xlu0 %1025 }
 0x4a0   :  { %v1048_v36 = vsub.f32 %v1015_v43, %v1026_v34 }
 0x4a2   :  { %v1056_v38 = vmul.f32 1.442695, %v1048_v36 }
 0x4a4   :  { %5951 = vpow2.f32 %v1056_v38 }
 0x4ad   :  { %610 = vrot.lane.b32.xlu1 %v6446_v27, %s6089_s24 }
 0x4ae   :  { %v6496_v40 = vpop.eup %5951 }
 0x4af   :  { %v1072_v41 = vsel %vm1023_vm8, %v6496_v40, 0.0 }
 0x4b3   :  { %607 = vrot.lane.b32.xlu0 %v6446_v27, %s6088_s2 }
 0x4d2   :  { %1073 = vadd.xlane.f32.xlu0 %v1072_v41 }
 0x512   :  { %v1029_v42 = vpop.xlane.xlu1 %1028 }
 0x513   :  { %v1049_v44 = vsub.f32 %v1016_v49, %v1029_v42 }
 0x515   :  { %v1058_v45 = vmul.f32 1.442695, %v1049_v44 }
 0x517   :  { %5953 = vpow2.f32 %v1058_v45 }
 0x519   :  { %v1035_v46 = vpop.xlane.xlu0 %1034 }
 0x51a   :  { %v1051_v47 = vsub.f32 %v1018_v56, %v1035_v46 }
 0x51c   :  { %v1062_v48 = vmul.f32 1.442695, %v1051_v47 }
 0x51d   :  { %v1032_v50 = vpop.xlane.xlu0 %1031 }
 0x51e   :  { %5955 = vpow2.f32 %v1062_v48  ;;  %v1050_v51 = vsub.f32 %v1017_v63, %v1032_v50 }
 0x520   :  { %v1060_v52 = vmul.f32 1.442695, %v1050_v51 }
 0x521   :  { %v6500_v43 = vpop.eup %5953  ;;  %v1041_v5 = vpop.xlane.xlu1 %1040 }
 0x522   :  { %5957 = vpow2.f32 %v1060_v52  ;;  %v1075_v54 = vsel %vm1023_vm8, %v6500_v43, 0.0  ;;  %v1038_v55 = vpop.xlane.xlu0 %1037  ;;  %v1053_v6 = vsub.f32 %v6476_v7, %v1041_v5  ;;  %v1124_v52 = vpack.c.bf16 %v6517_v4, %v6517_v4 }
 0x523   :  { %1076 = vadd.xlane.f32.xlu1 %v1075_v54  ;;  %v1052_v9 = vsub.f32 %v6478_v10, %v1038_v55 }
 0x524   :  { %v1066_v11 = vmul.f32 1.442695, %v1053_v6 }
 0x525   :  { %v1064_v12 = vmul.f32 1.442695, %v1052_v9 }
 0x526   :  { %5959 = vpow2.f32 %v1066_v11 }
 0x527   :  { %5961 = vpow2.f32 %v1064_v12 }
 0x528   :  { %v6504_v57 = vpop.eup %5955 }
 0x529   :  { %v1081_v49 = vsel %vm1023_vm8, %v6504_v57, 0.0  ;;  %v1047_v8 = vpop.xlane.xlu1 %1046 }
 0x52a   :  { %1082 = vadd.xlane.f32.xlu1 %v1081_v49  ;;  %v1044_v56 = vpop.xlane.xlu0 %1043  ;;  %v1055_v58 = vsub.f32 %v6484_v20, %v1047_v8 }
 0x52b   :  { %v1054_v14 = vsub.f32 %v6486_v23, %v1044_v56 }
 0x52c   :  { %v6508_v59 = vpop.eup %5957  ;;  %v1070_v13 = vmul.f32 1.442695, %v1055_v58 }
 0x52d   :  { %v1078_v60 = vsel %vm1023_vm8, %v6508_v59, 0.0  ;;  %v1068_v15 = vmul.f32 1.442695, %v1054_v14  ;;  %v611_v23 = vpop.permute.xlu1 %610 }
 0x52e   :  { %1079 = vadd.xlane.f32.xlu0 %v1078_v60  ;;  %v608_v62 = vpop.permute.xlu0 %607  ;;  %5963 = vpow2.f32 %v1070_v13  ;;  %v1122_v25 = vpack.c.bf16 %v611_v23, %v611_v23 }
 0x52f   :  { %v1121_v63 = vpack.c.bf16 %v608_v62, %v608_v62  ;;  %5965 = vpow2.f32 %v1068_v15 }
 0x530   :  { %v6527_v16 = vpop.eup %5959  ;;  %v1227_v30 = vand.u32 %v6462_v37, %v1122_v25 }
 0x531   :  { %v1181_v0 = vand.u32 %v6462_v37, %v1121_v63  ;;  %v1087_v7 = vsel %vm1023_vm8, %v6527_v16, 0.0 }
 0x533   :  { %5410 = vmatpush3.bf16.msra.mxu1 %v1181_v0 }
 0x534   :  { %5421 = vmatprep.subr.bf16.mxu1 %v6086_v61 }
 0x53b   :  { %621 = vrot.lane.b32.xlu1 %v6517_v4, %s6088_s2 }
 0x544   :  { %613 = vrot.lane.b32.xlu0 %v6446_v27, %s7661_s6  ;;  %v6529_v27 = vpop.eup %5961 }
 0x545   :  { %v6533_v10 = vpop.eup %5963  ;;  %v1084_v20 = vsel %vm1023_vm8, %v6529_v27, 0.0 }
 0x546   :  { %v1093_v18 = vsel %vm1023_vm8, %v6533_v10, 0.0  ;;  %v6539_v21 = vpop.eup %5965 }
 0x547   :  { %v1090_v22 = vsel %vm1023_vm8, %v6539_v21, 0.0 }
 0x55f   :  { %1088 = vadd.xlane.f32.xlu1 %v1087_v7  ;;  %v1074_v17 = vpop.xlane.xlu0 %1073 }
 0x560   :  { %5967 = vrcp.f32 %v1074_v17 }
 0x563   :  { %1094 = vadd.xlane.f32.xlu1 %v1093_v18  ;;  %1085 = vadd.xlane.f32.xlu0 %v1084_v20  ;;  %v5739_v20 = vld [vmem:[%s7643_s9] sm:$0xff]  }
 0x567   :  { %1091 = vadd.xlane.f32.xlu1 %v1090_v22  ;;  %v5741_v22 = vld [vmem:[%s7643_s9 + $0x10] sm:$0xff]  }
 0x56a   :  { %v5968_v24 = vpop.eup %5967 }
 0x56b   :  { %v1104_v28 = vmul.f32 %v5968_v24, %v6496_v40 }
 0x56d   :  { %v1112_v29 = vpack.c.bf16 %v1104_v28, %v1104_v28 }
 0x56f   :  { %5406 = vmatmul.mubr.msk.bf16.vlgmr.msra.gmra.mrb[24].mxu0 %vm1128_vm9, %v1112_v29 }
 0x570   :  { %5416 = vmatpush3.bf16.msra.mxu0 %v1227_v30  ;;  %5417 = vmatprep.mubr.msk.bf16.mxu0 %vm6087_vm5, %v6086_v61 }
 0x571   :  { %5427 = vmatprep.subr.bf16.mxu0 %v6086_v61 }
 0x578   :  { %627 = vrot.lane.b32.xlu1 %v6517_v4, %s7661_s6 }
 0x579   :  { %624 = vrot.lane.b32.xlu0 %v6517_v4, %s6089_s24 }
 0x5b0   :  { %v1077_v32 = vpop.xlane.xlu1 %1076 }
 0x5b1   :  { %5969 = vrcp.f32 %v1077_v32 }
 0x5b7   :  { %v1083_v33 = vpop.xlane.xlu1 %1082 }
 0x5b8   :  { %5971 = vrcp.f32 %v1083_v33 }
 0x5bb   :  { %v5970_v34 = vpop.eup %5969  ;;  %v1080_v36 = vpop.xlane.xlu0 %1079 }
 0x5bc   :  { %v1105_v38 = vmul.f32 %v5970_v34, %v6500_v43  ;;  %5973 = vrcp.f32 %v1080_v36  ;;  %v622_v42 = vpop.permute.xlu1 %621 }
 0x5bd   :  { %v1125_v48 = vpack.c.bf16 %v622_v42, %v622_v42  ;;  %v5743_v42 = vld [vmem:[%s7643_s9 + $0x20] sm:$0xff]  }
 0x5be   :  { %v1113_v40 = vpack.c.bf16 %v1105_v38, %v1105_v38 }
 0x5bf   :  { %v614_v41 = vpop.permute.xlu0 %613  ;;  %v1365_v43 = vand.u32 %v6462_v37, %v1125_v48 }
 0x5c0   :  { %v1123_v44 = vpack.c.bf16 %v614_v41, %v614_v41  ;;  %5412 = vmatmul.mubr.msk.bf16.vlgmr.msra.gmra.mrb[20].mxu1 %vm1128_vm9, %v1113_v40  ;;  %v5742_v41 = vld [vmem:[%s7643_s9 + $0x18] sm:$0xff]  }
 0x5c1   :  { %5423 = vmatprep.mubr.msk.bf16.mxu1 %vm6087_vm5, %v6086_v61 }
 0x5c2   :  { %v5972_v45 = vpop.eup %5971  ;;  %v1273_v46 = vand.u32 %v6462_v37, %v1123_v44  ;;  %v5744_v44 = vld [vmem:[%s7643_s9 + $0x28] sm:$0xff]  }
 0x5c3   :  { %v1107_v47 = vmul.f32 %v5972_v45, %v6504_v57  ;;  %v1319_v57 = vand.u32 %v6462_v37, %v1124_v52 }
 0x5c4   :  { %5422 = vmatpush3.bf16.msra.mxu1 %v1273_v46 }
 0x5c5   :  { %5433 = vmatprep.subr.bf16.mxu1 %v6086_v61  ;;  %v1115_v50 = vpack.c.bf16 %v1107_v47, %v1107_v47 }
 0x5c6   :  { %v5974_v51 = vpop.eup %5973 }
 0x5c7   :  { %v1106_v54 = vmul.f32 %v5974_v51, %v6508_v59  ;;  %v5745_v51 = vld [vmem:[%s7643_s9 + $0x30] sm:$0xff]  }
 0x5c8   :  { %5424 = vmatmul.mubr.msk.bf16.vlgmr.msra.gmra.mrb[24].mxu1 %vm1128_vm9, %v1115_v50 }
 0x5c9   :  { %5434 = vmatpush3.bf16.msra.mxu1 %v1365_v43  ;;  %v1114_v55 = vpack.c.bf16 %v1106_v54, %v1106_v54  ;;  %5435 = vmatprep.mubr.msk.bf16.mxu1 %vm6087_vm5, %v6086_v61 }
 0x5ca   :  { %5445 = vmatprep.subr.bf16.mxu1 %v6086_v61 }
 0x5cb   :  { %5418 = vmatmul.mubr.msk.bf16.vlgmr.msra.gmra.mrb[28].mxu0 %vm1128_vm9, %v1114_v55 }
 0x5cc   :  { %5428 = vmatpush3.bf16.msra.mxu0 %v1319_v57  ;;  %5429 = vmatprep.mubr.msk.bf16.mxu0 %vm6087_vm5, %v6086_v61 }
 0x5cd   :  { %5439 = vmatprep.subr.bf16.mxu0 %v6086_v61 }
 0x5ec   :  { %v1089_v49 = vpop.xlane.xlu1 %1088 }
 0x5ed   :  { %5975 = vrcp.f32 %v1089_v49  ;;  %v5746_v49 = vld [vmem:[%s7643_s9 + $0x38] sm:$0xff]  }
 0x5f0   :  { %v1095_v56 = vpop.xlane.xlu1 %1094  ;;  %v1086_v59 = vpop.xlane.xlu0 %1085 }
 0x5f1   :  { %5977 = vrcp.f32 %v1095_v56 }
 0x5f2   :  { %5979 = vrcp.f32 %v1086_v59 }
 0x5f4   :  { %v1092_v60 = vpop.xlane.xlu1 %1091  ;;  %v625_v2 = vpop.permute.xlu0 %624 }
 0x5f5   :  { %5981 = vrcp.f32 %v1092_v60  ;;  %v1126_v9 = vpack.c.bf16 %v625_v2, %v625_v2 }
 0x5f7   :  { %v5976_v62 = vpop.eup %5975  ;;  %v1411_v14 = vand.u32 %v6462_v37, %v1126_v9 }
 0x5f8   :  { %v1109_v63 = vmul.f32 %v5976_v62, %v6527_v16  ;;  %v628_v0 = vpop.permute.xlu1 %627 }
 0x5f9   :  { %v1127_v3 = vpack.c.bf16 %v628_v0, %v628_v0 }
 0x5fa   :  { %v1117_v4 = vpack.c.bf16 %v1109_v63, %v1109_v63 }
 0x5fb   :  { %v5978_v5 = vpop.eup %5977  ;;  %v1457_v6 = vand.u32 %v6462_v37, %v1127_v3 }
 0x5fc   :  { %v5980_v8 = vpop.eup %5979  ;;  %5436 = vmatmul.mubr.msk.bf16.vlgmr.msra.gmra.mrb[28].mxu1 %vm1128_vm9, %v1117_v4  ;;  %v1111_v58 = vmul.f32 %v5978_v5, %v6533_v10 }
 0x5fd   :  { %v1108_v11 = vmul.f32 %v5980_v8, %v6529_v27  ;;  %5446 = vmatpush3.bf16.msra.mxu1 %v1457_v6  ;;  %5447 = vmatprep.mubr.msk.bf16.mxu1 %vm6087_vm5, %v6086_v61 }
 0x5fe   :  { %v1119_v15 = vpack.c.bf16 %v1111_v58, %v1111_v58 }
 0x5ff   :  { %v1116_v12 = vpack.c.bf16 %v1108_v11, %v1108_v11  ;;  %v5982_v13 = vpop.eup %5981 }
 0x600   :  { %v1110_v16 = vmul.f32 %v5982_v13, %v6539_v21  ;;  %v5740_v21 = vld [vmem:[%s7643_s9 + $0x8] sm:$0xff]  }
 0x601   :  { %5430 = vmatmul.mubr.msk.bf16.vlgmr.msra.gmra.mrb[32].mxu0 %vm1128_vm9, %v1116_v12 }
 0x602   :  { %5440 = vmatpush3.bf16.msra.mxu0 %v1411_v14  ;;  %5441 = vmatprep.mubr.msk.bf16.mxu0 %vm6087_vm5, %v6086_v61  ;;  %v1118_v27 = vpack.c.bf16 %v1110_v16, %v1110_v16 }
 0x603   :  { %5451 = vmatprep.subr.bf16.mxu0 %v6086_v61 }
 0x604   :  { %5448 = vmatmul.mubr.msk.bf16.vlgmr.msra.gmra.mrb[32].mxu1 %vm1128_vm9, %v1119_v15 }
 0x605   :  { %1938 = vmatprep.mubr.bf16.mxu1 %v6085_v1 }
 0x609   :  { %5442 = vmatmul.mubr.msk.bf16.vlgmr.msra.gmra.mrb[36].mxu0 %vm1128_vm9, %v1118_v27 }
 0x60a   :  { %5467 = vmatprep.mubr.msk.bf16.mxu0 %vm6087_vm5, %v6086_v61  ;;  %5452 = vmatpush3.bf16.msra.mxu0 %v5739_v20 }
 0x60b   :  { %5453 = vmatprep.subr.bf16.mxu0 %v6086_v61 }
 0x60e   :  { %5454 = vmatpush3.bf16.msra.mxu0 %v5740_v21 }
 0x60f   :  { %5455 = vmatprep.subr.bf16.mxu0 %v6086_v61 }
 0x612   :  { %5456 = vmatpush3.bf16.msra.mxu0 %v5741_v22 }
 0x613   :  { %5457 = vmatprep.subr.bf16.mxu0 %v6086_v61 }
 0x616   :  { %5458 = vmatpush3.bf16.msra.mxu0 %v5742_v41  ;;  %v5756_v41 = vld [vmem:[%s7647_s13 + $0x28] ss:$16 sps:$4 sm:$0xff]  }
 0x617   :  { %5459 = vmatprep.subr.bf16.mxu0 %v6086_v61 }
 0x61a   :  { %5460 = vmatpush3.bf16.msra.mxu0 %v5743_v42 }
 0x61b   :  { %5461 = vmatprep.subr.bf16.mxu0 %v6086_v61 }
 0x61e   :  { %5462 = vmatpush3.bf16.msra.mxu0 %v5744_v44 }
 0x61f   :  { %5463 = vmatprep.subr.bf16.mxu0 %v6086_v61 }
 0x622   :  { %5464 = vmatpush3.bf16.msra.mxu0 %v5745_v51 }
 0x623   :  { %5465 = vmatprep.subr.bf16.mxu0 %v6086_v61 }
 0x626   :  { %5466 = vmatpush3.bf16.msra.mxu0 %v5746_v49  ;;  %v5767_v49 = vld [vmem:[%s7647_s13 + $0x64] ss:$16 sps:$4 sm:$0xff]  }
 0x642   :  { %v6591_v7 = vpop.f32.mrb[24].mxu0 }
 0x643   :  { %v5407_v10 = vpop.f32.mrb[25].mxu0 }
 0x644   :  { %v1174_v17 = vpop.f32.mrb[26].mxu0 }
 0x645   :  { %v5408_v18 = vpop.f32.mrb[27].mxu0 }
 0x693   :  { %v1217_v23 = vpop.f32.mrb[20].mxu1 }
 0x694   :  { %v5413_v24 = vpop.f32.mrb[21].mxu1 }
 0x695   :  { %v1220_v25 = vpop.f32.mrb[22].mxu1 }
 0x696   :  { %v5414_v28 = vpop.f32.mrb[23].mxu1 }
 0x69b   :  { %v1309_v29 = vpop.f32.mrb[24].mxu1 }
 0x69c   :  { %v5425_v30 = vpop.f32.mrb[25].mxu1 }
 0x69d   :  { %v1312_v32 = vpop.f32.mrb[26].mxu1 }
 0x69e   :  { %v1263_v33 = vpop.f32.mrb[28].mxu0  ;;  %v5426_v34 = vpop.f32.mrb[27].mxu1 }
 0x69f   :  { %v5419_v36 = vpop.f32.mrb[29].mxu0  ;;  %v5750_v34 = vld [vmem:[%s7647_s13 + $0x8] ss:$16 sps:$4 sm:$0xff]  }
 0x6a0   :  { %v1266_v38 = vpop.f32.mrb[30].mxu0  ;;  %v5755_v36 = vld [vmem:[%s7647_s13 + $0x24] ss:$16 sps:$4 sm:$0xff]  }
 0x6a1   :  { %v5420_v40 = vpop.f32.mrb[31].mxu0  ;;  %v5758_v38 = vld [vmem:[%s7647_s13 + $0x2c] ss:$16 sps:$4 sm:$0xff]  }
 0x6a2   :  { %v5753_v40 = vld [vmem:[%s7647_s13 + $0x20] ss:$16 sps:$4 sm:$0xff]  }
 0x6cf   :  { %v1401_v45 = vpop.f32.mrb[28].mxu1 }
 0x6d0   :  { %v5675_v46 = vpack.i.bf16 %v1217_v23, %v1401_v45  ;;  %v5437_v47 = vpop.f32.mrb[29].mxu1 }
 0x6d1   :  { %v1404_v48 = vpop.f32.mrb[30].mxu1 }
 0x6d2   :  { %5676 = vrot.lane.b32.xlu0 %v5675_v46, %s7661_s6  ;;  %v5438_v50 = vpop.f32.mrb[31].mxu1 }
 0x6d4   :  { %v1355_v52 = vpop.f32.mrb[32].mxu0 }
 0x6d5   :  { %v5431_v43 = vpop.f32.mrb[33].mxu0 }
 0x6d6   :  { %v1358_v54 = vpop.f32.mrb[34].mxu0  ;;  %v5761_v43 = vld [vmem:[%s7647_s13 + $0x44] ss:$16 sps:$4 sm:$0xff]  }
 0x6d7   :  { %v5432_v55 = vpop.f32.mrb[35].mxu0  ;;  %v1493_v57 = vpop.f32.mrb[32].mxu1  ;;  %v5764_v54 = vld [vmem:[%s7647_s13 + $0x4c] ss:$16 sps:$4 sm:$0xff]  }
 0x6d8   :  { %1524 = vrot.lane.b32.xlu0 %v1493_v57, %s6088_s2  ;;  %v5449_v56 = vpop.f32.mrb[33].mxu1  ;;  %v5759_v55 = vld [vmem:[%s7647_s13 + $0x40] ss:$16 sps:$4 sm:$0xff]   ;;  %v5762_v57 = vld [vmem:[%s7647_s13 + $0x48] ss:$16 sps:$4 sm:$0xff]  }
 0x6d9   :  { %v1496_v59 = vpop.f32.mrb[34].mxu1  ;;  %v5770_v56 = vld [vmem:[%s7647_s13 + $0x6c] ss:$16 sps:$4 sm:$0xff]  }
 0x6da   :  { %v5450_v60 = vpop.f32.mrb[35].mxu1  ;;  %v5765_v59 = vld [vmem:[%s7647_s13 + $0x60] ss:$16 sps:$4 sm:$0xff]  }
 0x6db   :  { %v5768_v60 = vld [vmem:[%s7647_s13 + $0x68] ss:$16 sps:$4 sm:$0xff]  }
 0x6dc   :  { %v1447_v62 = vpop.f32.mrb[36].mxu0 }
 0x6dd   :  { %v5680_v63 = vpack.i.bf16 %v1263_v33, %v1447_v62  ;;  %v5443_v0 = vpop.f32.mrb[37].mxu0  ;;  %v5747_v33 = vld [vmem:[%s7647_s13] ss:$16 sps:$4 sm:$0xff]   ;;  %v5773_v62 = vld [vmem:[%s7647_s13 + $0x84] ss:$16 sps:$4 sm:$0xff]  }
 0x6de   :  { %v1450_v2 = vpop.f32.mrb[38].mxu0  ;;  %v5771_v0 = vld [vmem:[%s7647_s13 + $0x80] ss:$16 sps:$4 sm:$0xff]  }
 0x6df   :  { %5681 = vrot.lane.b32.xlu1 %v5680_v63, %s6089_s24  ;;  %v5444_v3 = vpop.f32.mrb[39].mxu0  ;;  %v5776_v63 = vld [vmem:[%s7647_s13 + $0x8c] ss:$16 sps:$4 sm:$0xff]   ;;  %v5774_v2 = vld [vmem:[%s7647_s13 + $0x88] ss:$16 sps:$4 sm:$0xff]  }
 0x6e0   :  { %v5779_v3 = vld [vmem:[%s7647_s13 + $0xa4] ss:$16 sps:$4 sm:$0xff]  }
 0x6e3   :  { %1508 = vrot.lane.b32.xlu1 %v1309_v29, %s6088_s2 }
 0x744   :  { %v5677_v4 = vpop.permute.xlu0 %5676 }
 0x745   :  { %v5679_v5 = vunpack.i.h.bf16 %v5677_v4  ;;  %v5678_v6 = vunpack.i.l.bf16 %v5677_v4  ;;  %v5782_v4 = vld [vmem:[%s7647_s13 + $0xac] ss:$16 sps:$4 sm:$0xff]  }
 0x747   :  { %v1527_v58 = vsel %vm646_vm6, %v1355_v52, %v5678_v6  ;;  %v1511_v12 = vsel %vm646_vm6, %v6591_v7, %v5679_v5  ;;  %v4781_v7 = vld [vmem:[%s7644_s10] ss:$0 sm:$0xff]  ;;  %v5780_v6 = vld [vmem:[%s7647_s13 + $0xa8] ss:$16 sps:$4 sm:$0xff]  }
 0x748   :  { %v5777_v5 = vld [vmem:[%s7647_s13 + $0xa0] ss:$16 sps:$4 sm:$0xff]  }
 0x74a   :  { %v1525_v13 = vpop.permute.xlu0 %1524 }
 0x751   :  { %v5682_v8 = vpop.permute.xlu1 %5681 }
 0x752   :  { %v5684_v9 = vunpack.i.h.bf16 %v5682_v8  ;;  %v5683_v11 = vunpack.i.l.bf16 %v5682_v8  ;;  %v5785_v8 = vld [vmem:[%s7647_s13 + $0xc4] ss:$16 sps:$4 sm:$0xff]  }
 0x754   :  { %v1528_v14 = vsel %vm179_vm0, %v1527_v58, %v5683_v11  ;;  %v1512_v15 = vsel %vm179_vm0, %v1511_v12, %v5684_v9  ;;  %v5788_v9 = vld [vmem:[%s7647_s13 + $0xcc] ss:$16 sps:$4 sm:$0xff]   ;;  %v5783_v11 = vld [vmem:[%s7647_s13 + $0xc0] ss:$16 sps:$4 sm:$0xff]   ;;  %v5786_v58 = vld [vmem:[%s7647_s13 + $0xc8] ss:$16 sps:$4 sm:$0xff]  }
 0x755   :  { %v1509_v16 = vpop.permute.xlu1 %1508  ;;  %v1529_v27 = vsel %vm1513_vm10, %v1528_v14, %v1525_v13  ;;  %v5791_v12 = vld [vmem:[%s7647_s13 + $0xe4] ss:$16 sps:$4 sm:$0xff]   ;;  %v5794_v13 = vld [vmem:[%s7647_s13 + $0xec] ss:$16 sps:$4 sm:$0xff]   ;;  %v5789_v14 = vld [vmem:[%s7647_s13 + $0xe0] ss:$16 sps:$4 sm:$0xff]  }
 0x756   :  { %v1514_v10 = vsel %vm1513_vm10, %v1512_v15, %v1509_v16  ;;  %v1531_v17 = vrot.slane %v1529_v27, 3  ;;  %v5792_v15 = vld [vmem:[%s7647_s13 + $0xe8] ss:$16 sps:$4 sm:$0xff]  }
 0x758   :  { %v1533_v18 = vsel %vm247_vm3, %v1514_v10, %v1531_v17 }
 0x759   :  { %v1534_v20 = vpack.c.bf16 %v1531_v17, %v1533_v18 }
 0x75b   :  { %5468 = vmatmul.mubr.bf16.vlgmr.msra.gmra.mrb[40].mxu0 %v1534_v20 }
 0x75c   :  { %1981 = vmatprep.mubr.bf16.mxu0 %v6085_v1 }
 0x82e   :  { %v1640_v21 = vpop.f32.mrb[40].mxu0 }
 0x82f   :  { %v1641_v22 = vadd.f32 %v4781_v7, %v1640_v21  ;;  %v5469_v23 = vpop.f32.mrb[41].mxu0 }
 0x830   :  { %v1643_v24 = vpop.f32.mrb[42].mxu0 }
 0x831   :  { %v6641_v25 = vadd.f32 %v1641_v22, %v6287_v39  ;;  %v1644_v28 = vadd.f32 %v4781_v7, %v1643_v24  ;;  %v5470_v29 = vpop.f32.mrb[43].mxu0  ;;  %v5749_v39 = vld [vmem:[%s7647_s13 + $0x4] ss:$16 sps:$4 sm:$0xff]   ;;  %v4790_v22 = vld [vmem:[%s7645_s11] ss:$0 sm:$0xff] }
 0x832   :  { %1906 = vmatprep.subr.bf16.mxu1 %v5749_v39  ;;  %v4791_v29 = vld [vmem:[%s7646_s12] ss:$0 sm:$0xff] }
 0x833   :  { %v6644_v30 = vadd.f32 %v1644_v28, %v6280_v35  ;;  %1651 = vadd.xlane.f32.xlu1 %v6641_v25  ;;  %v5752_v35 = vld [vmem:[%s7647_s13 + $0xc] ss:$16 sps:$4 sm:$0xff]   ;;  %1907 = vmatpush1.bf16.msra.mxu1 %v5747_v33 }
 0x834   :  { %1949 = vmatprep.subr.bf16.mxu0 %v5752_v35  ;;  %1908 = vmatprep.subr.bf16.mxu1 %v5755_v36  ;;  %v5795_v35 = vld [vmem:[%s7649_s15 + $0x40] sm:$0xff]  }
 0x835   :  { %v1653_v32 = vsel %vm255_vm1, %v6644_v30, 0.0  ;;  %1950 = vmatpush1.bf16.msra.mxu0 %v5750_v34  ;;  %v5796_v36 = vld [vmem:[%s7649_s15 + $0xc0] sm:$0xff]  }
 0x836   :  { %1654 = vadd.xlane.f32.xlu0 %v1653_v32  ;;  %1951 = vmatprep.subr.bf16.mxu0 %v5758_v38  ;;  %v5797_v38 = vld [vmem:[%s7649_s15] sm:$0xff]  }
 0x837   :  { %1909 = vmatpush1.bf16.msra.mxu1 %v5753_v40  ;;  %v5798_v40 = vld [vmem:[%s7649_s15 + $0x80] sm:$0xff]  }
 0x838   :  { %1910 = vmatprep.subr.bf16.mxu1 %v5761_v43  ;;  %v5809_v43 = vld [vmem:[%s7649_s15 + $0x18] sm:$0xff]  }
 0x839   :  { %1952 = vmatpush1.bf16.msra.mxu0 %v5756_v41  ;;  %v5799_v41 = vld [vmem:[%s7649_s15 + $0x48] sm:$0xff]  }
 0x83a   :  { %1953 = vmatprep.subr.bf16.mxu0 %v5764_v54  ;;  %v5810_v54 = vld [vmem:[%s7649_s15 + $0x98] sm:$0xff]  }
 0x83b   :  { %1911 = vmatpush1.bf16.msra.mxu1 %v5759_v55  ;;  %v5811_v55 = vld [vmem:[%s7649_s15 + $0x60] sm:$0xff]  }
 0x83c   :  { %1912 = vmatprep.subr.bf16.mxu1 %v5767_v49  ;;  %v5813_v49 = vld [vmem:[%s7649_s15 + $0x20] sm:$0xff]  }
 0x83d   :  { %1954 = vmatpush1.bf16.msra.mxu0 %v5762_v57  ;;  %v5812_v57 = vld [vmem:[%s7649_s15 + $0xe0] sm:$0xff]  }
 0x83e   :  { %1955 = vmatprep.subr.bf16.mxu0 %v5770_v56  ;;  %v5814_v56 = vld [vmem:[%s7649_s15 + $0xa0] sm:$0xff]  }
 0x83f   :  { %1913 = vmatpush1.bf16.msra.mxu1 %v5765_v59  ;;  %v5815_v59 = vld [vmem:[%s7649_s15 + $0x68] sm:$0xff]  }
 0x840   :  { %1914 = vmatprep.subr.bf16.mxu1 %v5773_v62  ;;  %v5817_v62 = vld [vmem:[%s7649_s15 + $0x28] sm:$0xff]  }
 0x841   :  { %1956 = vmatpush1.bf16.msra.mxu0 %v5768_v60  ;;  %v5816_v60 = vld [vmem:[%s7649_s15 + $0xe8] sm:$0xff]  }
 0x842   :  { %1957 = vmatprep.subr.bf16.mxu0 %v5776_v63  ;;  %v5818_v63 = vld [vmem:[%s7649_s15 + $0xa8] sm:$0xff]  }
 0x843   :  { %1915 = vmatpush1.bf16.msra.mxu1 %v5771_v0  ;;  %v5819_v0 = vld [vmem:[%s7649_s15 + $0x70] sm:$0xff]  }
 0x844   :  { %1916 = vmatprep.subr.bf16.mxu1 %v5779_v3  ;;  %v5821_v3 = vld [vmem:[%s7649_s15 + $0x30] sm:$0xff]  }
 0x845   :  { %1958 = vmatpush1.bf16.msra.mxu0 %v5774_v2  ;;  %v5820_v2 = vld [vmem:[%s7649_s15 + $0xf0] sm:$0xff]  }
 0x846   :  { %1959 = vmatprep.subr.bf16.mxu0 %v5782_v4  ;;  %v5822_v4 = vld [vmem:[%s7649_s15 + $0xb0] sm:$0xff]  }
 0x847   :  { %1917 = vmatpush1.bf16.msra.mxu1 %v5777_v5  ;;  %v5823_v5 = vld [vmem:[%s7649_s15 + $0x78] sm:$0xff]  }
 0x848   :  { %1918 = vmatprep.subr.bf16.mxu1 %v5785_v8  ;;  %v5825_v8 = vld [vmem:[%s7649_s15 + $0x38] sm:$0xff]  }
 0x849   :  { %1960 = vmatpush1.bf16.msra.mxu0 %v5780_v6  ;;  %v5824_v6 = vld [vmem:[%s7649_s15 + $0xf8] sm:$0xff]  }
 0x84a   :  { %1961 = vmatprep.subr.bf16.mxu0 %v5788_v9  ;;  %v5826_v9 = vld [vmem:[%s7649_s15 + $0xb8] sm:$0xff]  }
 0x84b   :  { %1919 = vmatpush1.bf16.msra.mxu1 %v5783_v11  ;;  %v1724_v11 = vld [vmem:[%s7648_s14] sm:$0xf] }
 0x84c   :  { %1920 = vmatprep.subr.bf16.mxu1 %v5791_v12  ;;  %v1729_v12 = vrot.slane %v1724_v11, %v6277_v26 }
 0x84d   :  { %1962 = vmatpush1.bf16.msra.mxu0 %v5786_v58  ;;  %v1740_v58 = vsub.s32 3, %v6268_v19 }
 0x84e   :  { %1963 = vmatprep.subr.bf16.mxu0 %v5794_v13  ;;  %v1737_v13 = vrot.slane %v1724_v11, %v6420_v53 }
 0x84f   :  { %1921 = vmatpush1.bf16.msra.mxu1 %v5789_v14  ;;  %v1733_v14 = vrot.slane %v1724_v11, %v6391_v31 }
 0x850   :  { %5180 = vmatprep.subr.bf16.mxu1 %v5795_v35 }
 0x851   :  { %1964 = vmatpush1.bf16.msra.mxu0 %v5792_v15  ;;  %v1741_v15 = vrot.slane %v1724_v11, %v1740_v58 }
 0x852   :  { %5202 = vmatprep.subr.bf16.mxu0 %v5796_v36 }
 0x8c0   :  { %v1652_v42 = vpop.xlane.xlu1 %1651 }
 0x8c1   :  { %v1656_v44 = vmul.f32 0.0078125, %v1652_v42  ;;  %v5800_v42 = vld [vmem:[%s7649_s15 + $0xc8] sm:$0xff]  }
 0x8c3   :  { %v6674_v45 = vsub.f32 %v6641_v25, %v1656_v44  ;;  %v1655_v46 = vpop.xlane.xlu0 %1654  ;;  %v5801_v44 = vld [vmem:[%s7649_s15 + $0x8] sm:$0xff]  }
 0x8c4   :  { %v1657_v47 = vmul.f32 0.0078125, %v1655_v46  ;;  %v5803_v46 = vld [vmem:[%s7649_s15 + $0x50] sm:$0xff]  }
 0x8c5   :  { %v1660_v48 = vmul.f32 %v6674_v45, %v6674_v45 }
 0x8c6   :  { %v6679_v50 = vsub.f32 %v6644_v30, %v1657_v47  ;;  %v5804_v47 = vld [vmem:[%s7649_s15 + $0xd0] sm:$0xff]  }
 0x8c7   :  { %1662 = vadd.xlane.f32.xlu0 %v1660_v48  ;;  %v5805_v48 = vld [vmem:[%s7649_s15 + $0x10] sm:$0xff]  }
 0x8c8   :  { %v1661_v51 = vmul.f32 %v6679_v50, %v6679_v50 }
 0x8ca   :  { %v1664_v52 = vsel %vm255_vm1, %v1661_v51, 0.0  ;;  %v5807_v51 = vld [vmem:[%s7649_s15 + $0x58] sm:$0xff]  }
 0x8cb   :  { %1665 = vadd.xlane.f32.xlu0 %v1664_v52  ;;  %v5808_v52 = vld [vmem:[%s7649_s15 + $0xd8] sm:$0xff]  }
 0x954   :  { %v1663_v16 = vpop.xlane.xlu0 %1662 }
 0x955   :  { %v1667_v27 = vmul.f32 0.0078125, %v1663_v16 }
 0x957   :  { %v1669_v10 = vadd.f32 1e-06, %v1667_v27 }
 0x958   :  { %v1666_v17 = vpop.xlane.xlu0 %1665 }
 0x959   :  { %5983 = vrsqrt.f32 %v1669_v10  ;;  %v1668_v18 = vmul.f32 0.0078125, %v1666_v17 }
 0x95b   :  { %v1670_v20 = vadd.f32 1e-06, %v1668_v18 }
 0x95d   :  { %5985 = vrsqrt.f32 %v1670_v20 }
 0x963   :  { %v5984_v7 = vpop.eup %5983 }
 0x964   :  { %v1673_v21 = vmul.f32 %v5984_v7, %v6674_v45  ;;  %v5802_v45 = vld [vmem:[%s7649_s15 + $0x88] sm:$0xff]  }
 0x966   :  { %v1681_v28 = vmul.f32 %v4790_v22, %v1673_v21 }
 0x967   :  { %v5986_v23 = vpop.eup %5985 }
 0x968   :  { %v1674_v24 = vmul.f32 %v5986_v23, %v6679_v50  ;;  %v1689_v33 = vadd.f32 %v4791_v29, %v1681_v28  ;;  %v5806_v50 = vld [vmem:[%s7649_s15 + $0x90] sm:$0xff]  }
 0x96a   :  { %v1682_v32 = vmul.f32 %v4790_v22, %v1674_v24 }
 0x96c   :  { %v1690_v39 = vadd.f32 %v4791_v29, %v1682_v32 }
 0x96e   :  { %v1691_v34 = vpack.c.bf16 %v1690_v39, %v1689_v33 }
 0x970   :  { %1939 = vmatmul.mubr.bf16.vlgmr.msra.gmra.mrb[36].mxu1 %v1691_v34  ;;  %1982 = vmatmul.mubr.bf16.vlgmr.msra.gmra.mrb[44].mxu0 %v1691_v34 }
 0x971   :  { %5181 = vmatpush3.bf16.msra.mxu1 %v5797_v38  ;;  %5203 = vmatpush3.bf16.msra.mxu0 %v5798_v40 }
 0x972   :  { %5182 = vmatprep.subr.bf16.mxu1 %v5799_v41  ;;  %5204 = vmatprep.subr.bf16.mxu0 %v5800_v42 }
 0x975   :  { %5183 = vmatpush3.bf16.msra.mxu1 %v5801_v44  ;;  %5205 = vmatpush3.bf16.msra.mxu0 %v5802_v45 }
 0x976   :  { %5184 = vmatprep.subr.bf16.mxu1 %v5803_v46  ;;  %5206 = vmatprep.subr.bf16.mxu0 %v5804_v47 }
 0x979   :  { %5185 = vmatpush3.bf16.msra.mxu1 %v5805_v48  ;;  %5207 = vmatpush3.bf16.msra.mxu0 %v5806_v50 }
 0x97a   :  { %5186 = vmatprep.subr.bf16.mxu1 %v5807_v51  ;;  %5208 = vmatprep.subr.bf16.mxu0 %v5808_v52 }
 0x97d   :  { %5187 = vmatpush3.bf16.msra.mxu1 %v5809_v43  ;;  %5209 = vmatpush3.bf16.msra.mxu0 %v5810_v54 }
 0x97e   :  { %5188 = vmatprep.subr.bf16.mxu1 %v5811_v55  ;;  %5210 = vmatprep.subr.bf16.mxu0 %v5812_v57 }
 0x981   :  { %5189 = vmatpush3.bf16.msra.mxu1 %v5813_v49  ;;  %5211 = vmatpush3.bf16.msra.mxu0 %v5814_v56 }
 0x982   :  { %5190 = vmatprep.subr.bf16.mxu1 %v5815_v59  ;;  %5212 = vmatprep.subr.bf16.mxu0 %v5816_v60 }
 0x985   :  { %5191 = vmatpush3.bf16.msra.mxu1 %v5817_v62  ;;  %5213 = vmatpush3.bf16.msra.mxu0 %v5818_v63 }
 0x986   :  { %5192 = vmatprep.subr.bf16.mxu1 %v5819_v0  ;;  %5214 = vmatprep.subr.bf16.mxu0 %v5820_v2 }
 0x989   :  { %5193 = vmatpush3.bf16.msra.mxu1 %v5821_v3  ;;  %5215 = vmatpush3.bf16.msra.mxu0 %v5822_v4 }
 0x98a   :  { %5194 = vmatprep.subr.bf16.mxu1 %v5823_v5  ;;  %5216 = vmatprep.subr.bf16.mxu0 %v5824_v6 }
 0x98d   :  { %5195 = vmatpush3.bf16.msra.mxu1 %v5825_v8  ;;  %5217 = vmatpush3.bf16.msra.mxu0 %v5826_v9 }
 0x98e   :  { %5471 = vmatprep.subr.bf16.mxu0 %v6086_v61 }
 0xa43   :  { %v1940_v16 = vpop.f32.mrb[36].mxu1  ;;  %v1983_v27 = vpop.f32.mrb[44].mxu0 }
 0xa44   :  { %v6870_v10 = vadd.f32 %v1940_v16, %v1729_v12  ;;  %v6872_v17 = vadd.f32 %v1983_v27, %v1737_v13  ;;  %v1942_v18 = vpop.f32.mrb[37].mxu1  ;;  %v1985_v20 = vpop.f32.mrb[45].mxu0 }
 0xa45   :  { %v6874_v7 = vadd.f32 %v1942_v18, %v1733_v14  ;;  %v6876_v21 = vadd.f32 %v1985_v20, %v1741_v15  ;;  %v1944_v22 = vpop.f32.mrb[38].mxu1  ;;  %v1987_v23 = vpop.f32.mrb[46].mxu0 }
 0xa46   :  { %v1992_v24 = vmul.f32 %v6870_v10, %v6870_v10  ;;  %v1994_v28 = vmul.f32 %v6872_v17, %v6872_v17  ;;  %v6882_v29 = vadd.f32 %v1944_v22, %v1729_v12  ;;  %v6884_v32 = vadd.f32 %v1987_v23, %v1737_v13  ;;  %v1946_v33 = vpop.f32.mrb[39].mxu1  ;;  %v1989_v39 = vpop.f32.mrb[47].mxu0 }
 0xa47   :  { %v1993_v34 = vmul.f32 %v6874_v7, %v6874_v7  ;;  %v1995_v35 = vmul.f32 %v6876_v21, %v6876_v21  ;;  %v6890_v36 = vadd.f32 %v1946_v33, %v1733_v14  ;;  %v6892_v38 = vadd.f32 %v1989_v39, %v1741_v15 }
 0xa48   :  { %v2000_v40 = vmul.f32 %v1992_v24, %v6870_v10  ;;  %v2002_v41 = vmul.f32 %v1994_v28, %v6872_v17  ;;  %v1996_v42 = vmul.f32 %v6882_v29, %v6882_v29  ;;  %v1998_v44 = vmul.f32 %v6884_v32, %v6884_v32 }
 0xa49   :  { %v2001_v45 = vmul.f32 %v1993_v34, %v6874_v7  ;;  %v2003_v46 = vmul.f32 %v1995_v35, %v6876_v21  ;;  %v1997_v47 = vmul.f32 %v6890_v36, %v6890_v36  ;;  %v1999_v48 = vmul.f32 %v6892_v38, %v6892_v38 }
 0xa4a   :  { %v2008_v50 = vmul.f32 0.044715, %v2000_v40  ;;  %v2010_v51 = vmul.f32 0.044715, %v2002_v41  ;;  %v2004_v52 = vmul.f32 %v1996_v42, %v6882_v29  ;;  %v2006_v43 = vmul.f32 %v1998_v44, %v6884_v32 }
 0xa4b   :  { %v2009_v54 = vmul.f32 0.044715, %v2001_v45  ;;  %v2011_v55 = vmul.f32 0.044715, %v2003_v46  ;;  %v2005_v57 = vmul.f32 %v1997_v47, %v6890_v36  ;;  %v2007_v49 = vmul.f32 %v1999_v48, %v6892_v38 }
 0xa4c   :  { %v2016_v56 = vadd.f32 %v2008_v50, %v6870_v10  ;;  %v2018_v59 = vadd.f32 %v2010_v51, %v6872_v17  ;;  %v2012_v60 = vmul.f32 0.044715, %v2004_v52  ;;  %v2014_v62 = vmul.f32 0.044715, %v2006_v43 }
 0xa4d   :  { %v2017_v63 = vadd.f32 %v2009_v54, %v6874_v7  ;;  %v2019_v0 = vadd.f32 %v2011_v55, %v6876_v21  ;;  %v2013_v2 = vmul.f32 0.044715, %v2005_v57  ;;  %v2015_v3 = vmul.f32 0.044715, %v2007_v49 }
 0xa4e   :  { %v2024_v4 = vmul.f32 0.7978846, %v2016_v56  ;;  %v2026_v5 = vmul.f32 0.7978846, %v2018_v59  ;;  %v2020_v6 = vadd.f32 %v2012_v60, %v6882_v29  ;;  %v2022_v8 = vadd.f32 %v2014_v62, %v6884_v32 }
 0xa4f   :  { %v2025_v9 = vmul.f32 0.7978846, %v2017_v63  ;;  %v2027_v11 = vmul.f32 0.7978846, %v2019_v0  ;;  %v2021_v12 = vadd.f32 %v2013_v2, %v6890_v36  ;;  %v2023_v13 = vadd.f32 %v2015_v3, %v6892_v38 }
 0xa50   :  { %5987 = vtanh.f32 %v2024_v4  ;;  %v2028_v14 = vmul.f32 0.7978846, %v2020_v6  ;;  %v2030_v15 = vmul.f32 0.7978846, %v2022_v8 }
 0xa51   :  { %5989 = vtanh.f32 %v2026_v5  ;;  %v2029_v16 = vmul.f32 0.7978846, %v2021_v12  ;;  %v2031_v27 = vmul.f32 0.7978846, %v2023_v13 }
 0xa52   :  { %5991 = vtanh.f32 %v2025_v9 }
 0xa53   :  { %5993 = vtanh.f32 %v2027_v11 }
 0xa54   :  { %5995 = vtanh.f32 %v2028_v14 }
 0xa55   :  { %5997 = vtanh.f32 %v2030_v15 }
 0xa56   :  { %5999 = vtanh.f32 %v2029_v16 }
 0xa57   :  { %6001 = vtanh.f32 %v2031_v27 }
 0xa5a   :  { %v5988_v18 = vpop.eup %5987 }
 0xa5b   :  { %v5990_v20 = vpop.eup %5989  ;;  %v2040_v22 = vadd.f32 1.0, %v5988_v18 }
 0xa5c   :  { %v5992_v23 = vpop.eup %5991  ;;  %v2042_v24 = vadd.f32 1.0, %v5990_v20 }
 0xa5d   :  { %v5994_v28 = vpop.eup %5993  ;;  %v2041_v33 = vadd.f32 1.0, %v5992_v23  ;;  %v2048_v40 = vmul.f32 0.5, %v2040_v22  ;;  %v5827_v22 = vld [vmem:[%s7641_s7 + $0xc0] ss:$12 sps:$4 sm:$0xff]   ;;  %v5829_v23 = vld [vmem:[%s7641_s7 + $0xc4] ss:$12 sps:$4 sm:$0xff]  }
 0xa5e   :  { %v5996_v39 = vpop.eup %5995  ;;  %v2043_v34 = vadd.f32 1.0, %v5994_v28  ;;  %v2050_v44 = vmul.f32 0.5, %v2042_v24  ;;  %2639 = vmatprep.subr.bf16.mxu1 %v5829_v23  ;;  %v5831_v24 = vld [vmem:[%s7641_s7 + $0xd8] ss:$12 sps:$4 sm:$0xff]  }
 0xa5f   :  { %v5998_v35 = vpop.eup %5997  ;;  %v2044_v41 = vadd.f32 1.0, %v5996_v39  ;;  %v2049_v50 = vmul.f32 0.5, %v2041_v33  ;;  %v2056_v54 = vmul.f32 %v2048_v40, %v6870_v10 }
 0xa60   :  { %v6000_v42 = vpop.eup %5999  ;;  %v2046_v45 = vadd.f32 1.0, %v5998_v35  ;;  %v2051_v43 = vmul.f32 0.5, %v2043_v34  ;;  %v2058_v49 = vmul.f32 %v2050_v44, %v6872_v17 }
 0xa61   :  { %v6002_v46 = vpop.eup %6001  ;;  %v2052_v47 = vmul.f32 0.5, %v2044_v41  ;;  %v2045_v48 = vadd.f32 1.0, %v6000_v42  ;;  %v2057_v60 = vmul.f32 %v2049_v50, %v6874_v7  ;;  %v5841_v50 = vld [vmem:[%s7641_s7 + $0x10c] ss:$12 sps:$4 sm:$0xff]  }
 0xa62   :  { %v2054_v51 = vmul.f32 0.5, %v2046_v45  ;;  %v2047_v52 = vadd.f32 1.0, %v6002_v46  ;;  %v2059_v0 = vmul.f32 %v2051_v43, %v6876_v21  ;;  %v4824_v21 = vld [vmem:[%s7650_s16] ss:$0 sm:$0xff]  ;;  %v5845_v43 = vld [vmem:[%s7641_s7 + $0x124] ss:$12 sps:$4 sm:$0xff]  }
 0xa63   :  { %v2060_v55 = vmul.f32 %v2052_v47, %v6882_v29  ;;  %v2053_v57 = vmul.f32 0.5, %v2045_v48  ;;  %v5834_v45 = vld [vmem:[%s7641_s7 + $0xe0] ss:$12 sps:$4 sm:$0xff]   ;;  %v5835_v47 = vld [vmem:[%s7641_s7 + $0xf0] ss:$12 sps:$4 sm:$0xff]  }
 0xa64   :  { %v2062_v56 = vmul.f32 %v2054_v51, %v6884_v32  ;;  %v2055_v59 = vmul.f32 0.5, %v2047_v52  ;;  %v5837_v46 = vld [vmem:[%s7641_s7 + $0xf4] ss:$12 sps:$4 sm:$0xff]   ;;  %v5838_v48 = vld [vmem:[%s7641_s7 + $0xf8] ss:$12 sps:$4 sm:$0xff]  }
 0xa65   :  { %v2061_v62 = vmul.f32 %v2053_v57, %v6890_v36  ;;  %v2064_v63 = vpack.c.bf16 %v2060_v55, %v2056_v54  ;;  %v5839_v51 = vld [vmem:[%s7641_s7 + $0x108] ss:$12 sps:$4 sm:$0xff]   ;;  %v5842_v52 = vld [vmem:[%s7641_s7 + $0x110] ss:$12 sps:$4 sm:$0xff]   ;;  %v5843_v54 = vld [vmem:[%s7641_s7 + $0x120] ss:$12 sps:$4 sm:$0xff]  }
 0xa66   :  { %v2063_v2 = vmul.f32 %v2055_v59, %v6892_v38  ;;  %v2066_v3 = vpack.c.bf16 %v2062_v56, %v2058_v49  ;;  %v5846_v55 = vld [vmem:[%s7641_s7 + $0x128] ss:$12 sps:$4 sm:$0xff]   ;;  %v5847_v49 = vld [vmem:[%s7641_s7 + $0x138] ss:$12 sps:$4 sm:$0xff]   ;;  %v5850_v56 = vld [vmem:[%s7641_s7 + $0x140] ss:$12 sps:$4 sm:$0xff]  }
 0xa67   :  { %v2065_v4 = vpack.c.bf16 %v2061_v62, %v2057_v60  ;;  %v5849_v57 = vld [vmem:[%s7641_s7 + $0x13c] ss:$12 sps:$4 sm:$0xff]   ;;  %v5853_v59 = vld [vmem:[%s7641_s7 + $0x154] ss:$12 sps:$4 sm:$0xff]   ;;  %v5854_v62 = vld [vmem:[%s7641_s7 + $0x158] ss:$12 sps:$4 sm:$0xff]  }
 0xa68   :  { %v2067_v10 = vpack.c.bf16 %v2063_v2, %v2059_v0  ;;  %v5851_v60 = vld [vmem:[%s7641_s7 + $0x150] ss:$12 sps:$4 sm:$0xff]   ;;  %v5855_v0 = vld [vmem:[%s7641_s7 + $0x168] ss:$12 sps:$4 sm:$0xff]  }
 0xa69   :  { %2363 = vmatprep.mubr.bf16.mxu1 %v2065_v4  ;;  %v5858_v2 = vld [vmem:[%s7641_s7 + $0x170] ss:$12 sps:$4 sm:$0xff]  }
 0xa6a   :  { %2404 = vmatprep.mubr.bf16.mxu0 %v2067_v10  ;;  %2364 = vmatmul.mubr.bf16.vlgmr.msra.gmra.mrb[40].mxu1 %v2064_v63  ;;  %v5857_v63 = vld [vmem:[%s7641_s7 + $0x16c] ss:$12 sps:$4 sm:$0xff]  }
 0xa6b   :  { %2405 = vmatmul.mubr.bf16.vlgmr.msra.gmra.mrb[48].mxu0 %v2066_v3  ;;  %2671 = vmatprep.mubr.bf16.mxu1 %v6085_v1 }
 0xa6c   :  { %5487 = vmatprep.mubr.msk.bf16.mxu0 %vm6087_vm5, %v6086_v61  ;;  %2640 = vmatpush1.bf16.msra.mxu1 %v5827_v22 }
 0xb3d   :  { %v5196_v17 = vpop.f32.mrb[40].mxu1 }
 0xb3e   :  { %v5218_v7 = vpop.f32.mrb[48].mxu0  ;;  %v5197_v29 = vpop.f32.mrb[41].mxu1 }
 0xb3f   :  { %v5198_v32 = vadd.f32 %v5197_v29, %v5196_v17  ;;  %v5219_v36 = vpop.f32.mrb[49].mxu0  ;;  %v5199_v38 = vpop.f32.mrb[42].mxu1 }
 0xb40   :  { %v5220_v5 = vadd.f32 %v5219_v36, %v5218_v7  ;;  %v5221_v6 = vpop.f32.mrb[50].mxu0  ;;  %v5200_v8 = vpop.f32.mrb[43].mxu1  ;;  %v4859_v36 = vld [vmem:[%s7675_s3 + $0x1] ss:$0 sm:$0xff] }
 0xb41   :  { %v2366_v9 = vadd.f32 %v5198_v32, %v4824_v21  ;;  %v5201_v11 = vadd.f32 %v5200_v8, %v5199_v38  ;;  %v5222_v12 = vpop.f32.mrb[51].mxu0  ;;  %v4860_v8 = vld [vmem:[%s7676_s4 + $0x1] ss:$0 sm:$0xff] }
 0xb42   :  { %v5223_v13 = vadd.f32 %v5222_v12, %v5221_v6 }
 0xb43   :  { %v2407_v14 = vadd.f32 %v5220_v5, %v2366_v9  ;;  %v2369_v15 = vadd.f32 %v5201_v11, %v4824_v21 }
 0xb45   :  { %v2410_v16 = vadd.f32 %v5223_v13, %v2369_v15  ;;  %v6933_v27 = vadd.f32 %v2407_v14, %v6641_v25  ;;  %v5830_v25 = vld [vmem:[%s7641_s7 + $0xc8] ss:$12 sps:$4 sm:$0xff]   ;;  %v4893_v14 = vld [vmem:[%s7642_s8 + $0x3] sm:$0x7]  ;;  %s7677_s8 = smov 32  }
 0xb46   :  { %5472 = vmatpush3.bf16.msra.mxu0 %v5830_v25  ;;  %v2499_v15 = vrot.slane %v4893_v14, %v6277_v26  ;;  %v7053_v25 = vrot.slane %v4893_v14, %v6420_v53 }
 0xb47   :  { %v6936_v18 = vadd.f32 %v2410_v16, %v6644_v30  ;;  %2419 = vadd.xlane.f32.xlu1 %v6933_v27  ;;  %v5833_v30 = vld [vmem:[%s7641_s7 + $0xdc] ss:$12 sps:$4 sm:$0xff]   ;;  %5473 = vmatprep.subr.bf16.mxu0 %v6086_v61  ;;  %v2503_v16 = vrot.slane %v4893_v14, %v6391_v31 }
 0xb48   :  { %2641 = vmatprep.subr.bf16.mxu1 %v5833_v30 }
 0xb49   :  { %v2421_v20 = vsel %vm255_vm1, %v6936_v18, 0.0  ;;  %2642 = vmatpush1.bf16.msra.mxu1 %v5831_v24 }
 0xb4a   :  { %2422 = vadd.xlane.f32.xlu0 %v2421_v20  ;;  %5474 = vmatpush3.bf16.msra.mxu0 %v5834_v45 }
 0xb4b   :  { %5475 = vmatprep.subr.bf16.mxu0 %v6086_v61  ;;  %2643 = vmatprep.subr.bf16.mxu1 %v5837_v46 }
 0xb4d   :  { %2644 = vmatpush1.bf16.msra.mxu1 %v5835_v47 }
 0xb4e   :  { %5476 = vmatpush3.bf16.msra.mxu0 %v5838_v48  ;;  %2645 = vmatprep.subr.bf16.mxu1 %v5841_v50 }
 0xb4f   :  { %5477 = vmatprep.subr.bf16.mxu0 %v6086_v61 }
 0xb51   :  { %2646 = vmatpush1.bf16.msra.mxu1 %v5839_v51 }
 0xb52   :  { %5478 = vmatpush3.bf16.msra.mxu0 %v5842_v52  ;;  %2647 = vmatprep.subr.bf16.mxu1 %v5845_v43 }
 0xb53   :  { %5479 = vmatprep.subr.bf16.mxu0 %v6086_v61 }
 0xb55   :  { %2648 = vmatpush1.bf16.msra.mxu1 %v5843_v54 }
 0xb56   :  { %5480 = vmatpush3.bf16.msra.mxu0 %v5846_v55  ;;  %2649 = vmatprep.subr.bf16.mxu1 %v5849_v57 }
 0xb57   :  { %5481 = vmatprep.subr.bf16.mxu0 %v6086_v61 }
 0xb59   :  { %2650 = vmatpush1.bf16.msra.mxu1 %v5847_v49 }
 0xb5a   :  { %5482 = vmatpush3.bf16.msra.mxu0 %v5850_v56  ;;  %2651 = vmatprep.subr.bf16.mxu1 %v5853_v59 }
 0xb5b   :  { %5483 = vmatprep.subr.bf16.mxu0 %v6086_v61 }
 0xb5d   :  { %2652 = vmatpush1.bf16.msra.mxu1 %v5851_v60 }
 0xb5e   :  { %5484 = vmatpush3.bf16.msra.mxu0 %v5854_v62  ;;  %2653 = vmatprep.subr.bf16.mxu1 %v5857_v63 }
 0xb5f   :  { %5485 = vmatprep.subr.bf16.mxu0 %v6086_v61 }
 0xb61   :  { %2654 = vmatpush1.bf16.msra.mxu1 %v5855_v0 }
 0xb62   :  { %5486 = vmatpush3.bf16.msra.mxu0 %v5858_v2  ;;  %5491 = vmatprep.subr.bf16.mxu1 %v6086_v61 }
 0xb63   :  { %5515 = vmatprep.subr.bf16.mxu0 %v6086_v61 }
 0xbd4   :  { %v2420_v28 = vpop.xlane.xlu1 %2419 }
 0xbd5   :  { %v2424_v33 = vmul.f32 0.0078125, %v2420_v28 }
 0xbd7   :  { %v6958_v39 = vsub.f32 %v6933_v27, %v2424_v33  ;;  %v2423_v34 = vpop.xlane.xlu0 %2422 }
 0xbd8   :  { %v2425_v35 = vmul.f32 0.0078125, %v2423_v34 }
 0xbd9   :  { %v2428_v40 = vmul.f32 %v6958_v39, %v6958_v39 }
 0xbda   :  { %v6963_v41 = vsub.f32 %v6936_v18, %v2425_v35 }
 0xbdb   :  { %2430 = vadd.xlane.f32.xlu0 %v2428_v40 }
 0xbdc   :  { %v2429_v42 = vmul.f32 %v6963_v41, %v6963_v41 }
 0xbde   :  { %v2432_v44 = vsel %vm255_vm1, %v2429_v42, 0.0 }
 0xbdf   :  { %2433 = vadd.xlane.f32.xlu1 %v2432_v44 }
 0xc68   :  { %v2431_v3 = vpop.xlane.xlu0 %2430 }
 0xc69   :  { %v2435_v4 = vmul.f32 0.0078125, %v2431_v3 }
 0xc6b   :  { %v2437_v10 = vadd.f32 1e-06, %v2435_v4 }
 0xc6c   :  { %v2434_v17 = vpop.xlane.xlu1 %2433 }
 0xc6d   :  { %6003 = vrsqrt.f32 %v2437_v10  ;;  %v2436_v7 = vmul.f32 0.0078125, %v2434_v17 }
 0xc6f   :  { %v2438_v21 = vadd.f32 1e-06, %v2436_v7 }
 0xc71   :  { %6005 = vrsqrt.f32 %v2438_v21 }
 0xc77   :  { %v6004_v29 = vpop.eup %6003 }
 0xc78   :  { %v2441_v32 = vmul.f32 %v6004_v29, %v6958_v39 }
 0xc7a   :  { %v2449_v6 = vmul.f32 %v4859_v36, %v2441_v32 }
 0xc7b   :  { %v6006_v38 = vpop.eup %6005 }
 0xc7c   :  { %v2442_v5 = vmul.f32 %v6006_v38, %v6963_v41  ;;  %v2457_v11 = vadd.f32 %v4860_v8, %v2449_v6 }
 0xc7e   :  { %v2450_v9 = vmul.f32 %v4859_v36, %v2442_v5 }
 0xc80   :  { %v2458_v12 = vadd.f32 %v4860_v8, %v2450_v9 }
 0xc82   :  { %v2459_v13 = vpack.c.bf16 %v2458_v12, %v2457_v11 }
 0xc84   :  { %2672 = vmatmul.mubr.bf16.vlgmr.msra.gmra.mrb[44].mxu1 %v2459_v13  ;;  %5488 = vmatmul.mubr.bf16.vlgmr.msra.gmra.mrb[52].mxu0 %v2459_v13 }
 0xc85   :  { %5493 = vmatprep.mubr.msk.bf16.mxu1 %vm6087_vm5, %v6086_v61  ;;  %5517 = vmatprep.mubr.msk.bf16.mxu0 %vm6087_vm5, %v6086_v61 }
 0xd57   :  { %v2673_v20 = vpop.f32.mrb[44].mxu1  ;;  %v7050_v22 = vpop.f32.mrb[52].mxu0 }
 0xd58   :  { %v2674_v23 = vadd.f32 %v2673_v20, %v2499_v15  ;;  %v2675_v30 = vpop.f32.mrb[45].mxu1  ;;  %v5489_v24 = vpop.f32.mrb[53].mxu0  ;;  %v7091_v36 = vadd.f32 %v7050_v22, %v7053_v25 }
 0xd59   :  { %v2676_v28 = vadd.f32 %v2675_v30, %v2503_v16  ;;  %v2677_v33 = vpop.f32.mrb[46].mxu1  ;;  %v2719_v39 = vpop.f32.mrb[54].mxu0 }
 0xd5a   :  { %v2678_v34 = vadd.f32 %v2677_v33, %v2499_v15  ;;  %v7056_v35 = vadd.f32 %v2719_v39, %v7053_v25  ;;  %v2679_v40 = vpop.f32.mrb[47].mxu1  ;;  %v5490_v41 = vpop.f32.mrb[55].mxu0  ;;  %2724 = vrot.lane.b32.xlu1 %v2674_v23, %s6088_s2  ;;  %v2734_v46 = vrot.slane %v2674_v23, 5  ;;  %v2795_v55 = vpack.c.bf16 %v2674_v23, %v2674_v23 }
 0xd5b   :  { %v2680_v42 = vadd.f32 %v2679_v40, %v2503_v16  ;;  %2748 = vrot.lane.b32.xlu0 %v2676_v28, %s6088_s2  ;;  %v2803_v44 = vpack.c.bf16 %v2676_v28, %v2676_v28  ;;  %v2758_v50 = vrot.slane %v2676_v28, 5  ;;  %v3283_v9 = vpack.c.bf16 %v7091_v36, %v7091_v36 }
 0xd5c   :  { %v2735_v45 = vrot.slane %v2678_v34, 5 }
 0xd5d   :  { %v2759_v47 = vrot.slane %v2680_v42, 5  ;;  %v2815_v48 = vsel %vm646_vm6, %v2803_v44, 0  ;;  %v3295_v14 = vand.u32 %v3283_v9, %v6462_v37 }
 0xd5e   :  { %5492 = vmatpush3.bf16.xpose.msra.mxu1 %v2815_v48  ;;  %2751 = vrot.lane.b32.xlu1 %v2676_v28, %s6089_s24  ;;  %v2736_v51 = vsel %vm568_vm7, %v2734_v46, %v2735_v45 }
 0xd5f   :  { %2754 = vrot.lane.b32.xlu0 %v2676_v28, %s7677_s8  ;;  %v2760_v52 = vsel %vm568_vm7, %v2758_v50, %v2759_v47  ;;  %5497 = vmatprep.subr.bf16.mxu1 %v6086_v61  ;;  %v2799_v57 = vpack.c.bf16 %v2736_v51, %v2736_v51 }
 0xd60   :  { %v2807_v43 = vpack.c.bf16 %v2760_v52, %v2760_v52 }
 0xd62   :  { %2727 = vrot.lane.b32.xlu1 %v2674_v23, %s6089_s24  ;;  %v2999_v54 = vsel %vm646_vm6, %v2807_v43, 0 }
 0xd63   :  { %2762 = vrot.lane.b32.xlu0 %v2760_v52, %s6088_s2  ;;  %5516 = vmatpush3.bf16.xpose.msra.mxu0 %v2999_v54 }
 0xd64   :  { %5527 = vmatprep.subr.bf16.mxu0 %v6086_v61 }
 0xd65   :  { %5494 = vmatmul.mubr.msk.bf16.vlgmr.msra.gmra.mrb[48].mxu1 %vm646_vm6, %v2795_v55 }
 0xd66   :  { %2730 = vrot.lane.b32.xlu1 %v2674_v23, %s7677_s8  ;;  %5499 = vmatprep.mubr.msk.bf16.mxu1 %vm6087_vm5, %v6086_v61 }
 0xd67   :  { %2738 = vrot.lane.b32.xlu0 %v2736_v51, %s6088_s2 }
 0xd6a   :  { %2765 = vrot.lane.b32.xlu1 %v2760_v52, %s6089_s24  ;;  %5518 = vmatmul.mubr.msk.bf16.vlgmr.msra.gmra.mrb[56].mxu0 %vm646_vm6, %v2799_v57 }
 0xd6b   :  { %2741 = vrot.lane.b32.xlu0 %v2736_v51, %s6089_s24  ;;  %5529 = vmatprep.mubr.msk.bf16.mxu0 %vm6087_vm5, %v6086_v61 }
 0xd6e   :  { %2768 = vrot.lane.b32.xlu1 %v2760_v52, %s7677_s8 }
 0xd72   :  { %2744 = vrot.lane.b32.xlu1 %v2736_v51, %s7677_s8 }
 0xdcc   :  { %v2725_v49 = vpop.permute.xlu1 %2724 }
 0xdcd   :  { %v2749_v56 = vpop.permute.xlu0 %2748  ;;  %v2796_v3 = vpack.c.bf16 %v2725_v49, %v2725_v49 }
 0xdce   :  { %v2804_v59 = vpack.c.bf16 %v2749_v56, %v2749_v56 }
 0xdd0   :  { %v2861_v60 = vsel %vm646_vm6, %v2804_v59, 0  ;;  %v2752_v62 = vpop.permute.xlu1 %2751 }
 0xdd1   :  { %v2755_v63 = vpop.permute.xlu0 %2754  ;;  %5498 = vmatpush3.bf16.xpose.msra.mxu1 %v2861_v60  ;;  %v2805_v0 = vpack.c.bf16 %v2752_v62, %v2752_v62 }
 0xdd2   :  { %5503 = vmatprep.subr.bf16.mxu1 %v6086_v61  ;;  %v2806_v7 = vpack.c.bf16 %v2755_v63, %v2755_v63 }
 0xdd3   :  { %v2907_v10 = vsel %vm646_vm6, %v2805_v0, 0 }
 0xdd4   :  { %v2728_v2 = vpop.permute.xlu1 %2727  ;;  %v2953_v6 = vsel %vm646_vm6, %v2806_v7, 0 }
 0xdd5   :  { %v2763_v4 = vpop.permute.xlu0 %2762  ;;  %v2797_v38 = vpack.c.bf16 %v2728_v2, %v2728_v2 }
 0xdd6   :  { %v2808_v11 = vpack.c.bf16 %v2763_v4, %v2763_v4 }
 0xdd8   :  { %v2731_v17 = vpop.permute.xlu1 %2730  ;;  %5500 = vmatmul.mubr.msk.bf16.vlgmr.msra.gmra.mrb[52].mxu1 %vm646_vm6, %v2796_v3  ;;  %v3045_v15 = vsel %vm646_vm6, %v2808_v11, 0 }
 0xdd9   :  { %5504 = vmatpush3.bf16.xpose.msra.mxu1 %v2907_v10  ;;  %5505 = vmatprep.mubr.msk.bf16.mxu1 %vm6087_vm5, %v6086_v61  ;;  %v2739_v21 = vpop.permute.xlu0 %2738  ;;  %v2798_v13 = vpack.c.bf16 %v2731_v17, %v2731_v17 }
 0xdda   :  { %5509 = vmatprep.subr.bf16.mxu1 %v6086_v61  ;;  %v2800_v22 = vpack.c.bf16 %v2739_v21, %v2739_v21 }
 0xddc   :  { %v2766_v29 = vpop.permute.xlu1 %2765 }
 0xddd   :  { %v2809_v32 = vpack.c.bf16 %v2766_v29, %v2766_v29  ;;  %v2742_v8 = vpop.permute.xlu0 %2741 }
 0xdde   :  { %v2801_v12 = vpack.c.bf16 %v2742_v8, %v2742_v8 }
 0xddf   :  { %v3091_v5 = vsel %vm646_vm6, %v2809_v32, 0 }
 0xde0   :  { %5506 = vmatmul.mubr.msk.bf16.vlgmr.msra.gmra.mrb[56].mxu1 %vm646_vm6, %v2797_v38  ;;  %5528 = vmatpush3.bf16.xpose.msra.mxu0 %v3091_v5  ;;  %v2769_v16 = vpop.permute.xlu1 %2768 }
 0xde1   :  { %5510 = vmatpush3.bf16.xpose.msra.mxu1 %v2953_v6  ;;  %5511 = vmatprep.mubr.msk.bf16.mxu1 %vm6087_vm5, %v6086_v61  ;;  %v2810_v20 = vpack.c.bf16 %v2769_v16, %v2769_v16 }
 0xde2   :  { %5539 = vmatprep.subr.bf16.mxu0 %v6086_v61  ;;  %5521 = vmatprep.subr.bf16.mxu1 %v6086_v61 }
 0xde3   :  { %v3137_v23 = vsel %vm646_vm6, %v2810_v20, 0 }
 0xde4   :  { %v2745_v25 = vpop.permute.xlu1 %2744 }
 0xde5   :  { %v2802_v30 = vpack.c.bf16 %v2745_v25, %v2745_v25 }
 0xde7   :  { %5530 = vmatmul.mubr.msk.bf16.vlgmr.msra.gmra.mrb[60].mxu0 %vm646_vm6, %v2801_v12 }
 0xde8   :  { %5512 = vmatmul.mubr.msk.bf16.vlgmr.msra.gmra.mrb[60].mxu1 %vm646_vm6, %v2798_v13  ;;  %5540 = vmatpush3.bf16.msra.mxu0 %v3295_v14 }
 0xde9   :  { %5522 = vmatpush3.bf16.xpose.msra.mxu1 %v3045_v15  ;;  %5523 = vmatprep.mubr.msk.bf16.mxu1 %vm6087_vm5, %v6086_v61 }
 0xdea   :  { %5533 = vmatprep.subr.bf16.mxu1 %v6086_v61  ;;  %5541 = vmatprep.mubr.msk.bf16.mxu0 %vm6087_vm5, %v6086_v61 }
 0xdeb   :  { %5551 = vmatprep.subr.bf16.mxu0 %v6086_v61 }
 0xdf0   :  { %5524 = vmatmul.mubr.msk.bf16.vlgmr.msra.gmra.mrb[64].mxu1 %vm646_vm6, %v2800_v22 }
 0xdf1   :  { %5534 = vmatpush3.bf16.xpose.msra.mxu1 %v3137_v23  ;;  %5535 = vmatprep.mubr.msk.bf16.mxu1 %vm6087_vm5, %v6086_v61 }
 0xdf2   :  { %5545 = vmatprep.subr.bf16.mxu1 %v6086_v61 }
 0xdf8   :  { %5536 = vmatmul.mubr.msk.bf16.vlgmr.msra.gmra.mrb[68].mxu1 %vm646_vm6, %v2802_v30 }
 0xdf9   :  { %5547 = vmatprep.mubr.msk.bf16.mxu1 %vm6087_vm5, %v6086_v61 }
 0xe38   :  { %v2851_v24 = vpop.f32.mrb[48].mxu1 }
 0xe39   :  { %v3179_v28 = vmul.f32 0.17677669, %v2851_v24  ;;  %v5495_v33 = vpop.f32.mrb[49].mxu1 }
 0xe3a   :  { %v2854_v39 = vpop.f32.mrb[50].mxu1 }
 0xe3b   :  { %v5496_v34 = vpop.f32.mrb[51].mxu1  ;;  %v3187_v40 = vsel %vm1023_vm8, %v3179_v28, -inf }
 0xe3c   :  { %3188 = vmax.xlane.f32.xlu0 %v3187_v40 }
 0xe3d   :  { %v3035_v41 = vpop.f32.mrb[56].mxu0 }
 0xe3e   :  { %v5519_v42 = vpop.f32.mrb[57].mxu0  ;;  %v3183_v10 = vmul.f32 0.17677669, %v3035_v41 }
 0xe3f   :  { %v3038_v44 = vpop.f32.mrb[58].mxu0 }
 0xe40   :  { %v5520_v45 = vpop.f32.mrb[59].mxu0  ;;  %v3199_v29 = vsel %vm1023_vm8, %v3183_v10, -inf }
 0xeab   :  { %v2897_v46 = vpop.f32.mrb[52].mxu1 }
 0xeac   :  { %v3180_v47 = vmul.f32 0.17677669, %v2897_v46  ;;  %v5501_v48 = vpop.f32.mrb[53].mxu1 }
 0xead   :  { %v2900_v50 = vpop.f32.mrb[54].mxu1 }
 0xeae   :  { %v5502_v51 = vpop.f32.mrb[55].mxu1  ;;  %v3190_v52 = vsel %vm1023_vm8, %v3180_v47, -inf }
 0xeaf   :  { %3191 = vmax.xlane.f32.xlu1 %v3190_v52 }
 0xeb3   :  { %v2943_v43 = vpop.f32.mrb[56].mxu1 }
 0xeb4   :  { %v3181_v54 = vmul.f32 0.17677669, %v2943_v43  ;;  %v5507_v55 = vpop.f32.mrb[57].mxu1 }
 0xeb5   :  { %v2946_v57 = vpop.f32.mrb[58].mxu1 }
 0xeb6   :  { %v5508_v49 = vpop.f32.mrb[59].mxu1  ;;  %v3193_v56 = vsel %vm1023_vm8, %v3181_v54, -inf }
 0xeb7   :  { %3194 = vmax.xlane.f32.xlu0 %v3193_v56 }
 0xeba   :  { %v3127_v59 = vpop.f32.mrb[60].mxu0 }
 0xebb   :  { %v2989_v60 = vpop.f32.mrb[60].mxu1  ;;  %v5531_v62 = vpop.f32.mrb[61].mxu0  ;;  %v3185_v21 = vmul.f32 0.17677669, %v3127_v59 }
 0xebc   :  { %v7123_v63 = vmul.f32 0.17677669, %v2989_v60  ;;  %v5513_v0 = vpop.f32.mrb[61].mxu1  ;;  %v3130_v2 = vpop.f32.mrb[62].mxu0 }
 0xebd   :  { %v2992_v3 = vpop.f32.mrb[62].mxu1  ;;  %v5532_v4 = vpop.f32.mrb[63].mxu0  ;;  %v3205_v11 = vsel %vm1023_vm8, %v3185_v21, -inf  ;;  %v2783_v0 = vrot.slane %v7056_v35, 5  ;;  %v2782_v2 = vrot.slane %v7091_v36, 5 }
 0xebe   :  { %v5514_v17 = vpop.f32.mrb[63].mxu1  ;;  %v3196_v7 = vsel %vm1023_vm8, %v7123_v63, -inf }
 0xebf   :  { %3197 = vmax.xlane.f32.xlu0 %v3196_v7  ;;  %v2784_v3 = vsel %vm568_vm7, %v2782_v2, %v2783_v0 }
 0xec3   :  { %v3081_v32 = vpop.f32.mrb[64].mxu1  ;;  %3200 = vmax.xlane.f32.xlu0 %v3199_v29 }
 0xec4   :  { %v7128_v38 = vmul.f32 0.17677669, %v3081_v32  ;;  %v5525_v5 = vpop.f32.mrb[65].mxu1 }
 0xec5   :  { %v3084_v6 = vpop.f32.mrb[66].mxu1 }
 0xec6   :  { %v5526_v8 = vpop.f32.mrb[67].mxu1  ;;  %v3202_v9 = vsel %vm1023_vm8, %v7128_v38, -inf }
 0xec7   :  { %3203 = vmax.xlane.f32.xlu1 %v3202_v9  ;;  %3206 = vmax.xlane.f32.xlu0 %v3205_v11 }
 0xec9   :  { %v3189_v22 = vpop.xlane.xlu0 %3188 }
 0xeca   :  { %v3211_v23 = vsub.f32 %v3179_v28, %v3189_v22 }
 0xecb   :  { %v3173_v12 = vpop.f32.mrb[68].mxu1 }
 0xecc   :  { %v7133_v13 = vmul.f32 0.17677669, %v3173_v12  ;;  %v5537_v14 = vpop.f32.mrb[69].mxu1  ;;  %v3219_v25 = vmul.f32 1.442695, %v3211_v23 }
 0xecd   :  { %v3176_v15 = vpop.f32.mrb[70].mxu1 }
 0xece   :  { %v5538_v16 = vpop.f32.mrb[71].mxu1  ;;  %v3208_v20 = vsel %vm1023_vm8, %v7133_v13, -inf  ;;  %6007 = vpow2.f32 %v3219_v25 }
 0xecf   :  { %3209 = vmax.xlane.f32.xlu1 %v3208_v20 }
 0xed8   :  { %v6008_v30 = vpop.eup %6007 }
 0xed9   :  { %v3235_v24 = vsel %vm1023_vm8, %v6008_v30, 0.0 }
 0xedd   :  { %2772 = vrot.lane.b32.xlu0 %v7091_v36, %s6088_s2 }
 0xee0   :  { %2775 = vrot.lane.b32.xlu1 %v7091_v36, %s6089_s24 }
 0xefc   :  { %3236 = vadd.xlane.f32.xlu0 %v3235_v24 }
 0xf3c   :  { %v3192_v33 = vpop.xlane.xlu1 %3191 }
 0xf3d   :  { %v3212_v39 = vsub.f32 %v3180_v47, %v3192_v33 }
 0xf3f   :  { %v3221_v34 = vmul.f32 1.442695, %v3212_v39 }
 0xf41   :  { %6009 = vpow2.f32 %v3221_v34 }
 0xf44   :  { %v3195_v40 = vpop.xlane.xlu0 %3194 }
 0xf45   :  { %v3213_v45 = vsub.f32 %v3181_v54, %v3195_v40 }
 0xf47   :  { %v3223_v48 = vmul.f32 1.442695, %v3213_v45 }
 0xf4b   :  { %v7142_v41 = vpop.eup %6009 }
 0xf4c   :  { %v3198_v42 = vpop.xlane.xlu0 %3197  ;;  %v3238_v44 = vsel %vm1023_vm8, %v7142_v41, 0.0 }
 0xf4d   :  { %3239 = vadd.xlane.f32.xlu1 %v3238_v44  ;;  %v3214_v4 = vsub.f32 %v7123_v63, %v3198_v42 }
 0xf4f   :  { %v3225_v17 = vmul.f32 1.442695, %v3214_v4 }
 0xf50   :  { %v3201_v28 = vpop.xlane.xlu0 %3200 }
 0xf51   :  { %v3215_v46 = vsub.f32 %v3183_v10, %v3201_v28 }
 0xf53   :  { %v3227_v50 = vmul.f32 1.442695, %v3215_v46 }
 0xf54   :  { %v3207_v51 = vpop.xlane.xlu0 %3206  ;;  %v3204_v10 = vpop.xlane.xlu1 %3203 }
 0xf55   :  { %6011 = vpow2.f32 %v3227_v50  ;;  %v3217_v52 = vsub.f32 %v3185_v21, %v3207_v51  ;;  %v3216_v7 = vsub.f32 %v7128_v38, %v3204_v10 }
 0xf56   :  { %6013 = vpow2.f32 %v3223_v48 }
 0xf57   :  { %v3231_v47 = vmul.f32 1.442695, %v3217_v52  ;;  %v3229_v35 = vmul.f32 1.442695, %v3216_v7 }
 0xf58   :  { %v2773_v43 = vpop.permute.xlu0 %2772 }
 0xf59   :  { %v3284_v55 = vpack.c.bf16 %v2773_v43, %v2773_v43  ;;  %6015 = vpow2.f32 %v3231_v47 }
 0xf5b   :  { %v3341_v57 = vand.u32 %v3284_v55, %v6462_v37 }
 0xf5c   :  { %v3210_v29 = vpop.xlane.xlu1 %3209 }
 0xf5d   :  { %5546 = vmatpush3.bf16.msra.mxu1 %v3341_v57  ;;  %v3218_v32 = vsub.f32 %v7133_v13, %v3210_v29 }
 0xf5e   :  { %5557 = vmatprep.subr.bf16.mxu1 %v6086_v61 }
 0xf5f   :  { %v7148_v49 = vpop.eup %6011  ;;  %v3233_v5 = vmul.f32 1.442695, %v3218_v32 }
 0xf60   :  { %v3247_v54 = vsel %vm1023_vm8, %v7148_v49, 0.0  ;;  %v7152_v56 = vpop.eup %6013  ;;  %v2776_v6 = vpop.permute.xlu1 %2775 }
 0xf61   :  { %3248 = vadd.xlane.f32.xlu0 %v3247_v54  ;;  %v3241_v60 = vsel %vm1023_vm8, %v7152_v56, 0.0 }
 0xf63   :  { %v7154_v59 = vpop.eup %6015 }
 0xf64   :  { %v3253_v62 = vsel %vm1023_vm8, %v7154_v59, 0.0 }
 0xf65   :  { %3242 = vadd.xlane.f32.xlu0 %v3241_v60  ;;  %3254 = vadd.xlane.f32.xlu1 %v3253_v62 }
 0xf76   :  { %2786 = vrot.lane.b32.xlu1 %v2784_v3, %s6088_s2 }
 0xf7b   :  { %2778 = vrot.lane.b32.xlu0 %v7091_v36, %s7677_s8  ;;  %v3285_v36 = vpack.c.bf16 %v2776_v6, %v2776_v6 }
 0xf7d   :  { %v3387_v12 = vand.u32 %v3285_v36, %v6462_v37 }
 0xf7f   :  { %2789 = vrot.lane.b32.xlu0 %v2784_v3, %s6089_s24 }
 0xf89   :  { %v3237_v21 = vpop.xlane.xlu0 %3236 }
 0xf8a   :  { %6017 = vrcp.f32 %v3237_v21 }
 0xf8b   :  { %6019 = vpow2.f32 %v3225_v17 }
 0xf8c   :  { %6021 = vpow2.f32 %v3229_v35 }
 0xf8d   :  { %6023 = vpow2.f32 %v3233_v5 }
 0xf94   :  { %v6018_v8 = vpop.eup %6017 }
 0xf95   :  { %v3267_v9 = vmul.f32 %v6018_v8, %v6008_v30  ;;  %v7170_v11 = vpop.eup %6019 }
 0xf96   :  { %v3244_v38 = vsel %vm1023_vm8, %v7170_v11, 0.0  ;;  %v7178_v13 = vpop.eup %6021 }
 0xf97   :  { %v3275_v63 = vpack.c.bf16 %v3267_v9, %v3267_v9  ;;  %v3250_v14 = vsel %vm1023_vm8, %v7178_v13, 0.0  ;;  %v7183_v15 = vpop.eup %6023 }
 0xf98   :  { %v3256_v16 = vsel %vm1023_vm8, %v7183_v15, 0.0 }
 0xf99   :  { %5542 = vmatmul.mubr.msk.bf16.vlgmr.msra.gmra.mrb[64].mxu0 %vm1128_vm9, %v3275_v63 }
 0xf9a   :  { %5552 = vmatpush3.bf16.msra.mxu0 %v3387_v12  ;;  %5553 = vmatprep.mubr.msk.bf16.mxu0 %vm6087_vm5, %v6086_v61 }
 0xf9b   :  { %3245 = vadd.xlane.f32.xlu1 %v3244_v38  ;;  %5563 = vmatprep.subr.bf16.mxu0 %v6086_v61 }
 0xf9f   :  { %3251 = vadd.xlane.f32.xlu1 %v3250_v14 }
 0xfa3   :  { %3257 = vadd.xlane.f32.xlu1 %v3256_v16 }
 0xfb4   :  { %2792 = vrot.lane.b32.xlu1 %v2784_v3, %s7677_s8 }
 0xfda   :  { %v3240_v20 = vpop.xlane.xlu1 %3239 }
 0xfdb   :  { %6025 = vrcp.f32 %v3240_v20 }
 0xfe5   :  { %v6026_v22 = vpop.eup %6025 }
 0xfe6   :  { %v3268_v23 = vmul.f32 %v6026_v22, %v7142_v41  ;;  %v3287_v41 = vpack.c.bf16 %v2784_v3, %v2784_v3  ;;  %v5860_v22 = vld [vmem:[%s7643_s9 + $0x48] sm:$0xff]  }
 0xfe8   :  { %v3276_v25 = vpack.c.bf16 %v3268_v23, %v3268_v23  ;;  %v3479_v46 = vand.u32 %v3287_v41, %v6462_v37  ;;  %v5862_v41 = vld [vmem:[%s7643_s9 + $0x58] sm:$0xff]  }
 0xfea   :  { %5548 = vmatmul.mubr.msk.bf16.vlgmr.msra.gmra.mrb[72].mxu1 %vm1128_vm9, %v3276_v25 }
 0xfeb   :  { %5559 = vmatprep.mubr.msk.bf16.mxu1 %vm6087_vm5, %v6086_v61 }
 0xfee   :  { %v3249_v30 = vpop.xlane.xlu0 %3248 }
 0xff2   :  { %v3243_v24 = vpop.xlane.xlu0 %3242  ;;  %v3255_v40 = vpop.xlane.xlu1 %3254 }
 0xff3   :  { %6027 = vrcp.f32 %v3243_v24  ;;  %v5861_v24 = vld [vmem:[%s7643_s9 + $0x50] sm:$0xff]  }
 0xff4   :  { %6029 = vrcp.f32 %v3249_v30 }
 0xff5   :  { %6031 = vrcp.f32 %v3255_v40 }
 0xff6   :  { %v2779_v33 = vpop.permute.xlu0 %2778 }
 0xff7   :  { %v3286_v39 = vpack.c.bf16 %v2779_v33, %v2779_v33 }
 0xff9   :  { %v3433_v34 = vand.u32 %v3286_v39, %v6462_v37 }
 0xffa   :  { %v2790_v48 = vpop.permute.xlu0 %2789 }
 0xffb   :  { %5558 = vmatpush3.bf16.msra.mxu1 %v3433_v34  ;;  %v3289_v51 = vpack.c.bf16 %v2790_v48, %v2790_v48  ;;  %v5865_v48 = vld [vmem:[%s7643_s9 + $0x70] sm:$0xff]  }
 0xffc   :  { %5569 = vmatprep.subr.bf16.mxu1 %v6086_v61 }
 0xffd   :  { %v6028_v42 = vpop.eup %6027  ;;  %v3571_v43 = vand.u32 %v3289_v51, %v6462_v37 }
 0xffe   :  { %v3269_v44 = vmul.f32 %v6028_v42, %v7152_v56  ;;  %v6030_v28 = vpop.eup %6029 }
 0xfff   :  { %v3271_v50 = vmul.f32 %v6030_v28, %v7148_v49  ;;  %v6032_v47 = vpop.eup %6031  ;;  %v2787_v49 = vpop.permute.xlu1 %2786 }
0x1000   :  { %v3277_v45 = vpack.c.bf16 %v3269_v44, %v3269_v44  ;;  %v3273_v55 = vmul.f32 %v6032_v47, %v7154_v59  ;;  %v3288_v0 = vpack.c.bf16 %v2787_v49, %v2787_v49  ;;  %v5863_v44 = vld [vmem:[%s7643_s9 + $0x60] sm:$0xff]  }
0x1001   :  { %v3279_v52 = vpack.c.bf16 %v3271_v50, %v3271_v50 }
0x1002   :  { %5554 = vmatmul.mubr.msk.bf16.vlgmr.msra.gmra.mrb[68].mxu0 %vm1128_vm9, %v3277_v45  ;;  %v3281_v57 = vpack.c.bf16 %v3273_v55, %v3273_v55  ;;  %v3525_v4 = vand.u32 %v3288_v0, %v6462_v37  ;;  %v5864_v45 = vld [vmem:[%s7643_s9 + $0x68] sm:$0xff]  }
0x1003   :  { %5564 = vmatpush3.bf16.msra.mxu0 %v3479_v46  ;;  %5565 = vmatprep.mubr.msk.bf16.mxu0 %vm6087_vm5, %v6086_v61 }
0x1004   :  { %5575 = vmatprep.subr.bf16.mxu0 %v6086_v61 }
0x100a   :  { %5566 = vmatmul.mubr.msk.bf16.vlgmr.msra.gmra.mrb[72].mxu0 %vm1128_vm9, %v3279_v52  ;;  %v5866_v52 = vld [vmem:[%s7643_s9 + $0x78] sm:$0xff]  }
0x100b   :  { %5576 = vmatpush3.bf16.msra.mxu0 %v3571_v43  ;;  %5577 = vmatprep.mubr.msk.bf16.mxu0 %vm6087_vm5, %v6086_v61 }
0x100c   :  { %5587 = vmatprep.subr.bf16.mxu0 %v6086_v61 }
0x1012   :  { %5578 = vmatmul.mubr.msk.bf16.vlgmr.msra.gmra.mrb[76].mxu0 %vm1128_vm9, %v3281_v57 }
0x1013   :  { %5603 = vmatprep.mubr.msk.bf16.mxu0 %vm6087_vm5, %v6086_v61 }
0x1028   :  { %v3246_v54 = vpop.xlane.xlu1 %3245 }
0x1029   :  { %6033 = vrcp.f32 %v3246_v54 }
0x102c   :  { %v3252_v56 = vpop.xlane.xlu1 %3251 }
0x102d   :  { %6035 = vrcp.f32 %v3252_v56 }
0x1030   :  { %v3258_v60 = vpop.xlane.xlu1 %3257 }
0x1031   :  { %6037 = vrcp.f32 %v3258_v60 }
0x1033   :  { %v6034_v62 = vpop.eup %6033 }
0x1034   :  { %v3270_v2 = vmul.f32 %v6034_v62, %v7170_v11  ;;  %v2793_v10 = vpop.permute.xlu1 %2792 }
0x1035   :  { %v3290_v7 = vpack.c.bf16 %v2793_v10, %v2793_v10 }
0x1036   :  { %v3278_v59 = vpack.c.bf16 %v3270_v2, %v3270_v2 }
0x1037   :  { %v6036_v3 = vpop.eup %6035  ;;  %v3617_v35 = vand.u32 %v3290_v7, %v6462_v37 }
0x1038   :  { %5560 = vmatmul.mubr.msk.bf16.vlgmr.msra.gmra.mrb[76].mxu1 %vm1128_vm9, %v3278_v59  ;;  %v3272_v17 = vmul.f32 %v6036_v3, %v7178_v13 }
0x1039   :  { %5570 = vmatpush3.bf16.msra.mxu1 %v3525_v4  ;;  %5571 = vmatprep.mubr.msk.bf16.mxu1 %vm6087_vm5, %v6086_v61 }
0x103a   :  { %5581 = vmatprep.subr.bf16.mxu1 %v6086_v61  ;;  %v3280_v21 = vpack.c.bf16 %v3272_v17, %v3272_v17 }
0x103b   :  { %v6038_v29 = vpop.eup %6037 }
0x103c   :  { %v3274_v32 = vmul.f32 %v6038_v29, %v7183_v15  ;;  %v5859_v15 = vld [vmem:[%s7643_s9 + $0x40] sm:$0xff]  }
0x103d   :  { %5588 = vmatpush3.bf16.msra.mxu0 %v5859_v15 }
0x103e   :  { %v3282_v5 = vpack.c.bf16 %v3274_v32, %v3274_v32  ;;  %5589 = vmatprep.subr.bf16.mxu0 %v6086_v61 }
0x1040   :  { %5572 = vmatmul.mubr.msk.bf16.vlgmr.msra.gmra.mrb[80].mxu1 %vm1128_vm9, %v3280_v21 }
0x1041   :  { %5582 = vmatpush3.bf16.msra.mxu1 %v3617_v35  ;;  %5583 = vmatprep.mubr.msk.bf16.mxu1 %vm6087_vm5, %v6086_v61 }
0x1042   :  { %5590 = vmatpush3.bf16.msra.mxu0 %v5860_v22  ;;  %v5869_v22 = vld [vmem:[%s7647_s13 + $0x104] ss:$16 sps:$4 sm:$0xff]  }
0x1043   :  { %5591 = vmatprep.subr.bf16.mxu0 %v6086_v61  ;;  %4071 = vmatprep.subr.bf16.mxu1 %v5869_v22  ;;  %v5915_v22 = vld [vmem:[%s7649_s15 + $0x140] sm:$0xff]  }
0x1046   :  { %5592 = vmatpush3.bf16.msra.mxu0 %v5861_v24  ;;  %v5876_v24 = vld [vmem:[%s7647_s13 + $0x128] ss:$16 sps:$4 sm:$0xff]  }
0x1047   :  { %5593 = vmatprep.subr.bf16.mxu0 %v6086_v61 }
0x1048   :  { %5584 = vmatmul.mubr.msk.bf16.vlgmr.msra.gmra.mrb[84].mxu1 %vm1128_vm9, %v3282_v5 }
0x1049   :  { %4103 = vmatprep.mubr.bf16.mxu1 %v6085_v1 }
0x104a   :  { %5594 = vmatpush3.bf16.msra.mxu0 %v5862_v41 }
0x104b   :  { %5595 = vmatprep.subr.bf16.mxu0 %v6086_v61 }
0x104e   :  { %5596 = vmatpush3.bf16.msra.mxu0 %v5863_v44 }
0x104f   :  { %5597 = vmatprep.subr.bf16.mxu0 %v6086_v61 }
0x1052   :  { %5598 = vmatpush3.bf16.msra.mxu0 %v5864_v45 }
0x1053   :  { %5599 = vmatprep.subr.bf16.mxu0 %v6086_v61 }
0x1056   :  { %5600 = vmatpush3.bf16.msra.mxu0 %v5865_v48  ;;  %v5884_v48 = vld [vmem:[%s7647_s13 + $0x14c] ss:$16 sps:$4 sm:$0xff]  }
0x1057   :  { %5601 = vmatprep.subr.bf16.mxu0 %v6086_v61 }
0x105a   :  { %5602 = vmatpush3.bf16.msra.mxu0 %v5866_v52  ;;  %v5887_v52 = vld [vmem:[%s7647_s13 + $0x164] ss:$16 sps:$4 sm:$0xff]  }
0x106c   :  { %v7224_v6 = vpop.f32.mrb[64].mxu0 }
0x106d   :  { %v5543_v8 = vpop.f32.mrb[65].mxu0 }
0x106e   :  { %v3334_v36 = vpop.f32.mrb[66].mxu0 }
0x106f   :  { %v5544_v9 = vpop.f32.mrb[67].mxu0 }
0x10bd   :  { %v3377_v11 = vpop.f32.mrb[72].mxu1 }
0x10be   :  { %v5549_v37 = vpop.f32.mrb[73].mxu1 }
0x10bf   :  { %v3380_v63 = vpop.f32.mrb[74].mxu1 }
0x10c0   :  { %v5550_v12 = vpop.f32.mrb[75].mxu1 }
0x10d5   :  { %v3423_v38 = vpop.f32.mrb[68].mxu0 }
0x10d6   :  { %v5555_v13 = vpop.f32.mrb[69].mxu0 }
0x10d7   :  { %v3426_v14 = vpop.f32.mrb[70].mxu0 }
0x10d8   :  { %v5556_v16 = vpop.f32.mrb[71].mxu0 }
0x10dd   :  { %v3515_v20 = vpop.f32.mrb[72].mxu0 }
0x10de   :  { %v5567_v23 = vpop.f32.mrb[73].mxu0 }
0x10df   :  { %v3518_v25 = vpop.f32.mrb[74].mxu0  ;;  %v5872_v23 = vld [vmem:[%s7647_s13 + $0x10c] ss:$16 sps:$4 sm:$0xff]  }
0x10e0   :  { %v5568_v30 = vpop.f32.mrb[75].mxu0  ;;  %v5878_v25 = vld [vmem:[%s7647_s13 + $0x12c] ss:$16 sps:$4 sm:$0xff]   ;;  %4114 = vmatprep.subr.bf16.mxu0 %v5872_v23  ;;  %v5917_v23 = vld [vmem:[%s7649_s15 + $0x100] sm:$0xff]  }
0x10e1   :  { %v5873_v30 = vld [vmem:[%s7647_s13 + $0x120] ss:$16 sps:$4 sm:$0xff]  }
0x10e5   :  { %v3607_v33 = vpop.f32.mrb[76].mxu0 }
0x10e6   :  { %v5690_v39 = vpack.i.bf16 %v3423_v38, %v3607_v33  ;;  %v5579_v34 = vpop.f32.mrb[77].mxu0 }
0x10e7   :  { %v3610_v40 = vpop.f32.mrb[78].mxu0 }
0x10e8   :  { %5691 = vrot.lane.b32.xlu1 %v5690_v39, %s6089_s24  ;;  %v5580_v42 = vpop.f32.mrb[79].mxu0 }
0x110b   :  { %v3469_v28 = vpop.f32.mrb[76].mxu1 }
0x110c   :  { %v5561_v46 = vpop.f32.mrb[77].mxu1  ;;  %3668 = vrot.lane.b32.xlu1 %v3469_v28, %s6088_s2 }
0x110d   :  { %v3472_v50 = vpop.f32.mrb[78].mxu1  ;;  %v5881_v46 = vld [vmem:[%s7647_s13 + $0x144] ss:$16 sps:$4 sm:$0xff]  }
0x110e   :  { %v5562_v51 = vpop.f32.mrb[79].mxu1  ;;  %v5879_v50 = vld [vmem:[%s7647_s13 + $0x140] ss:$16 sps:$4 sm:$0xff]  }
0x110f   :  { %v5882_v51 = vld [vmem:[%s7647_s13 + $0x148] ss:$16 sps:$4 sm:$0xff]  }
0x1113   :  { %v3561_v47 = vpop.f32.mrb[80].mxu1 }
0x1114   :  { %v5685_v43 = vpack.i.bf16 %v3377_v11, %v3561_v47  ;;  %v5573_v55 = vpop.f32.mrb[81].mxu1  ;;  %v5890_v47 = vld [vmem:[%s7647_s13 + $0x16c] ss:$16 sps:$4 sm:$0xff]  }
0x1115   :  { %v3564_v57 = vpop.f32.mrb[82].mxu1  ;;  %v5888_v55 = vld [vmem:[%s7647_s13 + $0x168] ss:$16 sps:$4 sm:$0xff]  }
0x1116   :  { %5686 = vrot.lane.b32.xlu0 %v5685_v43, %s7677_s8  ;;  %v5574_v49 = vpop.f32.mrb[83].mxu1  ;;  %v5885_v43 = vld [vmem:[%s7647_s13 + $0x160] ss:$16 sps:$4 sm:$0xff]   ;;  %v5893_v57 = vld [vmem:[%s7647_s13 + $0x184] ss:$16 sps:$4 sm:$0xff]  }
0x1117   :  { %v5896_v49 = vld [vmem:[%s7647_s13 + $0x18c] ss:$16 sps:$4 sm:$0xff]  }
0x111b   :  { %v3653_v54 = vpop.f32.mrb[84].mxu1 }
0x111c   :  { %3683 = vrot.lane.b32.xlu0 %v3653_v54, %s6088_s2  ;;  %v5585_v56 = vpop.f32.mrb[85].mxu1  ;;  %v5891_v54 = vld [vmem:[%s7647_s13 + $0x180] ss:$16 sps:$4 sm:$0xff]  }
0x111d   :  { %v3656_v60 = vpop.f32.mrb[86].mxu1  ;;  %v5894_v56 = vld [vmem:[%s7647_s13 + $0x188] ss:$16 sps:$4 sm:$0xff]  }
0x111e   :  { %v5586_v62 = vpop.f32.mrb[87].mxu1  ;;  %v5899_v60 = vld [vmem:[%s7647_s13 + $0x1a4] ss:$16 sps:$4 sm:$0xff]  }
0x111f   :  { %v5902_v62 = vld [vmem:[%s7647_s13 + $0x1ac] ss:$16 sps:$4 sm:$0xff]  }
0x115a   :  { %v5692_v2 = vpop.permute.xlu1 %5691 }
0x115b   :  { %v5694_v17 = vunpack.i.h.bf16 %v5692_v2  ;;  %v5693_v7 = vunpack.i.l.bf16 %v5692_v2  ;;  %v5900_v2 = vld [vmem:[%s7647_s13 + $0x1a8] ss:$16 sps:$4 sm:$0xff]  }
0x117e   :  { %v3669_v5 = vpop.permute.xlu1 %3668 }
0x1188   :  { %v5687_v0 = vpop.permute.xlu0 %5686 }
0x1189   :  { %v5689_v59 = vunpack.i.h.bf16 %v5687_v0  ;;  %v5688_v3 = vunpack.i.l.bf16 %v5687_v0  ;;  %v5897_v0 = vld [vmem:[%s7647_s13 + $0x1a0] ss:$16 sps:$4 sm:$0xff]  }
0x118b   :  { %v3671_v4 = vsel %vm646_vm6, %v7224_v6, %v5689_v59  ;;  %v3686_v10 = vsel %vm646_vm6, %v3515_v20, %v5688_v3  ;;  %v4951_v6 = vld [vmem:[%s7644_s10 + $0x1] ss:$0 sm:$0xff]  ;;  %v5905_v59 = vld [vmem:[%s7647_s13 + $0x1c4] ss:$16 sps:$4 sm:$0xff]   ;;  %v5908_v3 = vld [vmem:[%s7647_s13 + $0x1cc] ss:$16 sps:$4 sm:$0xff]  }
0x118c   :  { %v3672_v21 = vsel %vm179_vm0, %v3671_v4, %v5694_v17  ;;  %v3687_v35 = vsel %vm179_vm0, %v3686_v10, %v5693_v7  ;;  %v5903_v4 = vld [vmem:[%s7647_s13 + $0x1c0] ss:$16 sps:$4 sm:$0xff]   ;;  %v5906_v10 = vld [vmem:[%s7647_s13 + $0x1c8] ss:$16 sps:$4 sm:$0xff]   ;;  %v5911_v17 = vld [vmem:[%s7647_s13 + $0x1e4] ss:$16 sps:$4 sm:$0xff]  }
0x118d   :  { %v3673_v36 = vsel %vm1513_vm10, %v3672_v21, %v3669_v5  ;;  %v5914_v7 = vld [vmem:[%s7647_s13 + $0x1ec] ss:$16 sps:$4 sm:$0xff]   ;;  %v5909_v21 = vld [vmem:[%s7647_s13 + $0x1e0] ss:$16 sps:$4 sm:$0xff]  }
0x118e   :  { %v3684_v29 = vpop.permute.xlu0 %3683 }
0x118f   :  { %v3688_v32 = vsel %vm1513_vm10, %v3687_v35, %v3684_v29  ;;  %v5912_v29 = vld [vmem:[%s7647_s13 + $0x1e8] ss:$16 sps:$4 sm:$0xff]  }
0x1190   :  { %v3690_v8 = vrot.slane %v3688_v32, 3 }
0x1192   :  { %v3692_v9 = vsel %vm247_vm3, %v3673_v36, %v3690_v8 }
0x1193   :  { %v3693_v11 = vpack.c.bf16 %v3690_v8, %v3692_v9 }
0x1195   :  { %5604 = vmatmul.mubr.bf16.vlgmr.msra.gmra.mrb[80].mxu0 %v3693_v11 }
0x1196   :  { %4146 = vmatprep.mubr.bf16.mxu0 %v6085_v1  ;;  %v5867_v1 = vld [vmem:[%s7647_s13 + $0x100] ss:$16 sps:$4 sm:$0xff]  }
0x1197   :  { %4072 = vmatpush1.bf16.msra.mxu1 %v5867_v1 }
0x1268   :  { %v3801_v37 = vpop.f32.mrb[80].mxu0 }
0x1269   :  { %v3802_v63 = vadd.f32 %v4951_v6, %v3801_v37  ;;  %v5605_v12 = vpop.f32.mrb[81].mxu0  ;;  %v4962_v37 = vld [vmem:[%s7645_s11 + $0x1] ss:$0 sm:$0xff] }
0x126a   :  { %v3804_v38 = vpop.f32.mrb[82].mxu0 }
0x126b   :  { %v7274_v13 = vadd.f32 %v3802_v63, %v6933_v27  ;;  %v3805_v14 = vadd.f32 %v4951_v6, %v3804_v38  ;;  %v5606_v16 = vpop.f32.mrb[83].mxu0  ;;  %v5870_v27 = vld [vmem:[%s7647_s13 + $0x108] ss:$16 sps:$4 sm:$0xff]  }
0x126c   :  { %4115 = vmatpush1.bf16.msra.mxu0 %v5870_v27  ;;  %v5916_v27 = vld [vmem:[%s7649_s15 + $0x1c0] sm:$0xff]  }
0x126d   :  { %3814 = vadd.xlane.f32.xlu1 %v7274_v13  ;;  %v3809_v15 = vadd.f32 %v3805_v14, %v6936_v18  ;;  %v5875_v18 = vld [vmem:[%s7647_s13 + $0x124] ss:$16 sps:$4 sm:$0xff]   ;;  %4116 = vmatprep.subr.bf16.mxu0 %v5878_v25  ;;  %v4963_v14 = vld [vmem:[%s7646_s12 + $0x1] ss:$0 sm:$0xff]  ;;  %v5919_v25 = vld [vmem:[%s7649_s15 + $0x148] sm:$0xff]  }
0x126e   :  { %4073 = vmatprep.subr.bf16.mxu1 %v5875_v18  ;;  %v5918_v18 = vld [vmem:[%s7649_s15 + $0x180] sm:$0xff]  }
0x126f   :  { %v3816_v20 = vsel %vm255_vm1, %v3809_v15, 0.0  ;;  %4074 = vmatpush1.bf16.msra.mxu1 %v5873_v30  ;;  %v5920_v30 = vld [vmem:[%s7649_s15 + $0x1c8] sm:$0xff]  }
0x1270   :  { %3817 = vadd.xlane.f32.xlu0 %v3816_v20  ;;  %4117 = vmatpush1.bf16.msra.mxu0 %v5876_v24  ;;  %v5921_v24 = vld [vmem:[%s7649_s15 + $0x108] sm:$0xff]  }
0x1271   :  { %4075 = vmatprep.subr.bf16.mxu1 %v5881_v46  ;;  %4118 = vmatprep.subr.bf16.mxu0 %v5884_v48  ;;  %v5931_v46 = vld [vmem:[%s7649_s15 + $0x160] sm:$0xff]  }
0x1272   :  { %v5932_v48 = vld [vmem:[%s7649_s15 + $0x1e0] sm:$0xff]  }
0x1273   :  { %4076 = vmatpush1.bf16.msra.mxu1 %v5879_v50  ;;  %v5933_v50 = vld [vmem:[%s7649_s15 + $0x120] sm:$0xff]  }
0x1274   :  { %4119 = vmatpush1.bf16.msra.mxu0 %v5882_v51  ;;  %4077 = vmatprep.subr.bf16.mxu1 %v5887_v52  ;;  %v5934_v51 = vld [vmem:[%s7649_s15 + $0x1a0] sm:$0xff]   ;;  %v5935_v52 = vld [vmem:[%s7649_s15 + $0x168] sm:$0xff]  }
0x1275   :  { %4120 = vmatprep.subr.bf16.mxu0 %v5890_v47  ;;  %v5936_v47 = vld [vmem:[%s7649_s15 + $0x1e8] sm:$0xff]  }
0x1277   :  { %4078 = vmatpush1.bf16.msra.mxu1 %v5885_v43  ;;  %v5937_v43 = vld [vmem:[%s7649_s15 + $0x128] sm:$0xff]  }
0x1278   :  { %4121 = vmatpush1.bf16.msra.mxu0 %v5888_v55  ;;  %4079 = vmatprep.subr.bf16.mxu1 %v5893_v57  ;;  %v5938_v55 = vld [vmem:[%s7649_s15 + $0x1a8] sm:$0xff]   ;;  %v5939_v57 = vld [vmem:[%s7649_s15 + $0x170] sm:$0xff]  }
0x1279   :  { %4122 = vmatprep.subr.bf16.mxu0 %v5896_v49  ;;  %v5940_v49 = vld [vmem:[%s7649_s15 + $0x1f0] sm:$0xff]  }
0x127b   :  { %4080 = vmatpush1.bf16.msra.mxu1 %v5891_v54  ;;  %v5941_v54 = vld [vmem:[%s7649_s15 + $0x130] sm:$0xff]  }
0x127c   :  { %4123 = vmatpush1.bf16.msra.mxu0 %v5894_v56  ;;  %4081 = vmatprep.subr.bf16.mxu1 %v5899_v60  ;;  %v5942_v56 = vld [vmem:[%s7649_s15 + $0x1b0] sm:$0xff]   ;;  %v5943_v60 = vld [vmem:[%s7649_s15 + $0x178] sm:$0xff]  }
0x127d   :  { %4124 = vmatprep.subr.bf16.mxu0 %v5902_v62  ;;  %v5944_v62 = vld [vmem:[%s7649_s15 + $0x1f8] sm:$0xff]  }
0x127f   :  { %4082 = vmatpush1.bf16.msra.mxu1 %v5897_v0  ;;  %v5945_v0 = vld [vmem:[%s7649_s15 + $0x138] sm:$0xff]  }
0x1280   :  { %4125 = vmatpush1.bf16.msra.mxu0 %v5900_v2  ;;  %4083 = vmatprep.subr.bf16.mxu1 %v5905_v59  ;;  %v5946_v2 = vld [vmem:[%s7649_s15 + $0x1b8] sm:$0xff]   ;;  %v4996_v59 = vld [vmem:[%s7648_s14 + $0x4] sm:$0xf] }
0x1281   :  { %4126 = vmatprep.subr.bf16.mxu0 %v5908_v3  ;;  %v3894_v3 = vrot.slane %v4996_v59, %v6277_v26 }
0x1283   :  { %4084 = vmatpush1.bf16.msra.mxu1 %v5903_v4  ;;  %v3902_v4 = vrot.slane %v4996_v59, %v6420_v53 }
0x1284   :  { %4127 = vmatpush1.bf16.msra.mxu0 %v5906_v10  ;;  %4085 = vmatprep.subr.bf16.mxu1 %v5911_v17  ;;  %v3898_v10 = vrot.slane %v4996_v59, %v6391_v31  ;;  %v3906_v17 = vrot.slane %v4996_v59, %v1740_v58 }
0x1285   :  { %4128 = vmatprep.subr.bf16.mxu0 %v5914_v7 }
0x1287   :  { %4086 = vmatpush1.bf16.msra.mxu1 %v5909_v21 }
0x1288   :  { %4129 = vmatpush1.bf16.msra.mxu0 %v5912_v29  ;;  %5274 = vmatprep.subr.bf16.mxu1 %v5915_v22 }
0x1289   :  { %5296 = vmatprep.subr.bf16.mxu0 %v5916_v27 }
0x12fa   :  { %v3815_v33 = vpop.xlane.xlu1 %3814 }
0x12fb   :  { %v3819_v39 = vmul.f32 0.0078125, %v3815_v33  ;;  %v5922_v33 = vld [vmem:[%s7649_s15 + $0x188] sm:$0xff]  }
0x12fd   :  { %v7304_v34 = vsub.f32 %v7274_v13, %v3819_v39  ;;  %v3818_v40 = vpop.xlane.xlu0 %3817  ;;  %v5923_v39 = vld [vmem:[%s7649_s15 + $0x150] sm:$0xff]  }
0x12fe   :  { %v3820_v42 = vmul.f32 0.0078125, %v3818_v40  ;;  %v5925_v40 = vld [vmem:[%s7649_s15 + $0x110] sm:$0xff]  }
0x12ff   :  { %v3823_v41 = vmul.f32 %v7304_v34, %v7304_v34 }
0x1300   :  { %v7308_v44 = vsub.f32 %v3809_v15, %v3820_v42  ;;  %v5926_v42 = vld [vmem:[%s7649_s15 + $0x190] sm:$0xff]  }
0x1301   :  { %3825 = vadd.xlane.f32.xlu0 %v3823_v41  ;;  %v5927_v41 = vld [vmem:[%s7649_s15 + $0x158] sm:$0xff]  }
0x1302   :  { %v3824_v45 = vmul.f32 %v7308_v44, %v7308_v44 }
0x1304   :  { %v3827_v28 = vsel %vm255_vm1, %v3824_v45, 0.0  ;;  %v5929_v45 = vld [vmem:[%s7649_s15 + $0x118] sm:$0xff]  }
0x1305   :  { %3828 = vadd.xlane.f32.xlu0 %v3827_v28  ;;  %v5930_v28 = vld [vmem:[%s7649_s15 + $0x198] sm:$0xff]  }
0x138e   :  { %v3826_v35 = vpop.xlane.xlu0 %3825 }
0x138f   :  { %v3830_v32 = vmul.f32 0.0078125, %v3826_v35 }
0x1391   :  { %v3832_v5 = vadd.f32 1e-06, %v3830_v32 }
0x1392   :  { %v3829_v8 = vpop.xlane.xlu0 %3828 }
0x1393   :  { %6039 = vrsqrt.f32 %v3832_v5  ;;  %v3831_v36 = vmul.f32 0.0078125, %v3829_v8 }
0x1395   :  { %v3833_v9 = vadd.f32 1e-06, %v3831_v36 }
0x1397   :  { %6041 = vrsqrt.f32 %v3833_v9 }
0x139d   :  { %v6040_v11 = vpop.eup %6039 }
0x139e   :  { %v3836_v6 = vmul.f32 %v6040_v11, %v7304_v34  ;;  %v5924_v34 = vld [vmem:[%s7649_s15 + $0x1d0] sm:$0xff]  }
0x13a0   :  { %v3844_v38 = vmul.f32 %v4962_v37, %v3836_v6 }
0x13a1   :  { %v6042_v63 = vpop.eup %6041 }
0x13a2   :  { %v3837_v12 = vmul.f32 %v6042_v63, %v7308_v44  ;;  %v3852_v15 = vadd.f32 %v4963_v14, %v3844_v38  ;;  %v5928_v44 = vld [vmem:[%s7649_s15 + $0x1d8] sm:$0xff]  }
0x13a4   :  { %v3845_v16 = vmul.f32 %v4962_v37, %v3837_v12 }
0x13a6   :  { %v3853_v20 = vadd.f32 %v4963_v14, %v3845_v16 }
0x13a8   :  { %v3854_v1 = vpack.c.bf16 %v3853_v20, %v3852_v15 }
0x13aa   :  { %4104 = vmatmul.mubr.bf16.vlgmr.msra.gmra.mrb[88].mxu1 %v3854_v1  ;;  %4147 = vmatmul.mubr.bf16.vlgmr.msra.gmra.mrb[84].mxu0 %v3854_v1 }
0x13ab   :  { %5275 = vmatpush3.bf16.msra.mxu1 %v5917_v23  ;;  %5297 = vmatpush3.bf16.msra.mxu0 %v5918_v18 }
0x13ac   :  { %5276 = vmatprep.subr.bf16.mxu1 %v5919_v25  ;;  %5298 = vmatprep.subr.bf16.mxu0 %v5920_v30 }
0x13af   :  { %5277 = vmatpush3.bf16.msra.mxu1 %v5921_v24  ;;  %5299 = vmatpush3.bf16.msra.mxu0 %v5922_v33 }
0x13b0   :  { %5278 = vmatprep.subr.bf16.mxu1 %v5923_v39  ;;  %5300 = vmatprep.subr.bf16.mxu0 %v5924_v34 }
0x13b3   :  { %5279 = vmatpush3.bf16.msra.mxu1 %v5925_v40  ;;  %5301 = vmatpush3.bf16.msra.mxu0 %v5926_v42 }
0x13b4   :  { %5280 = vmatprep.subr.bf16.mxu1 %v5927_v41  ;;  %5302 = vmatprep.subr.bf16.mxu0 %v5928_v44 }
0x13b7   :  { %5281 = vmatpush3.bf16.msra.mxu1 %v5929_v45  ;;  %5303 = vmatpush3.bf16.msra.mxu0 %v5930_v28 }
0x13b8   :  { %5282 = vmatprep.subr.bf16.mxu1 %v5931_v46  ;;  %5304 = vmatprep.subr.bf16.mxu0 %v5932_v48 }
0x13bb   :  { %5283 = vmatpush3.bf16.msra.mxu1 %v5933_v50  ;;  %5305 = vmatpush3.bf16.msra.mxu0 %v5934_v51 }
0x13bc   :  { %5284 = vmatprep.subr.bf16.mxu1 %v5935_v52  ;;  %5306 = vmatprep.subr.bf16.mxu0 %v5936_v47 }
0x13bf   :  { %5285 = vmatpush3.bf16.msra.mxu1 %v5937_v43  ;;  %5307 = vmatpush3.bf16.msra.mxu0 %v5938_v55 }
0x13c0   :  { %5286 = vmatprep.subr.bf16.mxu1 %v5939_v57  ;;  %5308 = vmatprep.subr.bf16.mxu0 %v5940_v49 }
0x13c3   :  { %5287 = vmatpush3.bf16.msra.mxu1 %v5941_v54  ;;  %5309 = vmatpush3.bf16.msra.mxu0 %v5942_v56 }
0x13c4   :  { %5288 = vmatprep.subr.bf16.mxu1 %v5943_v60  ;;  %5310 = vmatprep.subr.bf16.mxu0 %v5944_v62 }
0x13c7   :  { %5289 = vmatpush3.bf16.msra.mxu1 %v5945_v0  ;;  %5311 = vmatpush3.bf16.msra.mxu0 %v5946_v2 }
0x147d   :  { %v4105_v7 = vpop.f32.mrb[88].mxu1  ;;  %v4148_v21 = vpop.f32.mrb[84].mxu0 }
0x147e   :  { %v7497_v29 = vadd.f32 %v4105_v7, %v3894_v3  ;;  %v7499_v35 = vadd.f32 %v4148_v21, %v3902_v4  ;;  %v4107_v32 = vpop.f32.mrb[89].mxu1  ;;  %v4150_v5 = vpop.f32.mrb[85].mxu0 }
0x147f   :  { %v7501_v8 = vadd.f32 %v4107_v32, %v3898_v10  ;;  %v7503_v36 = vadd.f32 %v4150_v5, %v3906_v17  ;;  %v4109_v26 = vpop.f32.mrb[90].mxu1  ;;  %v4152_v9 = vpop.f32.mrb[86].mxu0 }
0x1480   :  { %v4157_v31 = vmul.f32 %v7497_v29, %v7497_v29  ;;  %v4159_v19 = vmul.f32 %v7499_v35, %v7499_v35  ;;  %v7509_v53 = vadd.f32 %v4109_v26, %v3894_v3  ;;  %v7511_v58 = vadd.f32 %v4152_v9, %v3902_v4  ;;  %v4111_v11 = vpop.f32.mrb[91].mxu1  ;;  %v4154_v6 = vpop.f32.mrb[87].mxu0 }
0x1481   :  { %v4158_v37 = vmul.f32 %v7501_v8, %v7501_v8  ;;  %v4160_v63 = vmul.f32 %v7503_v36, %v7503_v36  ;;  %v7517_v12 = vadd.f32 %v4111_v11, %v3898_v10  ;;  %v7519_v38 = vadd.f32 %v4154_v6, %v3906_v17 }
0x1482   :  { %v4165_v14 = vmul.f32 %v4157_v31, %v7497_v29  ;;  %v4167_v16 = vmul.f32 %v4159_v19, %v7499_v35  ;;  %v4161_v15 = vmul.f32 %v7509_v53, %v7509_v53  ;;  %v4163_v20 = vmul.f32 %v7511_v58, %v7511_v58 }
0x1483   :  { %v4166_v1 = vmul.f32 %v4158_v37, %v7501_v8  ;;  %v4168_v22 = vmul.f32 %v4160_v63, %v7503_v36  ;;  %v4162_v27 = vmul.f32 %v7517_v12, %v7517_v12  ;;  %v4164_v23 = vmul.f32 %v7519_v38, %v7519_v38 }
0x1484   :  { %v4173_v18 = vmul.f32 0.044715, %v4165_v14  ;;  %v4175_v25 = vmul.f32 0.044715, %v4167_v16  ;;  %v4169_v30 = vmul.f32 %v4161_v15, %v7509_v53  ;;  %v4171_v24 = vmul.f32 %v4163_v20, %v7511_v58 }
0x1485   :  { %v4174_v33 = vmul.f32 0.044715, %v4166_v1  ;;  %v4176_v39 = vmul.f32 0.044715, %v4168_v22  ;;  %v4170_v34 = vmul.f32 %v4162_v27, %v7517_v12  ;;  %v4172_v40 = vmul.f32 %v4164_v23, %v7519_v38 }
0x1486   :  { %v4181_v42 = vadd.f32 %v4173_v18, %v7497_v29  ;;  %v4183_v41 = vadd.f32 %v4175_v25, %v7499_v35  ;;  %v4177_v44 = vmul.f32 0.044715, %v4169_v30  ;;  %v4179_v45 = vmul.f32 0.044715, %v4171_v24 }
0x1487   :  { %v4182_v28 = vadd.f32 %v4174_v33, %v7501_v8  ;;  %v4184_v46 = vadd.f32 %v4176_v39, %v7503_v36  ;;  %v4178_v48 = vmul.f32 0.044715, %v4170_v34  ;;  %v4180_v50 = vmul.f32 0.044715, %v4172_v40 }
0x1488   :  { %v4189_v51 = vmul.f32 0.7978846, %v4181_v42  ;;  %v4191_v52 = vmul.f32 0.7978846, %v4183_v41  ;;  %v4185_v47 = vadd.f32 %v4177_v44, %v7509_v53  ;;  %v4187_v43 = vadd.f32 %v4179_v45, %v7511_v58 }
0x1489   :  { %v4190_v55 = vmul.f32 0.7978846, %v4182_v28  ;;  %v4192_v57 = vmul.f32 0.7978846, %v4184_v46  ;;  %v4186_v49 = vadd.f32 %v4178_v48, %v7517_v12  ;;  %v4188_v54 = vadd.f32 %v4180_v50, %v7519_v38 }
0x148a   :  { %6043 = vtanh.f32 %v4189_v51  ;;  %v4193_v56 = vmul.f32 0.7978846, %v4185_v47  ;;  %v4195_v60 = vmul.f32 0.7978846, %v4187_v43  ;;  %v4613_v47 = vld [vmem:[%s7653_s19] sm:$0xff]  ;;  %v4614_v43 = vld [vmem:[%s7653_s19 + $0x8] sm:$0xff] }
0x148b   :  { %6045 = vtanh.f32 %v4191_v52  ;;  %v4194_v62 = vmul.f32 0.7978846, %v4186_v49  ;;  %v4196_v0 = vmul.f32 0.7978846, %v4188_v54  ;;  %v4616_v49 = vld [vmem:[%s7653_s19 + $0x18] sm:$0xff] }
0x148c   :  { %6047 = vtanh.f32 %v4190_v55  ;;  %v4615_v55 = vld [vmem:[%s7653_s19 + $0x10] sm:$0xff] }
0x148d   :  { %6049 = vtanh.f32 %v4192_v57  ;;  %v6092_v57 = vmov 0.0|0.0   ;;  %v5646_v54 = vpack.c.bf16 %v4616_v49, %v4615_v55 }
0x148e   :  { %6051 = vtanh.f32 %v4193_v56  ;;  %5642 = vmatprep.subr.bf16.mxu1 %v6092_v57  ;;  %v4617_v56 = vld [vmem:[%s7653_s19 + $0x20] sm:$0xff] }
0x148f   :  { %6053 = vtanh.f32 %v4195_v60  ;;  %v4618_v60 = vld [vmem:[%s7653_s19 + $0x28] sm:$0xff] }
0x1490   :  { %6055 = vtanh.f32 %v4194_v62  ;;  %v5649_v62 = vpack.c.bf16 %v4618_v60, %v4617_v56 }
0x1491   :  { %6057 = vtanh.f32 %v4196_v0 }
0x1494   :  { %v6044_v2 = vpop.eup %6043 }
0x1495   :  { %v6046_v59 = vpop.eup %6045  ;;  %v4205_v3 = vadd.f32 1.0, %v6044_v2 }
0x1496   :  { %v6048_v4 = vpop.eup %6047  ;;  %v4207_v10 = vadd.f32 1.0, %v6046_v59 }
0x1497   :  { %v6050_v17 = vpop.eup %6049  ;;  %v4206_v7 = vadd.f32 1.0, %v6048_v4  ;;  %v4213_v26 = vmul.f32 0.5, %v4205_v3 }
0x1498   :  { %v6052_v21 = vpop.eup %6051  ;;  %v4208_v32 = vadd.f32 1.0, %v6050_v17  ;;  %v4215_v19 = vmul.f32 0.5, %v4207_v10  ;;  %v4619_v10 = vld [vmem:[%s7653_s19 + $0x30] sm:$0xff]  ;;  %v4620_v17 = vld [vmem:[%s7653_s19 + $0x38] sm:$0xff] }
0x1499   :  { %v6054_v5 = vpop.eup %6053  ;;  %v4209_v9 = vadd.f32 1.0, %v6052_v21  ;;  %v4214_v14 = vmul.f32 0.5, %v4206_v7  ;;  %v4221_v1 = vmul.f32 %v4213_v26, %v7497_v29  ;;  %v5652_v7 = vpack.c.bf16 %v4620_v17, %v4619_v10  ;;  %v4621_v21 = vld [vmem:[%s7653_s19 + $0x40] sm:$0xff] }
0x149a   :  { %v6056_v31 = vpop.eup %6055  ;;  %v4211_v11 = vadd.f32 1.0, %v6054_v5  ;;  %v4216_v20 = vmul.f32 0.5, %v4208_v32  ;;  %v4223_v23 = vmul.f32 %v4215_v19, %v7499_v35  ;;  %v4622_v32 = vld [vmem:[%s7653_s19 + $0x48] sm:$0xff]  ;;  %v4623_v5 = vld [vmem:[%s7653_s19 + $0x50] sm:$0xff]  ;;  %v4625_v19 = vld [vmem:[%s7653_s19 + $0x60] sm:$0xff] }
0x149b   :  { %v6058_v6 = vpop.eup %6057  ;;  %v4217_v37 = vmul.f32 0.5, %v4209_v9  ;;  %v4210_v63 = vadd.f32 1.0, %v6056_v31  ;;  %v4222_v30 = vmul.f32 %v4214_v14, %v7501_v8  ;;  %v5094_v8 = vld [vmem:[%s7650_s16 + $0x1] ss:$0 sm:$0xff]  ;;  %v5655_v26 = vpack.c.bf16 %v4622_v32, %v4621_v21  ;;  %v4624_v9 = vld [vmem:[%s7653_s19 + $0x58] sm:$0xff] }
0x149c   :  { %v4219_v16 = vmul.f32 0.5, %v4211_v11  ;;  %v4212_v15 = vadd.f32 1.0, %v6058_v6  ;;  %v4224_v39 = vmul.f32 %v4216_v20, %v7503_v36  ;;  %v5658_v31 = vpack.c.bf16 %v4624_v9, %v4623_v5  ;;  %v4626_v11 = vld [vmem:[%s7653_s19 + $0x68] sm:$0xff] }
0x149d   :  { %v4225_v22 = vmul.f32 %v4217_v37, %v7509_v53  ;;  %v4218_v27 = vmul.f32 0.5, %v4210_v63  ;;  %v5661_v6 = vpack.c.bf16 %v4626_v11, %v4625_v19  ;;  %v4627_v37 = vld [vmem:[%s7653_s19 + $0x70] sm:$0xff]  ;;  %v4628_v63 = vld [vmem:[%s7653_s19 + $0x78] sm:$0xff]  ;;  %s6093_s19 = smov [#allocation2]  }
0x149e   :  { %v4227_v18 = vmul.f32 %v4219_v16, %v7511_v58  ;;  %v4220_v25 = vmul.f32 0.5, %v4212_v15  ;;  %v5664_v14 = vpack.c.bf16 %v4628_v63, %v4627_v37  ;;  %s4713_s2 = sshll.u32 %s6093_s19, 4  ;;  %s4714_s2 = int_to_ptr.vmem [resolvable:$true] %s4713_s2 }
0x149f   :  { %v4226_v24 = vmul.f32 %v4218_v27, %v7517_v12  ;;  %v4229_v33 = vpack.c.bf16 %v4225_v22, %v4221_v1  ;;  %v5127_v22 = vld [vmem:[%s7651_s17] ss:$0 sm:$0xff]  ;;  %s6061_s8 = scalar_lea.vmem %s4714_s2, 32  ;;  %p6066_p1 = scmp.lt.s32.totalorder %s4714_s2, %s4714_s2 }
0x14a0   :  { %v4228_v34 = vmul.f32 %v4220_v25, %v7519_v38  ;;  %v4231_v40 = vpack.c.bf16 %v4227_v18, %v4223_v23  ;;  %v5128_v23 = vld [vmem:[%s7652_s18] ss:$0 sm:$0xff]  ;;  %p6062_p0 = scmp.ne.s32.totalorder %s4714_s2, %s6061_s8  ;;  %p6067_p2 = scmp.lt.s32.totalorder %s6061_s8, %s6061_s8 }
0x14a1   :  { %v4230_v42 = vpack.c.bf16 %v4226_v24, %v4222_v30 }
0x14a2   :  { %v4232_v29 = vpack.c.bf16 %v4228_v34, %v4224_v39  ;;  %p6068_p3 = por %p6067_p2, %p6066_p1 }
0x14a3   :  { %4530 = vmatprep.mubr.bf16.mxu1 %v4230_v42 }
0x14a4   :  { %4570 = vmatprep.mubr.bf16.mxu0 %v4232_v29  ;;  %4531 = vmatmul.mubr.bf16.vlgmr.msra.gmra.mrb[92].mxu1 %v4229_v33  ;;  %p6069_p4 = pnand %p6068_p3, %p6062_p0 }
0x14a5   :  { %4571 = vmatmul.mubr.bf16.vlgmr.msra.gmra.mrb[88].mxu0 %v4231_v40  ;;  %5639 = vmatprep.mubr.msk.f32.mxu1 %vm6087_vm5, %v6086_v61 }
0x1577   :  { %v5290_v35 = vpop.f32.mrb[92].mxu1 }
0x1578   :  { %v5312_v53 = vpop.f32.mrb[88].mxu0  ;;  %v5291_v58 = vpop.f32.mrb[93].mxu1 }
0x1579   :  { %v5292_v36 = vadd.f32 %v5291_v58, %v5290_v35  ;;  %v5313_v12 = vpop.f32.mrb[89].mxu0  ;;  %v5293_v38 = vpop.f32.mrb[94].mxu1 }
0x157a   :  { %v5314_v41 = vadd.f32 %v5313_v12, %v5312_v53  ;;  %v5315_v44 = vpop.f32.mrb[90].mxu0  ;;  %v5294_v45 = vpop.f32.mrb[95].mxu1 }
0x157b   :  { %v4533_v28 = vadd.f32 %v5292_v36, %v5094_v8  ;;  %v5316_v46 = vpop.f32.mrb[91].mxu0 }
0x157d   :  { %v4573_v48 = vadd.f32 %v5314_v41, %v4533_v28 }
0x157f   :  { %v4578_v50 = vadd.f32 %v4573_v48, %v7274_v13  ;;  %v5643_v13 = vpack.c.bf16 %v4614_v43, %v4613_v47 }
0x1581   :  { %v4580_v51 = vrot.slane %v4578_v50, 4  ;;  %5644 = vmatpush3.bf16.msra.mxu1 %v5643_v13 }
0x1582   :  { %5645 = vmatprep.subr.bf16.mxu1 %v6092_v57 }
0x1583   :  { %v4582_v61 = vsel %vm245_vm2, %v4578_v50, %v4580_v51 }
0x1584   :  { %v4585_v52 = vsel %vm255_vm1, %v4582_v61, 0.0 }
0x1585   :  { %4586 = vadd.xlane.f32.xlu0 %v4585_v52  ;;  %5647 = vmatpush3.bf16.msra.mxu1 %v5646_v54 }
0x1586   :  { %5648 = vmatprep.subr.bf16.mxu1 %v6092_v57 }
0x1589   :  { %5650 = vmatpush3.bf16.msra.mxu1 %v5649_v62 }
0x158a   :  { %5651 = vmatprep.subr.bf16.mxu1 %v6092_v57 }
0x158d   :  { %5653 = vmatpush3.bf16.msra.mxu1 %v5652_v7 }
0x158e   :  { %5654 = vmatprep.subr.bf16.mxu1 %v6092_v57 }
0x1591   :  { %5656 = vmatpush3.bf16.msra.mxu1 %v5655_v26 }
0x1592   :  { %5657 = vmatprep.subr.bf16.mxu1 %v6092_v57 }
0x1595   :  { %5659 = vmatpush3.bf16.msra.mxu1 %v5658_v31 }
0x1596   :  { %5660 = vmatprep.subr.bf16.mxu1 %v6092_v57 }
0x1599   :  { %5662 = vmatpush3.bf16.msra.mxu1 %v5661_v6 }
0x159a   :  { %5663 = vmatprep.subr.bf16.mxu1 %v6092_v57 }
0x159d   :  { %5665 = vmatpush3.bf16.msra.mxu1 %v5664_v14 }
0x1612   :  { %v4587_v0 = vpop.xlane.xlu0 %4586 }
0x1613   :  { %v4588_v2 = vmul.f32 0.0078125, %v4587_v0 }
0x1615   :  { %v4589_v59 = vsub.f32 %v4582_v61, %v4588_v2 }
0x1617   :  { %v4590_v3 = vmul.f32 %v4589_v59, %v4589_v59 }
0x1619   :  { %v4591_v4 = vsel %vm255_vm1, %v4590_v3, 0.0 }
0x161a   :  { %4592 = vadd.xlane.f32.xlu1 %v4591_v4 }
0x16a7   :  { %v4593_v16 = vpop.xlane.xlu1 %4592 }
0x16a8   :  { %v4594_v15 = vmul.f32 0.0078125, %v4593_v16 }
0x16aa   :  { %v4595_v20 = vadd.f32 1e-06, %v4594_v15 }
0x16ac   :  { %6059 = vrsqrt.f32 %v4595_v20 }
0x16b6   :  { %v6060_v1 = vpop.eup %6059 }
0x16b7   :  { %v4597_v27 = vmul.f32 %v6060_v1, %v4589_v59 }
0x16b9   :  { %v4604_v18 = vmul.f32 %v5127_v22, %v4597_v27 }
0x16bb   :  { %v4611_v25 = vadd.f32 %v5128_v23, %v4604_v18 }
0x16bd   :  { %5640 = vmatmul.mubr.f32.vlgmr.msra.gmra.mrb[96].mxu1 %v4611_v25  ;;  %4612 = vst [vmem:[#allocation2] sm:$0x3] %v4611_v25 }
0x16be   :  { %6072 = shalt.err (!%p6069_p4)
}
0x16bf   :  { %s6073_s10 = scalar_lea.hbm %s7655_s21, 32 }
0x16c0   :  { %p6074_p5 = scmp.ne.s32.totalorder %s7655_s21, %s6073_s10  ;;  %p6077_p6 = scmp.lt.u32.totalorder %s6073_s10, %s7655_s21 }
0x16c2   :  { %p6079_p7 = pnand %p6077_p6, %p6074_p5 }
0x16c4   :  { %6082 = shalt.err (!%p6079_p7)
}
0x16c5   :  { %4716 = dma.vmem_to_hbm [thread:$0]  %s4714_s2, 32, %s7655_s21, [#allocation3]   ;;  %v5129_v30 = vld [vmem:[%s7654_s20] ss:$0 sm:$0xff] }
0x1790   :  { %v4702_v24 = vpop.f32.mrb[96].mxu1 }
0x1791   :  { %v4703_v33 = vadd.f32 %v5129_v30, %v4702_v24  ;;  %v5641_v39 = vpop.f32.mrb[97].mxu1 }
0x1793   :  { %4706 = vst [vmem:[%s7656_s22] sm:$0x3] %v4703_v33 }
0x1794   :  { %6083 = dma.done.wait [#allocation3], 32  }
0x1795   :  { %6084 = vsyncadd [#allocation3], 4294967264 }
0x1796   :  { %4724 = vsyncpa [#allocation3], 1 }

</bundles_post_ra>
